<compile_context>
chip_gen: v7x
topology: tpu7x:2x2x1
jax: 0.10.0
libtpu: 0.0.40
codegen_flags: <defaults>
</compile_context>

<pallas_src>
import jax
import jax.numpy as jnp
from jax.experimental import pallas as pl
from jax.experimental.pallas import tpu as pltpu

C = 32    # channels per path (fixed by the module)
CC = 96   # concatenated channels (3 * 32)


def inception_kernel(x_ref,
                     wpack_ref, bpack_ref,          # packed 1x1 convs [w2a|w3a|w1]
                     w3r_ref, b3_ref,               # 3x3 conv rows (kw*32 + cin)
                     w5r_ref, b5_ref,               # 5x5 conv rows (kw*32 + cin)
                     wc1_ref, wc2_ref, wc3_ref, bc_ref,   # concat conv (split)
                     out_ref,
                     pad3_ref, pad5_ref):
    Bt, H, W, _ = x_ref.shape
    M = Bt * H * W
    f32 = jnp.float32
    bf16 = jnp.bfloat16

    xf = x_ref[...].reshape(M, C)                   # f32, kept for residual add
    xf_bf = xf.astype(bf16)

    # ---- all three 1x1 convs fused into one (M,32)@(32,96) matmul ----------
    t_all = jnp.dot(xf_bf, wpack_ref[...], preferred_element_type=f32)
    t_all = jnp.maximum(t_all + bpack_ref[...], 0.0)    # [t2 | t3 | p1], f32
    t_bf = t_all.astype(bf16)
    t2 = t_bf[:, :C]            # offset-0 lane slice (free)
    t3 = t_bf[:, C:2 * C]       # one XLU lane rotate
    p1 = t_bf[:, 2 * C:]        # one XLU lane rotate

    # ---- KxK conv on a 32-wide channel block, K wide-K matmuls --------------
    def conv_kxk(t, pad_ref, w_rows_ref, b_ref, K):
        p = K // 2
        Hp, Wp = H + 2 * p, W + 2 * p
        # zero only the thin borders; the interior is fully rewritten below.
        pad_ref[:, 0:p, :, :] = jnp.zeros((Bt, p, Wp, C), bf16)
        pad_ref[:, H + p:Hp, :, :] = jnp.zeros((Bt, p, Wp, C), bf16)
        pad_ref[:, :, 0:p, :] = jnp.zeros((Bt, Hp, p, C), bf16)
        pad_ref[:, :, W + p:Wp, :] = jnp.zeros((Bt, Hp, p, C), bf16)
        pad_ref[:, p:H + p, p:W + p, :] = t.reshape(Bt, H, W, C)

        # gather the K horizontal taps once: (Bt, Hp, W, K*32)
        P = jnp.concatenate(
            [pad_ref[:, :, kw:kw + W, :] for kw in range(K)], axis=-1)

        # one matmul per kernel row (K matmuls with K-dim = K*32)
        acc = jnp.dot(P[:, 0:H].reshape(M, K * C), w_rows_ref[0],
                      preferred_element_type=f32)
        for kh in range(1, K):
            acc = acc + jnp.dot(P[:, kh:kh + H].reshape(M, K * C),
                                w_rows_ref[kh], preferred_element_type=f32)
        return jnp.maximum(acc + b_ref[...], 0.0)       # bias added once, f32

    p2 = conv_kxk(t2, pad3_ref, w3r_ref, b3_ref, 3)
    p3 = conv_kxk(t3, pad5_ref, w5r_ref, b5_ref, 5)

    # ---- concat_conv1x1 as split-weight accumulation (no lane concat) ------
    fused = (jnp.dot(p1, wc1_ref[...], preferred_element_type=f32)
             + jnp.dot(p2.astype(bf16), wc2_ref[...], preferred_element_type=f32)
             + jnp.dot(p3.astype(bf16), wc3_ref[...], preferred_element_type=f32)
             + bc_ref[...])
    fused = jnp.maximum(fused, 0.0)

    out_ref[...] = (xf + fused).reshape(Bt, H, W, C)    # residual add, f32


def _pick_bt(B):
    """Prefer >= 4 grid steps (pipelining + v7x megacore), then >= 2, then 1."""
    for min_steps in (4, 2, 1):
        for cand in (8, 4, 2, 1):
            if B % cand == 0 and (B // cand) >= min_steps:
                return cand
    return 1


def inception_forward(x_nchw, params):
    """x_nchw: (B, 32, H, W) float32 -> (B, 32, H, W) float32."""
    B, Cin, H, W = x_nchw.shape
    assert Cin == C
    x = jnp.transpose(x_nchw, (0, 2, 3, 1))             # NHWC
    bf16 = jnp.bfloat16

    (w1, b1, w2a, b2a, w3, b3, w3a, b3a, w5, b5, wc, bc) = params

    # ---- wrapper-side weight packing (kernel sees matmul-ready layouts) ----
    wpack = jnp.concatenate([w2a, w3a, w1], axis=1).astype(bf16)  # (32, 96)
    bpack = jnp.concatenate([b2a, b3a, b1], axis=1)               # (1, 96) f32
    # conv weights flattened so row index = kw*32 + cin -> (K, K*32, 32)
    w3r = w3.reshape(3, 3 * C, C).astype(bf16)
    w5r = w5.reshape(5, 5 * C, C).astype(bf16)
    # concat-conv split per path (no zero padding anywhere)
    wc1 = wc[:C].astype(bf16)
    wc2 = wc[C:2 * C].astype(bf16)
    wc3 = wc[2 * C:].astype(bf16)

    # ---- batch blocking: keep the grid >= 2 steps ---------------------------
    Bt = _pick_bt(B)
    grid = (B // Bt,)

    def full_spec(shape):
        n = len(shape)
        return pl.BlockSpec(shape, lambda b, _n=n: (0,) * _n)

    grid_spec = pltpu.PrefetchScalarGridSpec(
        num_scalar_prefetch=0,
        grid=grid,
        in_specs=[
            pl.BlockSpec((Bt, H, W, C), lambda b: (b, 0, 0, 0)),
            full_spec((C, 3 * C)),        full_spec((1, 3 * C)),
            full_spec((3, 3 * C, C)),     full_spec((1, C)),
            full_spec((5, 5 * C, C)),     full_spec((1, C)),
            full_spec((C, C)),
            full_spec((C, C)),
            full_spec((C, C)),
            full_spec((1, C)),
        ],
        out_specs=pl.BlockSpec((Bt, H, W, C), lambda b: (b, 0, 0, 0)),
        scratch_shapes=[
            pltpu.VMEM((Bt, H + 2, W + 2, C), bf16),   # 3x3 padded buffer
            pltpu.VMEM((Bt, H + 4, W + 4, C), bf16),   # 5x5 padded buffer
        ],
    )

    out_nhwc = pl.pallas_call(
        inception_kernel,
        out_shape=jax.ShapeDtypeStruct((B, H, W, C), jnp.float32),
        grid_spec=grid_spec,
        compiler_params=pltpu.CompilerParams(
            dimension_semantics=("parallel",)),   # batch images are independent
    )(x, wpack, bpack, w3r, b3, w5r, b5, wc1, wc2, wc3, bc)

    return jnp.transpose(out_nhwc, (0, 3, 1, 2))


def make_params(key):
    """Deterministic PyTorch-style (uniform +-1/sqrt(fan_in)) init.
    1x1 weights stored as (Cin, Cout); KxK weights stored HWIO (K,K,Cin,Cout);
    biases stored as (1, Cout)."""
    ks = jax.random.split(key, 12)

    def uni(k, shape, fan_in):
        bound = 1.0 / (fan_in ** 0.5)
        return jax.random.uniform(k, shape, jnp.float32, -bound, bound)

    w1 = uni(ks[0], (C, C), C);            b1 = uni(ks[1], (1, C), C)
    w2a = uni(ks[2], (C, C), C);           b2a = uni(ks[3], (1, C), C)
    w3 = uni(ks[4], (3, 3, C, C), C * 9);  b3 = uni(ks[5], (1, C), C * 9)
    w3a = uni(ks[6], (C, C), C);           b3a = uni(ks[7], (1, C), C)
    w5 = uni(ks[8], (5, 5, C, C), C * 25); b5 = uni(ks[9], (1, C), C * 25)
    wc = uni(ks[10], (CC, C), CC);         bc = uni(ks[11], (1, C), CC)
    return (w1, b1, w2a, b2a, w3, b3, w3a, b3a, w5, b5, wc, bc)


def ref_forward_nhwc(x_nhwc, params):
    """Pure-JAX reference (lax.conv, HIGHEST precision) for correctness."""
    (w1, b1, w2a, b2a, w3, b3, w3a, b3a, w5, b5, wc, bc) = params

    def conv(x, w_hwio, b, pad):
        y = jax.lax.conv_general_dilated(
            x, w_hwio, (1, 1), [(pad, pad), (pad, pad)],
            dimension_numbers=('NHWC', 'HWIO', 'NHWC'),
            precision=jax.lax.Precision.HIGHEST)
        return jax.nn.relu(y + b.reshape(1, 1, 1, -1))

    p1 = conv(x_nhwc, w1.reshape(1, 1, C, C), b1, 0)
    p2 = conv(x_nhwc, w2a.reshape(1, 1, C, C), b2a, 0)
    p2 = conv(p2, w3, b3, 1)
    p3 = conv(x_nhwc, w3a.reshape(1, 1, C, C), b3a, 0)
    p3 = conv(p3, w5, b5, 2)
    cat = jnp.concatenate([p1, p2, p3], axis=-1)
    fused = conv(cat, wc.reshape(1, 1, CC, C), bc, 0)
    return x_nhwc + fused


if __name__ == "__main__":
    key = jax.random.PRNGKey(0)
    k_x, k_p = jax.random.split(key)

    B, H, W = 2, 16, 16
    x = jax.random.normal(k_x, (B, C, H, W), jnp.float32)   # NCHW like PyTorch
    params = make_params(k_p)

    out = jax.block_until_ready(inception_forward(x, params))
    assert out.shape == (B, C, H, W)

    ref = ref_forward_nhwc(jnp.transpose(x, (0, 2, 3, 1)), params)
    ref = jnp.transpose(ref, (0, 3, 1, 2))
    # Tolerance loosened relative to the pure-f32 version: MXU operands are
    # bf16 (f32 accumulation), so max-abs error vs the HIGHEST-precision f32
    # reference is O(1e-2).
    max_err = float(jnp.max(jnp.abs(out - ref)))
    assert max_err < 1e-1, f"mismatch vs reference: {max_err}"

    print("KERNEL_OK")
</pallas_src>

<mosaic_0001>
module attributes {stable_mosaic.version = 11 : i64} {
  func.func @inception_kernel(%arg0: i32, %arg1: memref<1x16x16x32xf32, #tpu.memory_space<vmem>>, %arg2: memref<32x96xbf16, #tpu.memory_space<vmem>>, %arg3: memref<1x96xf32, #tpu.memory_space<vmem>>, %arg4: memref<3x96x32xbf16, #tpu.memory_space<vmem>>, %arg5: memref<1x32xf32, #tpu.memory_space<vmem>>, %arg6: memref<5x160x32xbf16, #tpu.memory_space<vmem>>, %arg7: memref<1x32xf32, #tpu.memory_space<vmem>>, %arg8: memref<32x32xbf16, #tpu.memory_space<vmem>>, %arg9: memref<32x32xbf16, #tpu.memory_space<vmem>>, %arg10: memref<32x32xbf16, #tpu.memory_space<vmem>>, %arg11: memref<1x32xf32, #tpu.memory_space<vmem>>, %arg12: memref<1x16x16x32xf32, #tpu.memory_space<vmem>>, %arg13: memref<1x18x18x32xbf16, #tpu.memory_space<vmem>>, %arg14: memref<1x20x20x32xbf16, #tpu.memory_space<vmem>>) attributes {dimension_semantics = [#tpu.dimension_semantics<parallel>], iteration_bounds = array<i64: 2>, scalar_prefetch = 0 : i64, scratch_operands = 2 : i64, tpu.core_type = #tpu.core_type<tc>, window_params = [{transform_indices = @transform_0, window_bounds = array<i64: 1, 16, 16, 32>}, {pipeline_mode = #tpu.pipeline_mode<synchronous>, transform_indices = @transform_1, window_bounds = array<i64: 32, 96>}, {pipeline_mode = #tpu.pipeline_mode<synchronous>, transform_indices = @transform_2, window_bounds = array<i64: 1, 96>}, {pipeline_mode = #tpu.pipeline_mode<synchronous>, transform_indices = @transform_3, window_bounds = array<i64: 3, 96, 32>}, {pipeline_mode = #tpu.pipeline_mode<synchronous>, transform_indices = @transform_4, window_bounds = array<i64: 1, 32>}, {pipeline_mode = #tpu.pipeline_mode<synchronous>, transform_indices = @transform_5, window_bounds = array<i64: 5, 160, 32>}, {pipeline_mode = #tpu.pipeline_mode<synchronous>, transform_indices = @transform_6, window_bounds = array<i64: 1, 32>}, {pipeline_mode = #tpu.pipeline_mode<synchronous>, transform_indices = @transform_7, window_bounds = array<i64: 32, 32>}, {pipeline_mode = #tpu.pipeline_mode<synchronous>, transform_indices = @transform_8, window_bounds = array<i64: 32, 32>}, {pipeline_mode = #tpu.pipeline_mode<synchronous>, transform_indices = @transform_9, window_bounds = array<i64: 32, 32>}, {pipeline_mode = #tpu.pipeline_mode<synchronous>, transform_indices = @transform_10, window_bounds = array<i64: 1, 32>}, {transform_indices = @transform_11, window_bounds = array<i64: 1, 16, 16, 32>}]} {
    %c0 = arith.constant 0 : index
    %c0_0 = arith.constant 0 : index
    %c0_1 = arith.constant 0 : index
    %c0_2 = arith.constant 0 : index
    %0 = vector.load %arg1[%c0, %c0_0, %c0_1, %c0_2] : memref<1x16x16x32xf32, #tpu.memory_space<vmem>>, vector<1x16x16x32xf32>
    %1 = vector.shape_cast %0 : vector<1x16x16x32xf32> to vector<256x32xf32>
    %2 = arith.truncf %1 : vector<256x32xf32> to vector<256x32xbf16>
    %c0_3 = arith.constant 0 : index
    %c0_4 = arith.constant 0 : index
    %3 = vector.load %arg2[%c0_3, %c0_4] : memref<32x96xbf16, #tpu.memory_space<vmem>>, vector<32x96xbf16>
    %cst = arith.constant dense<0.000000e+00> : vector<256x96xf32>
    %4 = tpu.matmul %2, %3, %cst {dimension_numbers = #tpu.dot_dimension_numbers<[1], [0], [0], [1], [0, 0, 1, 1], [], []>} : vector<256x32xbf16>, vector<32x96xbf16>, vector<256x96xf32> -> vector<256x96xf32>
    %c0_5 = arith.constant 0 : index
    %c0_6 = arith.constant 0 : index
    %5 = vector.load %arg3[%c0_5, %c0_6] : memref<1x96xf32, #tpu.memory_space<vmem>>, vector<1x96xf32>
    %6 = vector.broadcast %5 : vector<1x96xf32> to vector<256x96xf32>
    %7 = arith.addf %4, %6 : vector<256x96xf32>
    %cst_7 = arith.constant 0.000000e+00 : f32
    %8 = vector.broadcast %cst_7 : f32 to vector<256x96xf32>
    %9 = arith.maximumf %7, %8 : vector<256x96xf32>
    %10 = arith.truncf %9 : vector<256x96xf32> to vector<256x96xbf16>
    %11 = vector.extract_strided_slice %10 {offsets = [0, 0], sizes = [256, 32], strides = [1, 1]} : vector<256x96xbf16> to vector<256x32xbf16>
    %12 = vector.extract_strided_slice %10 {offsets = [0, 32], sizes = [256, 32], strides = [1, 1]} : vector<256x96xbf16> to vector<256x32xbf16>
    %13 = vector.extract_strided_slice %10 {offsets = [0, 64], sizes = [256, 32], strides = [1, 1]} : vector<256x96xbf16> to vector<256x32xbf16>
    %cst_8 = arith.constant 0.000000e+00 : bf16
    %14 = vector.broadcast %cst_8 : bf16 to vector<1x1x18x32xbf16>
    %c0_9 = arith.constant 0 : index
    %c0_10 = arith.constant 0 : index
    %c0_11 = arith.constant 0 : index
    %c0_12 = arith.constant 0 : index
    %15 = vector.load %arg13[%c0_9, %c0_10, %c0_11, %c0_12] : memref<1x18x18x32xbf16, #tpu.memory_space<vmem>>, vector<1x1x18x32xbf16>
    tpu.vector_store %arg13[%c0_9, %c0_10, %c0_11, %c0_12], %14 {strides = array<i32>} : memref<1x18x18x32xbf16, #tpu.memory_space<vmem>>, vector<1x1x18x32xbf16>,
    %cst_13 = arith.constant 0.000000e+00 : bf16
    %16 = vector.broadcast %cst_13 : bf16 to vector<1x1x18x32xbf16>
    %c0_14 = arith.constant 0 : index
    %c17 = arith.constant 17 : index
    %c0_15 = arith.constant 0 : index
    %c0_16 = arith.constant 0 : index
    %17 = vector.load %arg13[%c0_14, %c17, %c0_15, %c0_16] : memref<1x18x18x32xbf16, #tpu.memory_space<vmem>>, vector<1x1x18x32xbf16>
    tpu.vector_store %arg13[%c0_14, %c17, %c0_15, %c0_16], %16 {strides = array<i32>} : memref<1x18x18x32xbf16, #tpu.memory_space<vmem>>, vector<1x1x18x32xbf16>,
    %cst_17 = arith.constant 0.000000e+00 : bf16
    %18 = vector.broadcast %cst_17 : bf16 to vector<1x18x1x32xbf16>
    %c0_18 = arith.constant 0 : index
    %c0_19 = arith.constant 0 : index
    %c0_20 = arith.constant 0 : index
    %c0_21 = arith.constant 0 : index
    %19 = vector.load %arg13[%c0_18, %c0_19, %c0_20, %c0_21] : memref<1x18x18x32xbf16, #tpu.memory_space<vmem>>, vector<1x18x1x32xbf16>
    tpu.vector_store %arg13[%c0_18, %c0_19, %c0_20, %c0_21], %18 {strides = array<i32>} : memref<1x18x18x32xbf16, #tpu.memory_space<vmem>>, vector<1x18x1x32xbf16>,
    %cst_22 = arith.constant 0.000000e+00 : bf16
    %20 = vector.broadcast %cst_22 : bf16 to vector<1x18x1x32xbf16>
    %c0_23 = arith.constant 0 : index
    %c0_24 = arith.constant 0 : index
    %c17_25 = arith.constant 17 : index
    %c0_26 = arith.constant 0 : index
    %21 = vector.load %arg13[%c0_23, %c0_24, %c17_25, %c0_26] : memref<1x18x18x32xbf16, #tpu.memory_space<vmem>>, vector<1x18x1x32xbf16>
    tpu.vector_store %arg13[%c0_23, %c0_24, %c17_25, %c0_26], %20 {strides = array<i32>} : memref<1x18x18x32xbf16, #tpu.memory_space<vmem>>, vector<1x18x1x32xbf16>,
    %22 = vector.shape_cast %11 : vector<256x32xbf16> to vector<1x16x16x32xbf16>
    %c0_27 = arith.constant 0 : index
    %c1 = arith.constant 1 : index
    %c1_28 = arith.constant 1 : index
    %c0_29 = arith.constant 0 : index
    %23 = vector.load %arg13[%c0_27, %c1, %c1_28, %c0_29] : memref<1x18x18x32xbf16, #tpu.memory_space<vmem>>, vector<1x16x16x32xbf16>
    tpu.vector_store %arg13[%c0_27, %c1, %c1_28, %c0_29], %22 {strides = array<i32>} : memref<1x18x18x32xbf16, #tpu.memory_space<vmem>>, vector<1x16x16x32xbf16>,
    %c0_30 = arith.constant 0 : index
    %c0_31 = arith.constant 0 : index
    %c0_32 = arith.constant 0 : index
    %c0_33 = arith.constant 0 : index
    %24 = vector.load %arg13[%c0_30, %c0_31, %c0_32, %c0_33] : memref<1x18x18x32xbf16, #tpu.memory_space<vmem>>, vector<1x18x16x32xbf16>
    %c0_34 = arith.constant 0 : index
    %c0_35 = arith.constant 0 : index
    %c1_36 = arith.constant 1 : index
    %c0_37 = arith.constant 0 : index
    %25 = vector.load %arg13[%c0_34, %c0_35, %c1_36, %c0_37] : memref<1x18x18x32xbf16, #tpu.memory_space<vmem>>, vector<1x18x16x32xbf16>
    %c0_38 = arith.constant 0 : index
    %c0_39 = arith.constant 0 : index
    %c2 = arith.constant 2 : index
    %c0_40 = arith.constant 0 : index
    %26 = vector.load %arg13[%c0_38, %c0_39, %c2, %c0_40] : memref<1x18x18x32xbf16, #tpu.memory_space<vmem>>, vector<1x18x16x32xbf16>
    %27 = tpu.concatenate %24, %25, %26 in 3 : vector<1x18x16x32xbf16>, vector<1x18x16x32xbf16>, vector<1x18x16x32xbf16> -> vector<1x18x16x96xbf16>
    %28 = vector.extract_strided_slice %27 {offsets = [0, 0, 0, 0], sizes = [1, 16, 16, 96], strides = [1, 1, 1, 1]} : vector<1x18x16x96xbf16> to vector<1x16x16x96xbf16>
    %29 = vector.shape_cast %28 : vector<1x16x16x96xbf16> to vector<256x96xbf16>
    %c0_41 = arith.constant 0 : index
    %c0_42 = arith.constant 0 : index
    %c0_43 = arith.constant 0 : index
    %30 = vector.load %arg4[%c0_41, %c0_42, %c0_43] : memref<3x96x32xbf16, #tpu.memory_space<vmem>>, vector<1x96x32xbf16>
    %31 = vector.shape_cast %30 : vector<1x96x32xbf16> to vector<96x32xbf16>
    %cst_44 = arith.constant dense<0.000000e+00> : vector<256x32xf32>
    %32 = tpu.matmul %29, %31, %cst_44 {dimension_numbers = #tpu.dot_dimension_numbers<[1], [0], [0], [1], [0, 0, 1, 1], [], []>} : vector<256x96xbf16>, vector<96x32xbf16>, vector<256x32xf32> -> vector<256x32xf32>
    %33 = vector.extract_strided_slice %27 {offsets = [0, 1, 0, 0], sizes = [1, 16, 16, 96], strides = [1, 1, 1, 1]} : vector<1x18x16x96xbf16> to vector<1x16x16x96xbf16>
    %34 = vector.shape_cast %33 : vector<1x16x16x96xbf16> to vector<256x96xbf16>
    %c1_45 = arith.constant 1 : index
    %c0_46 = arith.constant 0 : index
    %c0_47 = arith.constant 0 : index
    %35 = vector.load %arg4[%c1_45, %c0_46, %c0_47] : memref<3x96x32xbf16, #tpu.memory_space<vmem>>, vector<1x96x32xbf16>
    %36 = vector.shape_cast %35 : vector<1x96x32xbf16> to vector<96x32xbf16>
    %cst_48 = arith.constant dense<0.000000e+00> : vector<256x32xf32>
    %37 = tpu.matmul %34, %36, %cst_48 {dimension_numbers = #tpu.dot_dimension_numbers<[1], [0], [0], [1], [0, 0, 1, 1], [], []>} : vector<256x96xbf16>, vector<96x32xbf16>, vector<256x32xf32> -> vector<256x32xf32>
    %38 = arith.addf %32, %37 : vector<256x32xf32>
    %39 = vector.extract_strided_slice %27 {offsets = [0, 2, 0, 0], sizes = [1, 16, 16, 96], strides = [1, 1, 1, 1]} : vector<1x18x16x96xbf16> to vector<1x16x16x96xbf16>
    %40 = vector.shape_cast %39 : vector<1x16x16x96xbf16> to vector<256x96xbf16>
    %c2_49 = arith.constant 2 : index
    %c0_50 = arith.constant 0 : index
    %c0_51 = arith.constant 0 : index
    %41 = vector.load %arg4[%c2_49, %c0_50, %c0_51] : memref<3x96x32xbf16, #tpu.memory_space<vmem>>, vector<1x96x32xbf16>
    %42 = vector.shape_cast %41 : vector<1x96x32xbf16> to vector<96x32xbf16>
    %cst_52 = arith.constant dense<0.000000e+00> : vector<256x32xf32>
    %43 = tpu.matmul %40, %42, %cst_52 {dimension_numbers = #tpu.dot_dimension_numbers<[1], [0], [0], [1], [0, 0, 1, 1], [], []>} : vector<256x96xbf16>, vector<96x32xbf16>, vector<256x32xf32> -> vector<256x32xf32>
    %44 = arith.addf %38, %43 : vector<256x32xf32>
    %c0_53 = arith.constant 0 : index
    %c0_54 = arith.constant 0 : index
    %45 = vector.load %arg5[%c0_53, %c0_54] : memref<1x32xf32, #tpu.memory_space<vmem>>, vector<1x32xf32>
    %46 = vector.broadcast %45 : vector<1x32xf32> to vector<256x32xf32>
    %47 = arith.addf %44, %46 : vector<256x32xf32>
    %cst_55 = arith.constant 0.000000e+00 : f32
    %48 = vector.broadcast %cst_55 : f32 to vector<256x32xf32>
    %49 = arith.maximumf %47, %48 : vector<256x32xf32>
    %cst_56 = arith.constant 0.000000e+00 : bf16
    %50 = vector.broadcast %cst_56 : bf16 to vector<1x2x20x32xbf16>
    %c0_57 = arith.constant 0 : index
    %c0_58 = arith.constant 0 : index
    %c0_59 = arith.constant 0 : index
    %c0_60 = arith.constant 0 : index
    %51 = vector.load %arg14[%c0_57, %c0_58, %c0_59, %c0_60] : memref<1x20x20x32xbf16, #tpu.memory_space<vmem>>, vector<1x2x20x32xbf16>
    tpu.vector_store %arg14[%c0_57, %c0_58, %c0_59, %c0_60], %50 {strides = array<i32>} : memref<1x20x20x32xbf16, #tpu.memory_space<vmem>>, vector<1x2x20x32xbf16>,
    %cst_61 = arith.constant 0.000000e+00 : bf16
    %52 = vector.broadcast %cst_61 : bf16 to vector<1x2x20x32xbf16>
    %c0_62 = arith.constant 0 : index
    %c18 = arith.constant 18 : index
    %c0_63 = arith.constant 0 : index
    %c0_64 = arith.constant 0 : index
    %53 = vector.load %arg14[%c0_62, %c18, %c0_63, %c0_64] : memref<1x20x20x32xbf16, #tpu.memory_space<vmem>>, vector<1x2x20x32xbf16>
    tpu.vector_store %arg14[%c0_62, %c18, %c0_63, %c0_64], %52 {strides = array<i32>} : memref<1x20x20x32xbf16, #tpu.memory_space<vmem>>, vector<1x2x20x32xbf16>,
    %cst_65 = arith.constant 0.000000e+00 : bf16
    %54 = vector.broadcast %cst_65 : bf16 to vector<1x20x2x32xbf16>
    %c0_66 = arith.constant 0 : index
    %c0_67 = arith.constant 0 : index
    %c0_68 = arith.constant 0 : index
    %c0_69 = arith.constant 0 : index
    %55 = vector.load %arg14[%c0_66, %c0_67, %c0_68, %c0_69] : memref<1x20x20x32xbf16, #tpu.memory_space<vmem>>, vector<1x20x2x32xbf16>
    tpu.vector_store %arg14[%c0_66, %c0_67, %c0_68, %c0_69], %54 {strides = array<i32>} : memref<1x20x20x32xbf16, #tpu.memory_space<vmem>>, vector<1x20x2x32xbf16>,
    %cst_70 = arith.constant 0.000000e+00 : bf16
    %56 = vector.broadcast %cst_70 : bf16 to vector<1x20x2x32xbf16>
    %c0_71 = arith.constant 0 : index
    %c0_72 = arith.constant 0 : index
    %c18_73 = arith.constant 18 : index
    %c0_74 = arith.constant 0 : index
    %57 = vector.load %arg14[%c0_71, %c0_72, %c18_73, %c0_74] : memref<1x20x20x32xbf16, #tpu.memory_space<vmem>>, vector<1x20x2x32xbf16>
    tpu.vector_store %arg14[%c0_71, %c0_72, %c18_73, %c0_74], %56 {strides = array<i32>} : memref<1x20x20x32xbf16, #tpu.memory_space<vmem>>, vector<1x20x2x32xbf16>,
    %58 = vector.shape_cast %12 : vector<256x32xbf16> to vector<1x16x16x32xbf16>
    %c0_75 = arith.constant 0 : index
    %c2_76 = arith.constant 2 : index
    %c2_77 = arith.constant 2 : index
    %c0_78 = arith.constant 0 : index
    %59 = vector.load %arg14[%c0_75, %c2_76, %c2_77, %c0_78] : memref<1x20x20x32xbf16, #tpu.memory_space<vmem>>, vector<1x16x16x32xbf16>
    tpu.vector_store %arg14[%c0_75, %c2_76, %c2_77, %c0_78], %58 {strides = array<i32>} : memref<1x20x20x32xbf16, #tpu.memory_space<vmem>>, vector<1x16x16x32xbf16>,
    %c0_79 = arith.constant 0 : index
    %c0_80 = arith.constant 0 : index
    %c0_81 = arith.constant 0 : index
    %c0_82 = arith.constant 0 : index
    %60 = vector.load %arg14[%c0_79, %c0_80, %c0_81, %c0_82] : memref<1x20x20x32xbf16, #tpu.memory_space<vmem>>, vector<1x20x16x32xbf16>
    %c0_83 = arith.constant 0 : index
    %c0_84 = arith.constant 0 : index
    %c1_85 = arith.constant 1 : index
    %c0_86 = arith.constant 0 : index
    %61 = vector.load %arg14[%c0_83, %c0_84, %c1_85, %c0_86] : memref<1x20x20x32xbf16, #tpu.memory_space<vmem>>, vector<1x20x16x32xbf16>
    %c0_87 = arith.constant 0 : index
    %c0_88 = arith.constant 0 : index
    %c2_89 = arith.constant 2 : index
    %c0_90 = arith.constant 0 : index
    %62 = vector.load %arg14[%c0_87, %c0_88, %c2_89, %c0_90] : memref<1x20x20x32xbf16, #tpu.memory_space<vmem>>, vector<1x20x16x32xbf16>
    %c0_91 = arith.constant 0 : index
    %c0_92 = arith.constant 0 : index
    %c3 = arith.constant 3 : index
    %c0_93 = arith.constant 0 : index
    %63 = vector.load %arg14[%c0_91, %c0_92, %c3, %c0_93] : memref<1x20x20x32xbf16, #tpu.memory_space<vmem>>, vector<1x20x16x32xbf16>
    %c0_94 = arith.constant 0 : index
    %c0_95 = arith.constant 0 : index
    %c4 = arith.constant 4 : index
    %c0_96 = arith.constant 0 : index
    %64 = vector.load %arg14[%c0_94, %c0_95, %c4, %c0_96] : memref<1x20x20x32xbf16, #tpu.memory_space<vmem>>, vector<1x20x16x32xbf16>
    %65 = tpu.concatenate %60, %61, %62, %63, %64 in 3 : vector<1x20x16x32xbf16>, vector<1x20x16x32xbf16>, vector<1x20x16x32xbf16>, vector<1x20x16x32xbf16>, vector<1x20x16x32xbf16> -> vector<1x20x16x160xbf16>
    %66 = vector.extract_strided_slice %65 {offsets = [0, 0, 0, 0], sizes = [1, 16, 16, 160], strides = [1, 1, 1, 1]} : vector<1x20x16x160xbf16> to vector<1x16x16x160xbf16>
    %67 = vector.shape_cast %66 : vector<1x16x16x160xbf16> to vector<256x160xbf16>
    %c0_97 = arith.constant 0 : index
    %c0_98 = arith.constant 0 : index
    %c0_99 = arith.constant 0 : index
    %68 = vector.load %arg6[%c0_97, %c0_98, %c0_99] : memref<5x160x32xbf16, #tpu.memory_space<vmem>>, vector<1x160x32xbf16>
    %69 = vector.shape_cast %68 : vector<1x160x32xbf16> to vector<160x32xbf16>
    %cst_100 = arith.constant dense<0.000000e+00> : vector<256x32xf32>
    %70 = tpu.matmul %67, %69, %cst_100 {dimension_numbers = #tpu.dot_dimension_numbers<[1], [0], [0], [1], [0, 0, 1, 1], [], []>} : vector<256x160xbf16>, vector<160x32xbf16>, vector<256x32xf32> -> vector<256x32xf32>
    %71 = vector.extract_strided_slice %65 {offsets = [0, 1, 0, 0], sizes = [1, 16, 16, 160], strides = [1, 1, 1, 1]} : vector<1x20x16x160xbf16> to vector<1x16x16x160xbf16>
    %72 = vector.shape_cast %71 : vector<1x16x16x160xbf16> to vector<256x160xbf16>
    %c1_101 = arith.constant 1 : index
    %c0_102 = arith.constant 0 : index
    %c0_103 = arith.constant 0 : index
    %73 = vector.load %arg6[%c1_101, %c0_102, %c0_103] : memref<5x160x32xbf16, #tpu.memory_space<vmem>>, vector<1x160x32xbf16>
    %74 = vector.shape_cast %73 : vector<1x160x32xbf16> to vector<160x32xbf16>
    %cst_104 = arith.constant dense<0.000000e+00> : vector<256x32xf32>
    %75 = tpu.matmul %72, %74, %cst_104 {dimension_numbers = #tpu.dot_dimension_numbers<[1], [0], [0], [1], [0, 0, 1, 1], [], []>} : vector<256x160xbf16>, vector<160x32xbf16>, vector<256x32xf32> -> vector<256x32xf32>
    %76 = arith.addf %70, %75 : vector<256x32xf32>
    %77 = vector.extract_strided_slice %65 {offsets = [0, 2, 0, 0], sizes = [1, 16, 16, 160], strides = [1, 1, 1, 1]} : vector<1x20x16x160xbf16> to vector<1x16x16x160xbf16>
    %78 = vector.shape_cast %77 : vector<1x16x16x160xbf16> to vector<256x160xbf16>
    %c2_105 = arith.constant 2 : index
    %c0_106 = arith.constant 0 : index
    %c0_107 = arith.constant 0 : index
    %79 = vector.load %arg6[%c2_105, %c0_106, %c0_107] : memref<5x160x32xbf16, #tpu.memory_space<vmem>>, vector<1x160x32xbf16>
    %80 = vector.shape_cast %79 : vector<1x160x32xbf16> to vector<160x32xbf16>
    %cst_108 = arith.constant dense<0.000000e+00> : vector<256x32xf32>
    %81 = tpu.matmul %78, %80, %cst_108 {dimension_numbers = #tpu.dot_dimension_numbers<[1], [0], [0], [1], [0, 0, 1, 1], [], []>} : vector<256x160xbf16>, vector<160x32xbf16>, vector<256x32xf32> -> vector<256x32xf32>
    %82 = arith.addf %76, %81 : vector<256x32xf32>
    %83 = vector.extract_strided_slice %65 {offsets = [0, 3, 0, 0], sizes = [1, 16, 16, 160], strides = [1, 1, 1, 1]} : vector<1x20x16x160xbf16> to vector<1x16x16x160xbf16>
    %84 = vector.shape_cast %83 : vector<1x16x16x160xbf16> to vector<256x160xbf16>
    %c3_109 = arith.constant 3 : index
    %c0_110 = arith.constant 0 : index
    %c0_111 = arith.constant 0 : index
    %85 = vector.load %arg6[%c3_109, %c0_110, %c0_111] : memref<5x160x32xbf16, #tpu.memory_space<vmem>>, vector<1x160x32xbf16>
    %86 = vector.shape_cast %85 : vector<1x160x32xbf16> to vector<160x32xbf16>
    %cst_112 = arith.constant dense<0.000000e+00> : vector<256x32xf32>
    %87 = tpu.matmul %84, %86, %cst_112 {dimension_numbers = #tpu.dot_dimension_numbers<[1], [0], [0], [1], [0, 0, 1, 1], [], []>} : vector<256x160xbf16>, vector<160x32xbf16>, vector<256x32xf32> -> vector<256x32xf32>
    %88 = arith.addf %82, %87 : vector<256x32xf32>
    %89 = vector.extract_strided_slice %65 {offsets = [0, 4, 0, 0], sizes = [1, 16, 16, 160], strides = [1, 1, 1, 1]} : vector<1x20x16x160xbf16> to vector<1x16x16x160xbf16>
    %90 = vector.shape_cast %89 : vector<1x16x16x160xbf16> to vector<256x160xbf16>
    %c4_113 = arith.constant 4 : index
    %c0_114 = arith.constant 0 : index
    %c0_115 = arith.constant 0 : index
    %91 = vector.load %arg6[%c4_113, %c0_114, %c0_115] : memref<5x160x32xbf16, #tpu.memory_space<vmem>>, vector<1x160x32xbf16>
    %92 = vector.shape_cast %91 : vector<1x160x32xbf16> to vector<160x32xbf16>
    %cst_116 = arith.constant dense<0.000000e+00> : vector<256x32xf32>
    %93 = tpu.matmul %90, %92, %cst_116 {dimension_numbers = #tpu.dot_dimension_numbers<[1], [0], [0], [1], [0, 0, 1, 1], [], []>} : vector<256x160xbf16>, vector<160x32xbf16>, vector<256x32xf32> -> vector<256x32xf32>
    %94 = arith.addf %88, %93 : vector<256x32xf32>
    %c0_117 = arith.constant 0 : index
    %c0_118 = arith.constant 0 : index
    %95 = vector.load %arg7[%c0_117, %c0_118] : memref<1x32xf32, #tpu.memory_space<vmem>>, vector<1x32xf32>
    %96 = vector.broadcast %95 : vector<1x32xf32> to vector<256x32xf32>
    %97 = arith.addf %94, %96 : vector<256x32xf32>
    %cst_119 = arith.constant 0.000000e+00 : f32
    %98 = vector.broadcast %cst_119 : f32 to vector<256x32xf32>
    %99 = arith.maximumf %97, %98 : vector<256x32xf32>
    %c0_120 = arith.constant 0 : index
    %c0_121 = arith.constant 0 : index
    %100 = vector.load %arg8[%c0_120, %c0_121] : memref<32x32xbf16, #tpu.memory_space<vmem>>, vector<32x32xbf16>
    %cst_122 = arith.constant dense<0.000000e+00> : vector<256x32xf32>
    %101 = tpu.matmul %13, %100, %cst_122 {dimension_numbers = #tpu.dot_dimension_numbers<[1], [0], [0], [1], [0, 0, 1, 1], [], []>} : vector<256x32xbf16>, vector<32x32xbf16>, vector<256x32xf32> -> vector<256x32xf32>
    %102 = arith.truncf %49 : vector<256x32xf32> to vector<256x32xbf16>
    %c0_123 = arith.constant 0 : index
    %c0_124 = arith.constant 0 : index
    %103 = vector.load %arg9[%c0_123, %c0_124] : memref<32x32xbf16, #tpu.memory_space<vmem>>, vector<32x32xbf16>
    %cst_125 = arith.constant dense<0.000000e+00> : vector<256x32xf32>
    %104 = tpu.matmul %102, %103, %cst_125 {dimension_numbers = #tpu.dot_dimension_numbers<[1], [0], [0], [1], [0, 0, 1, 1], [], []>} : vector<256x32xbf16>, vector<32x32xbf16>, vector<256x32xf32> -> vector<256x32xf32>
    %105 = arith.addf %101, %104 : vector<256x32xf32>
    %106 = arith.truncf %99 : vector<256x32xf32> to vector<256x32xbf16>
    %c0_126 = arith.constant 0 : index
    %c0_127 = arith.constant 0 : index
    %107 = vector.load %arg10[%c0_126, %c0_127] : memref<32x32xbf16, #tpu.memory_space<vmem>>, vector<32x32xbf16>
    %cst_128 = arith.constant dense<0.000000e+00> : vector<256x32xf32>
    %108 = tpu.matmul %106, %107, %cst_128 {dimension_numbers = #tpu.dot_dimension_numbers<[1], [0], [0], [1], [0, 0, 1, 1], [], []>} : vector<256x32xbf16>, vector<32x32xbf16>, vector<256x32xf32> -> vector<256x32xf32>
    %109 = arith.addf %105, %108 : vector<256x32xf32>
    %c0_129 = arith.constant 0 : index
    %c0_130 = arith.constant 0 : index
    %110 = vector.load %arg11[%c0_129, %c0_130] : memref<1x32xf32, #tpu.memory_space<vmem>>, vector<1x32xf32>
    %111 = vector.broadcast %110 : vector<1x32xf32> to vector<256x32xf32>
    %112 = arith.addf %109, %111 : vector<256x32xf32>
    %cst_131 = arith.constant 0.000000e+00 : f32
    %113 = vector.broadcast %cst_131 : f32 to vector<256x32xf32>
    %114 = arith.maximumf %112, %113 : vector<256x32xf32>
    %115 = arith.addf %1, %114 : vector<256x32xf32>
    %116 = vector.shape_cast %115 : vector<256x32xf32> to vector<1x16x16x32xf32>
    %c0_132 = arith.constant 0 : index
    %c0_133 = arith.constant 0 : index
    %c0_134 = arith.constant 0 : index
    %c0_135 = arith.constant 0 : index
    %117 = vector.load %arg12[%c0_132, %c0_133, %c0_134, %c0_135] : memref<1x16x16x32xf32, #tpu.memory_space<vmem>>, vector<1x16x16x32xf32>
    tpu.vector_store %arg12[%c0_132, %c0_133, %c0_134, %c0_135], %116 {strides = array<i32>} : memref<1x16x16x32xf32, #tpu.memory_space<vmem>>, vector<1x16x16x32xf32>,
    return
  }
  func.func @transform_0(%arg0: i32) -> (i32, i32, i32, i32) {
    %c0_i32 = arith.constant 0 : i32
    %c0_i32_0 = arith.constant 0 : i32
    %c0_i32_1 = arith.constant 0 : i32
    %c0_i32_2 = arith.constant 0 : i32
    return %arg0, %c0_i32, %c0_i32_0, %c0_i32_1 : i32, i32, i32, i32
  }
  func.func @transform_1(%arg0: i32) -> (i32, i32) {
    %c0_i32 = arith.constant 0 : i32
    %c0_i32_0 = arith.constant 0 : i32
    %c0_i32_1 = arith.constant 0 : i32
    return %c0_i32, %c0_i32_0 : i32, i32
  }
  func.func @transform_2(%arg0: i32) -> (i32, i32) {
    %c0_i32 = arith.constant 0 : i32
    %c0_i32_0 = arith.constant 0 : i32
    %c0_i32_1 = arith.constant 0 : i32
    return %c0_i32, %c0_i32_0 : i32, i32
  }
  func.func @transform_3(%arg0: i32) -> (i32, i32, i32) {
    %c0_i32 = arith.constant 0 : i32
    %c0_i32_0 = arith.constant 0 : i32
    %c0_i32_1 = arith.constant 0 : i32
    %c0_i32_2 = arith.constant 0 : i32
    return %c0_i32, %c0_i32_0, %c0_i32_1 : i32, i32, i32
  }
  func.func @transform_4(%arg0: i32) -> (i32, i32) {
    %c0_i32 = arith.constant 0 : i32
    %c0_i32_0 = arith.constant 0 : i32
    %c0_i32_1 = arith.constant 0 : i32
    return %c0_i32, %c0_i32_0 : i32, i32
  }
  func.func @transform_5(%arg0: i32) -> (i32, i32, i32) {
    %c0_i32 = arith.constant 0 : i32
    %c0_i32_0 = arith.constant 0 : i32
    %c0_i32_1 = arith.constant 0 : i32
    %c0_i32_2 = arith.constant 0 : i32
    return %c0_i32, %c0_i32_0, %c0_i32_1 : i32, i32, i32
  }
  func.func @transform_6(%arg0: i32) -> (i32, i32) {
    %c0_i32 = arith.constant 0 : i32
    %c0_i32_0 = arith.constant 0 : i32
    %c0_i32_1 = arith.constant 0 : i32
    return %c0_i32, %c0_i32_0 : i32, i32
  }
  func.func @transform_7(%arg0: i32) -> (i32, i32) {
    %c0_i32 = arith.constant 0 : i32
    %c0_i32_0 = arith.constant 0 : i32
    %c0_i32_1 = arith.constant 0 : i32
    return %c0_i32, %c0_i32_0 : i32, i32
  }
  func.func @transform_8(%arg0: i32) -> (i32, i32) {
    %c0_i32 = arith.constant 0 : i32
    %c0_i32_0 = arith.constant 0 : i32
    %c0_i32_1 = arith.constant 0 : i32
    return %c0_i32, %c0_i32_0 : i32, i32
  }
  func.func @transform_9(%arg0: i32) -> (i32, i32) {
    %c0_i32 = arith.constant 0 : i32
    %c0_i32_0 = arith.constant 0 : i32
    %c0_i32_1 = arith.constant 0 : i32
    return %c0_i32, %c0_i32_0 : i32, i32
  }
  func.func @transform_10(%arg0: i32) -> (i32, i32) {
    %c0_i32 = arith.constant 0 : i32
    %c0_i32_0 = arith.constant 0 : i32
    %c0_i32_1 = arith.constant 0 : i32
    return %c0_i32, %c0_i32_0 : i32, i32
  }
  func.func @transform_11(%arg0: i32) -> (i32, i32, i32, i32) {
    %c0_i32 = arith.constant 0 : i32
    %c0_i32_0 = arith.constant 0 : i32
    %c0_i32_1 = arith.constant 0 : i32
    %c0_i32_2 = arith.constant 0 : i32
    return %arg0, %c0_i32, %c0_i32_0, %c0_i32_1 : i32, i32, i32, i32
  }
}

</mosaic_0001>

<bundles_post_ra>
// kernel: tpu_custom_call.1
= control target key start
LH: loop header
LB: loop body
LE: loop exit
PB: predicated region body
PF: predicated region fallthrough
CT: control target
= control target key end

     0   :  { %16 = vsyncpa [#allocation5], 0  ;;  %s12075_s0 = inlined_call_operand.vmem [shape: f32[2,16,16,32], index: 0, kind: input, shape index: {}]   ;;  %s12076_s1 = inlined_call_operand.vmem [shape: bf16[32,96], index: 1, kind: input, shape index: {}]   ;;  %s12077_s2 = inlined_call_operand.vmem [shape: f32[1,96], index: 2, kind: input, shape index: {}]   ;;  %s12078_s3 = inlined_call_operand.vmem [shape: bf16[3,96,32], index: 3, kind: input, shape index: {}]   ;;  %s12079_s4 = inlined_call_operand.vmem [shape: f32[1,32], index: 4, kind: input, shape index: {}]   ;;  %s12080_s5 = inlined_call_operand.vmem [shape: bf16[5,160,32], index: 5, kind: input, shape index: {}]   ;;  %s12081_s6 = inlined_call_operand.vmem [shape: f32[1,32], index: 6, kind: input, shape index: {}]   ;;  %s12082_s7 = inlined_call_operand.vmem [shape: bf16[32,32], index: 7, kind: input, shape index: {}]   ;;  %s12083_s8 = inlined_call_operand.vmem [shape: bf16[32,32], index: 8, kind: input, shape index: {}]   ;;  %s12084_s9 = inlined_call_operand.vmem [shape: bf16[32,32], index: 9, kind: input, shape index: {}]   ;;  %s12085_s10 = inlined_call_operand.vmem [shape: f32[1,32], index: 10, kind: input, shape index: {}]   ;;  %s12086_s11 = inlined_call_operand.hbm [shape: f32[2,16,16,32], index: 11, kind: output, shape index: {}]  }
   0x1   :  { %18 = vsyncpa [#allocation5 + $0x1], 0  ;;  %s8590_s17 = smov 0   ;;  %s8592_s18 = smov 0  }
   0x2   :  { %s8594_s19 = smov 0   ;;  %s8596_s20 = smov 0  }
   0x3 LB: > { %s8611_s21 = sadd.s32 4294967295, %s8521_s20   ;;  %s6982_s22 = sadd.s32 4294967294, %s8521_s20   ;;  %s8521_s20 = sphi %s8596_s20, %s12362_s20   ;;  %s8517_s19 = sphi %s8594_s19, %s12361_s19   ;;  %s8513_s18 = sphi %s8592_s18, %s12360_s18   ;;  %s8509_s17 = sphi %s8590_s17, %s12359_s17  }
   0x4   : > { %s8615_s23 = sadd.s32 1, %s8521_s20   ;;  %s267_s24 = sadd.s32 1, %s8517_s19 }
   0x5   : > { %s264_s25 = ssub.s32 %s8521_s20, %s8615_s23  ;;  %p277_p0 = scmp.ne.s32.totalorder %s8517_s19, %s8513_s18 }
   0x6   : > { %p265_p1 = scmp.eq.s32.totalorder %s264_s25, 0  ;;  %p278_p2 = scmp.eq.s32.totalorder %s8611_s21, 1 }
   0x7   : > { %p283_p3 = scmp.ne.s32.totalorder %s8513_s18, %s8509_s17  ;;  %p284_p4 = scmp.eq.s32.totalorder %s6982_s22, 1 }
   0x8   : > { %s8626_s26 = scalar_select %p265_p1, %s8517_s19, %s267_s24  }
   0x9   : > { %p8628_p5 = por %p278_p2, %p277_p0  ;;  %p8632_p6 = por %p284_p4, %p283_p3 }
   0xa   : > { %p6985_p7 = scmp.ge.s32.totalorder %s8521_s20, 1  ;;  %p340_p8 = scmp.lt.s32.totalorder %s8521_s20, 3 }
   0xc   : > { %p341_p9 = pnand %p6985_p7, %p340_p8 }
   0xe   : > { %344 = sbr.rel (%p341_p9) target bundleno = 1500 (0x5dc), region = 64 }
  0x15   : > { %v8197_v0 = vld [vmem:[%s12076_s1] sm:$0xff]   ;;  %p380_p10 = scmp.lt.s32.totalorder %s8611_s21, 1  ;;  %v8198_v1 = vld [vmem:[%s12076_s1 + $0x8] sm:$0xff]   ;;  %vm457_vm0 = vcmask 261120   ;;  %vm718_vm1 = vcmask 253952   ;;  %vm715_vm6 = vcmask 257024  }
  0x16   : > { %7728 = vmatprep.subr.bf16.mxu0 %v8197_v0  ;;  %vm725_vm2 = vsmask.f32 256  ;;  %v733_v51 = vld [vmem:[#allocation2 + $0x18] sm:$0x1]  ;;  %vm781_vm4 = vsmask.f32 7938 }
  0x17   : > { %s381_s14 = scalar_select %p380_p10, %s8611_s21, 1  ;;  %7729 = vmatpush3.bf16.msra.mxu0 %v8197_v0  ;;  %vm8701_vm3 = vmand %vm718_vm1, %vm725_vm2  ;;  %v730_v54 = vld [vmem:[#allocation2 + $0xc] sm:$0x1]  ;;  %v789_v56 = vld [vmem:[#allocation2 + $0x20] sm:$0x1]  ;;  %vm1877_vm10 = vcmask 1046528  }
  0x18   : > { %7730 = vmatprep.subr.bf16.mxu0 %v8198_v1  ;;  %v734_v52 = vsel %vm8701_vm3, 0, %v733_v51  ;;  %vm8709_vm5 = vmand %vm718_vm1, %vm781_vm4  ;;  %v731_v55 = vsel %vm8701_vm3, 0, %v730_v54  ;;  %v786_v58 = vld [vmem:[#allocation2 + $0x14] sm:$0x1]  ;;  %v739_v60 = vld [vmem:[#allocation2 + $0x30] sm:$0x1] }
  0x19   : > { %s7556_s15 = sshll.u32 %s381_s14, 8  ;;  %735 = vst [vmem:[#allocation2 + $0x18] sm:$0x1] %v734_v52  ;;  %732 = vst [vmem:[#allocation2 + $0xc] sm:$0x1] %v731_v55  ;;  %v790_v57 = vsel %vm8709_vm5, 0, %v789_v56 }
  0x1a   : > { %s8649_s24 = scalar_lea.vmem %s12075_s0, %s7556_s15  ;;  %791 = vst [vmem:[#allocation2 + $0x20] sm:$0x1] %v790_v57  ;;  %v787_v59 = vsel %vm8709_vm5, 0, %v786_v58  ;;  %v740_v61 = vsel %vm8701_vm3, 0, %v739_v60  ;;  %v736_v62 = vld [vmem:[#allocation2 + $0x24] sm:$0x1]  ;;  %vm8890_vm8 = vmand %vm715_vm6, %vm781_vm4 }
  0x1b   : > { %v386_v2 = vld [vmem:[%s8649_s24] sm:$0xff]  ;;  %v387_v3 = vld [vmem:[%s8649_s24 + $0x8] sm:$0xff]  ;;  %v388_v4 = vld [vmem:[%s8649_s24 + $0x10] sm:$0xff]  ;;  %7731 = vmatpush3.bf16.msra.mxu0 %v8198_v1  ;;  %788 = vst [vmem:[#allocation2 + $0x14] sm:$0x1] %v787_v59  ;;  %v737_v63 = vsel %vm8701_vm3, 0, %v736_v62 }
  0x1c   : > { %v418_v5 = vpack.c.bf16 %v387_v3, %v386_v2  ;;  %v389_v6 = vld [vmem:[%s8649_s24 + $0x18] sm:$0xff]  ;;  %v390_v7 = vld [vmem:[%s8649_s24 + $0x20] sm:$0xff]  ;;  %v391_v8 = vld [vmem:[%s8649_s24 + $0x28] sm:$0xff]  ;;  %741 = vst [vmem:[#allocation2 + $0x30] sm:$0x1] %v740_v61  ;;  %v12087_v56 = vmov 0  }
  0x1d   : > { %v419_v9 = vpack.c.bf16 %v389_v6, %v388_v4  ;;  %v420_v10 = vpack.c.bf16 %v391_v8, %v390_v7  ;;  %v392_v11 = vld [vmem:[%s8649_s24 + $0x30] sm:$0xff]  ;;  %v393_v12 = vld [vmem:[%s8649_s24 + $0x38] sm:$0xff]  ;;  %v394_v13 = vld [vmem:[%s8649_s24 + $0x40] sm:$0xff]  ;;  %738 = vst [vmem:[#allocation2 + $0x24] sm:$0x1] %v737_v63  ;;  %4713 = vmatprep.subr.bf16.mxu0 %v12087_v56  ;;  %s8524_s30 = smov 64  }
  0x1e   : > { %7732 = vmatprep.mubr.msk.bf16.mxu0 %vm457_vm0, %v418_v5  ;;  %v395_v14 = vld [vmem:[%s8649_s24 + $0x48] sm:$0xff]  ;;  %v421_v15 = vpack.c.bf16 %v393_v12, %v392_v11  ;;  %v396_v17 = vld [vmem:[%s8649_s24 + $0x50] sm:$0xff]  ;;  %v397_v18 = vld [vmem:[%s8649_s24 + $0x58] sm:$0xff]  ;;  %716 = vst.msk [vmem:[#allocation2] sm:$0xf] %vm715_vm6, %v12087_v56  ;;  %s8525_s14 = smov 32  }
  0x1f   : > { %7733 = vmatmul.mubr.msk.bf16.vlgmr.msra.gmra.mrb[0].mxu0 %vm457_vm0, %v419_v9  ;;  %v422_v16 = vpack.c.bf16 %v395_v14, %v394_v13  ;;  %v398_v19 = vld [vmem:[%s8649_s24 + $0x60] sm:$0xff]  ;;  %v399_v20 = vld [vmem:[%s8649_s24 + $0x68] sm:$0xff]  ;;  %v423_v21 = vpack.c.bf16 %v397_v18, %v396_v17  ;;  %v400_v23 = vld [vmem:[%s8649_s24 + $0x70] sm:$0xff]  ;;  %717 = vst.msk [vmem:[#allocation2 + $0x4] sm:$0xf] %vm715_vm6, %v12087_v56  ;;  %vm2865_vm12 = vcmask 1040384  }
  0x20   : > { %7736 = vmatprep.mubr.msk.bf16.mxu0 %vm457_vm0, %v420_v10  ;;  %v424_v22 = vpack.c.bf16 %v399_v20, %v398_v19  ;;  %v401_v24 = vld [vmem:[%s8649_s24 + $0x78] sm:$0xff]  ;;  %v402_v25 = vld [vmem:[%s8649_s24 + $0x80] sm:$0xff]  ;;  %v403_v26 = vld [vmem:[%s8649_s24 + $0x88] sm:$0xff]  ;;  %719 = vst.msk [vmem:[#allocation2 + $0x8] sm:$0x1] %vm718_vm1, %v12087_v56  ;;  %vm2866_vm13 = vcmask 1044484  }
  0x21   : > { %v425_v27 = vpack.c.bf16 %v401_v24, %v400_v23  ;;  %v426_v28 = vpack.c.bf16 %v403_v26, %v402_v25  ;;  %v404_v29 = vld [vmem:[%s8649_s24 + $0x90] sm:$0xff]  ;;  %v405_v30 = vld [vmem:[%s8649_s24 + $0x98] sm:$0xff]  ;;  %v406_v31 = vld [vmem:[%s8649_s24 + $0xa0] sm:$0xff]  ;;  %721 = vst.msk [vmem:[#allocation2 + $0xcc] sm:$0xf] %vm715_vm6, %v12087_v56  ;;  %s12155_s15 = smov 96  }
  0x22   : > { %v407_v32 = vld [vmem:[%s8649_s24 + $0xa8] sm:$0xff]  ;;  %v427_v33 = vpack.c.bf16 %v405_v30, %v404_v29  ;;  %v408_v35 = vld [vmem:[%s8649_s24 + $0xb0] sm:$0xff]  ;;  %v409_v36 = vld [vmem:[%s8649_s24 + $0xb8] sm:$0xff]  ;;  %722 = vst.msk [vmem:[#allocation2 + $0xd0] sm:$0xf] %vm715_vm6, %v12087_v56  ;;  %vm2812_vm15 = vcmask 254976  }
  0x23   : > { %v428_v34 = vpack.c.bf16 %v407_v32, %v406_v31  ;;  %v410_v37 = vld [vmem:[%s8649_s24 + $0xc0] sm:$0xff]  ;;  %v411_v38 = vld [vmem:[%s8649_s24 + $0xc8] sm:$0xff]  ;;  %v429_v39 = vpack.c.bf16 %v409_v36, %v408_v35  ;;  %v412_v41 = vld [vmem:[%s8649_s24 + $0xd0] sm:$0xff]  ;;  %723 = vst.msk [vmem:[#allocation2 + $0xd4] sm:$0x1] %vm718_vm1, %v12087_v56  ;;  %vm4363_vm4 = vcmask 1045504  }
  0x24   : > { %v430_v40 = vpack.c.bf16 %v411_v38, %v410_v37  ;;  %v413_v42 = vld [vmem:[%s8649_s24 + $0xd8] sm:$0xff]  ;;  %v414_v43 = vld [vmem:[%s8649_s24 + $0xe0] sm:$0xff]  ;;  %v415_v44 = vld [vmem:[%s8649_s24 + $0xe8] sm:$0xff]  ;;  %2810 = vst.msk [vmem:[#allocation3] sm:$0xf] %vm715_vm6, %v12087_v56  ;;  %s12287_s12 = smov 96  }
  0x25   : > { %v431_v45 = vpack.c.bf16 %v413_v42, %v412_v41  ;;  %v432_v46 = vpack.c.bf16 %v415_v44, %v414_v43  ;;  %v416_v47 = vld [vmem:[%s8649_s24 + $0xf0] sm:$0xff]  ;;  %v417_v48 = vld [vmem:[%s8649_s24 + $0xf8] sm:$0xff]  ;;  %v792_v2 = vld [vmem:[#allocation2 + $0x2c] sm:$0x1]  ;;  %2811 = vst.msk [vmem:[#allocation3 + $0x4] sm:$0xf] %vm715_vm6, %v12087_v56 }
  0x26   : > { %v433_v49 = vpack.c.bf16 %v417_v48, %v416_v47  ;;  %v795_v0 = vld [vmem:[#allocation2 + $0x38] sm:$0x1]  ;;  %v793_v3 = vsel %vm8709_vm5, 0, %v792_v2  ;;  %v745_v4 = vld [vmem:[#allocation2 + $0x48] sm:$0x1]  ;;  %vm9661_vm14 = vmor %vm2865_vm12, %vm2866_vm13  ;;  %s7589_s16 = sshll.u32 %s8611_s21, 12 }
  0x27   : > { %7737 = vmatmul.mubr.msk.bf16.gmra.mrb[4].mxu0 %vm457_vm0, %v421_v15  ;;  %v796_v1 = vsel %vm8709_vm5, 0, %v795_v0  ;;  %794 = vst [vmem:[#allocation2 + $0x2c] sm:$0x1] %v793_v3  ;;  %v746_v5 = vsel %vm8701_vm3, 0, %v745_v4  ;;  %v742_v6 = vld [vmem:[#allocation2 + $0x3c] sm:$0x1] }
  0x28   : > { %7740 = vmatprep.mubr.msk.bf16.mxu0 %vm457_vm0, %v422_v16  ;;  %797 = vst [vmem:[#allocation2 + $0x38] sm:$0x1] %v796_v1  ;;  %747 = vst [vmem:[#allocation2 + $0x48] sm:$0x1] %v746_v5  ;;  %v743_v7 = vsel %vm8701_vm3, 0, %v742_v6 }
  0x29   : > { %744 = vst [vmem:[#allocation2 + $0x3c] sm:$0x1] %v743_v7  ;;  %v801_v8 = vld [vmem:[#allocation2 + $0x50] sm:$0x1]  ;;  %v798_v10 = vld [vmem:[#allocation2 + $0x44] sm:$0x1] }
  0x2a   : > { %v802_v9 = vsel %vm8709_vm5, 0, %v801_v8  ;;  %v799_v11 = vsel %vm8709_vm5, 0, %v798_v10  ;;  %v751_v12 = vld [vmem:[#allocation2 + $0x60] sm:$0x1]  ;;  %v748_v14 = vld [vmem:[#allocation2 + $0x54] sm:$0x1] }
  0x2b   : > { %803 = vst [vmem:[#allocation2 + $0x50] sm:$0x1] %v802_v9  ;;  %800 = vst [vmem:[#allocation2 + $0x44] sm:$0x1] %v799_v11  ;;  %v752_v13 = vsel %vm8701_vm3, 0, %v751_v12  ;;  %v749_v15 = vsel %vm8701_vm3, 0, %v748_v14 }
  0x2c   : > { %753 = vst [vmem:[#allocation2 + $0x60] sm:$0x1] %v752_v13  ;;  %v807_v16 = vld [vmem:[#allocation2 + $0x68] sm:$0x1]  ;;  %750 = vst [vmem:[#allocation2 + $0x54] sm:$0x1] %v749_v15 }
  0x2d   : > { %v808_v17 = vsel %vm8709_vm5, 0, %v807_v16  ;;  %v804_v18 = vld [vmem:[#allocation2 + $0x5c] sm:$0x1]  ;;  %v757_v20 = vld [vmem:[#allocation2 + $0x78] sm:$0x1] }
  0x2e   : > { %809 = vst [vmem:[#allocation2 + $0x68] sm:$0x1] %v808_v17  ;;  %v805_v19 = vsel %vm8709_vm5, 0, %v804_v18  ;;  %v813_v24 = vld [vmem:[#allocation2 + $0x80] sm:$0x1] }
  0x2f   : > { %7741 = vmatmul.mubr.msk.bf16.gmra.mrb[8].mxu0 %vm457_vm0, %v423_v21  ;;  %806 = vst [vmem:[#allocation2 + $0x5c] sm:$0x1] %v805_v19  ;;  %v758_v21 = vsel %vm8701_vm3, 0, %v757_v20  ;;  %v814_v25 = vsel %vm8709_vm5, 0, %v813_v24  ;;  %v810_v26 = vld [vmem:[#allocation2 + $0x74] sm:$0x1] }
  0x30   : > { %7744 = vmatprep.mubr.msk.bf16.mxu0 %vm457_vm0, %v424_v22  ;;  %759 = vst [vmem:[#allocation2 + $0x78] sm:$0x1] %v758_v21  ;;  %v754_v22 = vld [vmem:[#allocation2 + $0x6c] sm:$0x1]  ;;  %815 = vst [vmem:[#allocation2 + $0x80] sm:$0x1] %v814_v25 }
  0x31   : > { %v755_v23 = vsel %vm8701_vm3, 0, %v754_v22  ;;  %v760_v30 = vld [vmem:[#allocation2 + $0x84] sm:$0x1]  ;;  %v819_v32 = vld [vmem:[#allocation2 + $0x98] sm:$0x1] }
  0x32   : > { %756 = vst [vmem:[#allocation2 + $0x6c] sm:$0x1] %v755_v23  ;;  %v761_v31 = vsel %vm8701_vm3, 0, %v760_v30  ;;  %v769_v36 = vld [vmem:[#allocation2 + $0xa8] sm:$0x1] }
  0x33   : > { %762 = vst [vmem:[#allocation2 + $0x84] sm:$0x1] %v761_v31  ;;  %v770_v37 = vsel %vm8701_vm3, 0, %v769_v36  ;;  %v766_v38 = vld [vmem:[#allocation2 + $0x9c] sm:$0x1] }
  0x34   : > { %771 = vst [vmem:[#allocation2 + $0xa8] sm:$0x1] %v770_v37  ;;  %v822_v42 = vld [vmem:[#allocation2 + $0xa4] sm:$0x1]  ;;  %v775_v44 = vld [vmem:[#allocation2 + $0xc0] sm:$0x1] }
  0x35   : > { %v823_v43 = vsel %vm8709_vm5, 0, %v822_v42  ;;  %v831_v48 = vld [vmem:[#allocation2 + $0xc8] sm:$0x1]  ;;  %v828_v51 = vld [vmem:[#allocation2 + $0xbc] sm:$0x1] }
  0x36   : > { %824 = vst [vmem:[#allocation2 + $0xa4] sm:$0x1] %v823_v43  ;;  %v829_v52 = vsel %vm8709_vm5, 0, %v828_v51  ;;  %v8778_v54 = vld [vmem:[%s12077_s2] ss:$0 sm:$0xff] }
  0x37   : > { %7745 = vmatmul.mubr.msk.bf16.gmra.mrb[12].mxu0 %vm457_vm0, %v425_v27  ;;  %v811_v27 = vsel %vm8709_vm5, 0, %v810_v26  ;;  %830 = vst [vmem:[#allocation2 + $0xbc] sm:$0x1] %v829_v52  ;;  %2814 = vst.msk [vmem:[#allocation3 + $0xc] sm:$0xf] %vm715_vm6, %v12087_v56 }
  0x38   : > { %7748 = vmatprep.mubr.msk.bf16.mxu0 %vm457_vm0, %v426_v28  ;;  %812 = vst [vmem:[#allocation2 + $0x74] sm:$0x1] %v811_v27  ;;  %v763_v28 = vld [vmem:[#allocation2 + $0x90] sm:$0x1]  ;;  %2815 = vst.msk [vmem:[#allocation3 + $0x10] sm:$0xf] %vm715_vm6, %v12087_v56 }
  0x39   : > { %v764_v29 = vsel %vm8701_vm3, 0, %v763_v28  ;;  %2818 = vst.msk [vmem:[#allocation3 + $0xd8] sm:$0xf] %vm715_vm6, %v12087_v56  ;;  %2819 = vst.msk [vmem:[#allocation3 + $0xdc] sm:$0xf] %vm715_vm6, %v12087_v56 }
  0x3a   : > { %765 = vst [vmem:[#allocation2 + $0x90] sm:$0x1] %v764_v29  ;;  %2821 = vst.msk [vmem:[#allocation3 + $0xe4] sm:$0xf] %vm715_vm6, %v12087_v56  ;;  %vm917_vm7 = vsmask.f32 4368 }
  0x3b   : > { %2822 = vst.msk [vmem:[#allocation3 + $0xe8] sm:$0xf] %vm715_vm6, %v12087_v56  ;;  %v1249_v21 = vld [vmem:[#allocation2 + $0x18] sm:$0xf]  ;;  %v1242_v29 = vld [vmem:[#allocation2 + $0xc] sm:$0xf]  ;;  %vm8901_vm9 = vmor %vm725_vm2, %vm917_vm7 }
  0x3c   : > { %2826 = vst.msk [vmem:[#allocation3 + $0x18] sm:$0x1] %vm718_vm1, %v12087_v56  ;;  %2827 = vst.msk [vmem:[#allocation3 + $0x24] sm:$0x1] %vm718_vm1, %v12087_v56  ;;  %v1253_v36 = vld [vmem:[#allocation2 + $0x20] sm:$0x1] }
  0x3d   : > { %2828 = vst.msk [vmem:[#allocation3 + $0x30] sm:$0x1] %vm718_vm1, %v12087_v56  ;;  %2829 = vst.msk [vmem:[#allocation3 + $0x3c] sm:$0x1] %vm718_vm1, %v12087_v56  ;;  %v1246_v42 = vld [vmem:[#allocation2 + $0x14] sm:$0x1] }
  0x3e   : > { %2830 = vst.msk [vmem:[#allocation3 + $0x48] sm:$0x1] %vm718_vm1, %v12087_v56  ;;  %2831 = vst.msk [vmem:[#allocation3 + $0x54] sm:$0x1] %vm718_vm1, %v12087_v56  ;;  %v727_v52 = vld [vmem:[#allocation2] sm:$0x1] }
  0x3f   : > { %7749 = vmatmul.mubr.msk.bf16.gmra.mrb[16].mxu0 %vm457_vm0, %v427_v33  ;;  %v820_v33 = vsel %vm8709_vm5, 0, %v819_v32  ;;  %2832 = vst.msk [vmem:[#allocation3 + $0x60] sm:$0x1] %vm718_vm1, %v12087_v56  ;;  %2833 = vst.msk [vmem:[#allocation3 + $0x6c] sm:$0x1] %vm718_vm1, %v12087_v56  ;;  %vm2004_vm2 = vcmask 523264  }
  0x40   : > { %7752 = vmatprep.mubr.msk.bf16.mxu0 %vm457_vm0, %v428_v34  ;;  %821 = vst [vmem:[#allocation2 + $0x98] sm:$0x1] %v820_v33  ;;  %v816_v34 = vld [vmem:[#allocation2 + $0x8c] sm:$0x1]  ;;  %2834 = vst.msk [vmem:[#allocation3 + $0x78] sm:$0x1] %vm718_vm1, %v12087_v56 }
  0x41   : > { %v817_v35 = vsel %vm8709_vm5, 0, %v816_v34  ;;  %2835 = vst.msk [vmem:[#allocation3 + $0x84] sm:$0x1] %vm718_vm1, %v12087_v56  ;;  %2836 = vst.msk [vmem:[#allocation3 + $0x90] sm:$0x1] %vm718_vm1, %v12087_v56  ;;  %vm3093_vm7 = vcmask 257025  }
  0x42   : > { %818 = vst [vmem:[#allocation2 + $0x8c] sm:$0x1] %v817_v35  ;;  %2837 = vst.msk [vmem:[#allocation3 + $0x9c] sm:$0x1] %vm718_vm1, %v12087_v56  ;;  %vm1570_vm11 = vsmask.f32 7424 }
  0x43   : > { %2838 = vst.msk [vmem:[#allocation3 + $0xa8] sm:$0x1] %vm718_vm1, %v12087_v56  ;;  %2839 = vst.msk [vmem:[#allocation3 + $0xb4] sm:$0x1] %vm718_vm1, %v12087_v56 }
  0x44   : > { %2840 = vst.msk [vmem:[#allocation3 + $0xc0] sm:$0x1] %vm718_vm1, %v12087_v56  ;;  %2841 = vst.msk [vmem:[#allocation3 + $0xcc] sm:$0x1] %vm718_vm1, %v12087_v56 }
  0x45   : > { %2824 = vst.msk [vmem:[#allocation3] sm:$0x1] %vm718_vm1, %v12087_v56  ;;  %2825 = vst.msk [vmem:[#allocation3 + $0xc] sm:$0x1] %vm718_vm1, %v12087_v56 }
  0x46   : > { %2842 = vst.msk [vmem:[#allocation3 + $0xd8] sm:$0x1] %vm718_vm1, %v12087_v56  ;;  %2843 = vst.msk [vmem:[#allocation3 + $0xe4] sm:$0x1] %vm718_vm1, %v12087_v56 }
  0x47   : > { %7753 = vmatmul.mubr.msk.bf16.gmra.mrb[20].mxu0 %vm457_vm0, %v429_v39  ;;  %v767_v39 = vsel %vm8701_vm3, 0, %v766_v38 }
  0x48   : > { %7756 = vmatprep.mubr.msk.bf16.mxu0 %vm457_vm0, %v430_v40  ;;  %768 = vst [vmem:[#allocation2 + $0x9c] sm:$0x1] %v767_v39  ;;  %v825_v40 = vld [vmem:[#allocation2 + $0xb0] sm:$0x1] }
  0x49   : > { %v826_v41 = vsel %vm8709_vm5, 0, %v825_v40 }
  0x4a   : > { %827 = vst [vmem:[#allocation2 + $0xb0] sm:$0x1] %v826_v41 }
  0x4f   : > { %7757 = vmatmul.mubr.msk.bf16.gmra.mrb[24].mxu0 %vm457_vm0, %v431_v45  ;;  %v776_v45 = vsel %vm8701_vm3, 0, %v775_v44 }
  0x50   : > { %7760 = vmatprep.mubr.msk.bf16.mxu0 %vm457_vm0, %v432_v46  ;;  %777 = vst [vmem:[#allocation2 + $0xc0] sm:$0x1] %v776_v45  ;;  %v772_v46 = vld [vmem:[#allocation2 + $0xb4] sm:$0x1] }
  0x51   : > { %v773_v47 = vsel %vm8701_vm3, 0, %v772_v46 }
  0x52   : > { %774 = vst [vmem:[#allocation2 + $0xb4] sm:$0x1] %v773_v47 }
  0x57   : > { %7761 = vmatmul.mubr.msk.bf16.gmra.mrb[28].mxu0 %vm457_vm0, %v433_v49  ;;  %v832_v49 = vsel %vm8709_vm5, 0, %v831_v48 }
  0x58   : > { %833 = vst [vmem:[#allocation2 + $0xc8] sm:$0x1] %v832_v49 }
  0xf2   : > { %v7734_v55 = vpop.f32.mrb[0].mxu0 }
  0xf3   : > { %v549_v57 = vadd.f32 %v7734_v55, %v8778_v54  ;;  %v540_v58 = vpop.f32.mrb[1].mxu0 }
  0xf4   : > { %v541_v59 = vadd.f32 %v8778_v54, %v540_v58  ;;  %v7735_v60 = vpop.f32.mrb[2].mxu0 }
  0xf5   : > { %v8851_v61 = vmax.f32 %v549_v57, 0.0  ;;  %v552_v62 = vadd.f32 %v7735_v60, %v8778_v54  ;;  %v543_v63 = vpop.f32.mrb[3].mxu0 }
  0xf6   : > { %v8854_v0 = vmax.f32 %v541_v59, 0.0  ;;  %v544_v1 = vadd.f32 %v8778_v54, %v543_v63 }
  0xf7   : > { %12165 = vst [vmem:[#allocation7_spill] sm:$0xff] %v8851_v61  ;;  %v8859_v2 = vpack.c.bf16 %v8851_v61, %v8851_v61  ;;  %v8861_v3 = vmax.f32 %v552_v62, 0.0 }
  0xf8   : > { %12166 = vst [vmem:[#allocation8_spill] sm:$0xff] %v8854_v0  ;;  %v8865_v4 = vpack.c.bf16 %v8854_v0, %v8854_v0  ;;  %v8867_v5 = vmax.f32 %v544_v1, 0.0 }
  0xf9   : > { %12167 = vst [vmem:[#allocation9_spill] sm:$0xff] %v8859_v2  ;;  %12168 = vst [vmem:[#allocation10_spill] sm:$0xff] %v8861_v3  ;;  %v937_v6 = vshrl.u32 %v8859_v2, 16  ;;  %v940_v7 = vshll.u32 %v8859_v2, 16  ;;  %v8875_v9 = vpack.c.bf16 %v8861_v3, %v8861_v3  ;;  %v1326_v2 = vld [vmem:[#allocation2 + $0x9c] sm:$0xf] }
  0xfa   : > { %12169 = vst [vmem:[#allocation11_spill] sm:$0xff] %v8867_v5  ;;  %v920_v10 = vshrl.u32 %v8865_v4, 16  ;;  %v923_v11 = vshll.u32 %v8865_v4, 16  ;;  %v8883_v13 = vpack.c.bf16 %v8867_v5, %v8867_v5  ;;  %v7738_v14 = vpop.f32.mrb[4].mxu0 }
  0xfb   : > { %12170 = vst [vmem:[#allocation12_spill] sm:$0xff] %v8875_v9  ;;  %v939_v15 = vrot.slane %v937_v6, 7  ;;  %v945_v16 = vshrl.u32 %v8875_v9, 16  ;;  %v948_v17 = vshll.u32 %v8875_v9, 16  ;;  %v565_v18 = vadd.f32 %v7738_v14, %v8778_v54  ;;  %v556_v19 = vpop.f32.mrb[5].mxu0 }
  0xfc   : > { %v922_v22 = vrot.slane %v920_v10, 7  ;;  %v928_v23 = vshrl.u32 %v8883_v13, 16  ;;  %v931_v24 = vshll.u32 %v8883_v13, 16  ;;  %v557_v25 = vadd.f32 %v8778_v54, %v556_v19  ;;  %v7739_v26 = vpop.f32.mrb[6].mxu0  ;;  %v1263_v10 = vld [vmem:[#allocation2 + $0x30] sm:$0xf] }
  0xfd   : > { %v942_v27 = vor.u32 %v940_v7, %v939_v15  ;;  %v943_v28 = vrot.slane %v939_v15, 4  ;;  %v947_v30 = vrot.slane %v945_v16, 7  ;;  %v8897_v31 = vmax.f32 %v565_v18, 0.0  ;;  %v559_v32 = vpop.f32.mrb[7].mxu0  ;;  %v1256_v19 = vld [vmem:[#allocation2 + $0x24] sm:$0xf] }
  0xfe   : > { %v925_v33 = vor.u32 %v923_v11, %v922_v22  ;;  %v926_v34 = vrot.slane %v922_v22, 4  ;;  %v930_v37 = vrot.slane %v928_v23, 7  ;;  %v8905_v38 = vmax.f32 %v557_v25, 0.0 }
  0xff   : > { %12173 = vst [vmem:[#allocation13_spill] sm:$0xff] %v8897_v31  ;;  %v1250_v39 = vsel %vm8890_vm8, %v942_v27, %v1249_v21  ;;  %v950_v40 = vor.u32 %v948_v17, %v947_v30  ;;  %v952_v41 = vrot.slane %v947_v30, 4  ;;  %v8911_v43 = vpack.c.bf16 %v8897_v31, %v8897_v31 }
 0x100   : > { %12176 = vst [vmem:[#allocation14_spill] sm:$0xff] %v8905_v38  ;;  %1251 = vst [vmem:[#allocation2 + $0x18] sm:$0xf] %v1250_v39  ;;  %v1243_v44 = vsel %vm8890_vm8, %v925_v33, %v1242_v29  ;;  %v933_v45 = vor.u32 %v931_v24, %v930_v37  ;;  %v935_v46 = vrot.slane %v930_v37, 4  ;;  %v8917_v47 = vpack.c.bf16 %v8905_v38, %v8905_v38 }
 0x101   : > { %1244 = vst [vmem:[#allocation2 + $0xc] sm:$0xf] %v1243_v44  ;;  %v951_v48 = vsel %vm8901_vm9, %v943_v28, %v950_v40  ;;  %v1254_v49 = vsel %vm8701_vm3, %v952_v41, %v1253_v36  ;;  %v971_v51 = vshrl.u32 %v8911_v43, 16  ;;  %v974_v58 = vshll.u32 %v8911_v43, 16 }
 0x102   : > { %12177 = vst [vmem:[#allocation15_spill] sm:$0xff] %v8917_v47  ;;  %1252 = vst.msk [vmem:[#allocation2 + $0x1c] sm:$0xf] %vm715_vm6, %v951_v48  ;;  %v934_v55 = vsel %vm8901_vm9, %v926_v34, %v933_v45  ;;  %v1247_v57 = vsel %vm8701_vm3, %v935_v46, %v1246_v42  ;;  %v954_v59 = vshrl.u32 %v8917_v47, 16  ;;  %v7742_v60 = vpop.f32.mrb[8].mxu0  ;;  %v957_v63 = vshll.u32 %v8917_v47, 16 }
 0x103   : > { %1255 = vst [vmem:[#allocation2 + $0x20] sm:$0x1] %v1254_v49  ;;  %1245 = vst.msk [vmem:[#allocation2 + $0x10] sm:$0xf] %vm715_vm6, %v934_v55  ;;  %v8932_v62 = vrot.slane %v971_v51, 7  ;;  %v568_v1 = vadd.f32 %v7739_v26, %v8778_v54  ;;  %v560_v6 = vadd.f32 %v8778_v54, %v559_v32  ;;  %v572_v7 = vpop.f32.mrb[9].mxu0  ;;  %v581_v14 = vadd.f32 %v7742_v60, %v8778_v54 }
 0x104   : > { %1248 = vst [vmem:[#allocation2 + $0x14] sm:$0x1] %v1247_v57  ;;  %v8937_v11 = vrot.slane %v954_v59, 7  ;;  %v573_v15 = vadd.f32 %v8778_v54, %v572_v7  ;;  %v7743_v16 = vpop.f32.mrb[10].mxu0  ;;  %v728_v17 = vsel %vm8701_vm3, 0, %v727_v52 }
 0x105   : > { %v976_v18 = vor.u32 %v974_v58, %v8932_v62  ;;  %v8944_v21 = vmax.f32 %v568_v1, 0.0  ;;  %v8946_v22 = vmax.f32 %v560_v6, 0.0  ;;  %v575_v23 = vpop.f32.mrb[11].mxu0  ;;  %729 = vst [vmem:[#allocation2] sm:$0x1] %v728_v17  ;;  %v977_v24 = vrot.slane %v8932_v62, 4 }
 0x106   : > { %v959_v25 = vor.u32 %v957_v63, %v8937_v11  ;;  %v8950_v26 = vmax.f32 %v581_v14, 0.0  ;;  %v8952_v27 = vmax.f32 %v573_v15, 0.0  ;;  %v960_v39 = vrot.slane %v8937_v11, 4  ;;  %v1267_v45 = vld [vmem:[#allocation2 + $0x38] sm:$0x1] }
 0x107   : > { %12178 = vst [vmem:[#allocation16_spill] sm:$0xff] %v8944_v21  ;;  %12179 = vst [vmem:[#allocation17_spill] sm:$0xff] %v8946_v22  ;;  %v1264_v28 = vsel %vm8890_vm8, %v976_v18, %v1263_v10  ;;  %v8960_v30 = vpack.c.bf16 %v8944_v21, %v8944_v21  ;;  %v8968_v34 = vpack.c.bf16 %v8946_v22, %v8946_v22  ;;  %v1260_v55 = vld [vmem:[#allocation2 + $0x2c] sm:$0x1]  ;;  %v1277_v14 = vld [vmem:[#allocation2 + $0x48] sm:$0xf] }
 0x108   : > { %12180 = vst [vmem:[#allocation18_spill] sm:$0xff] %v8950_v26  ;;  %12181 = vst [vmem:[#allocation19_spill] sm:$0xff] %v8952_v27  ;;  %v1257_v33 = vsel %vm8890_vm8, %v959_v25, %v1256_v19  ;;  %v8972_v36 = vpack.c.bf16 %v8950_v26, %v8950_v26  ;;  %v8976_v37 = vpack.c.bf16 %v8952_v27, %v8952_v27 }
 0x109   : > { %1265 = vst [vmem:[#allocation2 + $0x30] sm:$0xf] %v1264_v28  ;;  %12182 = vst [vmem:[#allocation20_spill] sm:$0xff] %v8968_v34  ;;  %v979_v40 = vshrl.u32 %v8960_v30, 16  ;;  %v584_v41 = vadd.f32 %v7743_v16, %v8778_v54  ;;  %v576_v42 = vadd.f32 %v8778_v54, %v575_v23  ;;  %v982_v44 = vshll.u32 %v8960_v30, 16 }
 0x10a   : > { %1258 = vst [vmem:[#allocation2 + $0x24] sm:$0xf] %v1257_v33  ;;  %v962_v46 = vshrl.u32 %v8968_v34, 16  ;;  %v965_v48 = vshll.u32 %v8968_v34, 16  ;;  %v1005_v49 = vshrl.u32 %v8972_v36, 16  ;;  %v7746_v51 = vpop.f32.mrb[12].mxu0 }
 0x10b   : > { %v981_v52 = vrot.slane %v979_v40, 7  ;;  %v1008_v57 = vshll.u32 %v8972_v36, 16  ;;  %v988_v58 = vshrl.u32 %v8976_v37, 16  ;;  %v991_v59 = vshll.u32 %v8976_v37, 16  ;;  %v588_v60 = vpop.f32.mrb[13].mxu0 }
 0x10c   : > { %v964_v62 = vrot.slane %v962_v46, 7  ;;  %v8989_v63 = vrot.slane %v1005_v49, 7  ;;  %v8991_v1 = vmax.f32 %v584_v41, 0.0  ;;  %v8993_v6 = vmax.f32 %v576_v42, 0.0  ;;  %v7747_v7 = vpop.f32.mrb[14].mxu0 }
 0x10d   : > { %v984_v10 = vor.u32 %v982_v44, %v981_v52  ;;  %v986_v11 = vrot.slane %v981_v52, 4  ;;  %v8995_v15 = vrot.slane %v988_v58, 7  ;;  %v597_v16 = vadd.f32 %v7746_v51, %v8778_v54  ;;  %v591_v17 = vpop.f32.mrb[15].mxu0  ;;  %v1270_v28 = vld [vmem:[#allocation2 + $0x3c] sm:$0xf] }
 0x10e   : > { %12183 = vst [vmem:[#allocation21_spill] sm:$0xff] %v8991_v1  ;;  %12184 = vst [vmem:[#allocation22_spill] sm:$0xff] %v8993_v6  ;;  %v967_v18 = vor.u32 %v965_v48, %v964_v62  ;;  %v969_v19 = vrot.slane %v964_v62, 4  ;;  %v1010_v23 = vor.u32 %v1008_v57, %v8989_v63  ;;  %v1011_v25 = vrot.slane %v8989_v63, 4 }
 0x10f   : > { %v985_v33 = vsel %vm8901_vm9, %v977_v24, %v984_v10  ;;  %v1268_v40 = vsel %vm8701_vm3, %v986_v11, %v1267_v45  ;;  %v993_v41 = vor.u32 %v991_v59, %v8995_v15  ;;  %v994_v42 = vrot.slane %v8995_v15, 4  ;;  %v1357_v59 = vld [vmem:[#allocation2 + $0x10] sm:$0xf]  ;;  %v9037_v11 = vld [vmem:[#allocation2 + $0x14] ss:$0 sps:$4 sm:$0x11]  }
 0x110   : > { %1266 = vst.msk [vmem:[#allocation2 + $0x34] sm:$0xf] %vm715_vm6, %v985_v33  ;;  %1269 = vst [vmem:[#allocation2 + $0x38] sm:$0x1] %v1268_v40  ;;  %v968_v44 = vsel %vm8901_vm9, %v960_v39, %v967_v18  ;;  %v1261_v46 = vsel %vm8701_vm3, %v969_v19, %v1260_v55  ;;  %v1278_v48 = vsel %vm8890_vm8, %v1010_v23, %v1277_v14  ;;  %v9028_v52 = vmax.f32 %v597_v16, 0.0 }
 0x111   : > { %1259 = vst.msk [vmem:[#allocation2 + $0x28] sm:$0xf] %vm715_vm6, %v968_v44  ;;  %1262 = vst [vmem:[#allocation2 + $0x2c] sm:$0x1] %v1261_v46  ;;  %v1271_v45 = vsel %vm8890_vm8, %v993_v41, %v1270_v28  ;;  %v9020_v49 = vpack.c.bf16 %v8991_v1, %v8991_v1  ;;  %v9026_v51 = vpack.c.bf16 %v8993_v6, %v8993_v6  ;;  %v1281_v41 = vld [vmem:[#allocation2 + $0x50] sm:$0x1] }
 0x112   : > { %1279 = vst [vmem:[#allocation2 + $0x48] sm:$0xf] %v1278_v48  ;;  %1272 = vst [vmem:[#allocation2 + $0x3c] sm:$0xf] %v1271_v45  ;;  %v589_v55 = vadd.f32 %v8778_v54, %v588_v60  ;;  %v600_v57 = vadd.f32 %v7747_v7, %v8778_v54  ;;  %v592_v58 = vadd.f32 %v8778_v54, %v591_v17  ;;  %v9033_v62 = vpop.f32.mrb[16].mxu0  ;;  %v1882_v39 = vrot.slane %v9037_v11, 1 }
 0x113   : > { %12185 = vst [vmem:[#allocation23_spill] sm:$0xff] %v9028_v52  ;;  %v1013_v63 = vshrl.u32 %v9020_v49, 16  ;;  %v996_v10 = vshrl.u32 %v9026_v51, 16  ;;  %v9039_v14 = vpop.f32.mrb[17].mxu0  ;;  %v1016_v15 = vshll.u32 %v9020_v49, 16  ;;  %v9044_v60 = vpack.c.bf16 %v9028_v52, %v9028_v52 }
 0x114   : > { %v9046_v7 = vmax.f32 %v589_v55, 0.0  ;;  %v9048_v16 = vmax.f32 %v600_v57, 0.0  ;;  %v1409_v17 = vld [vmem:[#allocation2 + $0xc] sm:$0xe]  ;;  %v9050_v18 = vpop.f32.mrb[18].mxu0  ;;  %v999_v28 = vshll.u32 %v9026_v51, 16 }
 0x115   : > { %v1015_v19 = vrot.slane %v1013_v63, 7  ;;  %v998_v23 = vrot.slane %v996_v10, 7  ;;  %v9053_v33 = vmax.f32 %v592_v58, 0.0  ;;  %v9055_v40 = vpop.f32.mrb[19].mxu0  ;;  %v1274_v44 = vld [vmem:[#allocation2 + $0x44] sm:$0x1]  ;;  %v7077_v55 = vcombine.low %v1409_v17, %v1357_v59 }
 0x116   : > { %12186 = vst [vmem:[#allocation24_spill] sm:$0xff] %v9046_v7  ;;  %12187 = vst [vmem:[#allocation25_spill] sm:$0xff] %v9048_v16  ;;  %v1039_v46 = vshrl.u32 %v9044_v60, 16  ;;  %v9060_v48 = vpack.c.bf16 %v9046_v7, %v9046_v7  ;;  %v1042_v29 = vshll.u32 %v9044_v60, 16  ;;  %v1591_v21 = vshll.u32 %v9037_v11, 16 }
 0x117   : > { %12188 = vst [vmem:[#allocation26_spill] sm:$0xff] %v9053_v33  ;;  %v1018_v57 = vor.u32 %v1016_v15, %v1015_v19  ;;  %v1020_v63 = vrot.slane %v1015_v19, 4  ;;  %v1001_v10 = vor.u32 %v999_v28, %v998_v23  ;;  %v1003_v24 = vrot.slane %v998_v23, 4  ;;  %v1291_v19 = vld [vmem:[#allocation2 + $0x60] sm:$0xf] }
 0x118   : > { %v1041_v58 = vrot.slane %v1039_v46, 7  ;;  %v1022_v8 = vshrl.u32 %v9060_v48, 16  ;;  %v1284_v46 = vld [vmem:[#allocation2 + $0x54] sm:$0xf]  ;;  %v608_v7 = vadd.f32 %v8778_v54, %v9055_v40 }
 0x119   : > { %v1019_v32 = vsel %vm8901_vm9, %v1011_v25, %v1018_v57  ;;  %v1282_v12 = vsel %vm8701_vm3, %v1020_v63, %v1281_v41  ;;  %v1002_v17 = vsel %vm8901_vm9, %v994_v42, %v1001_v10  ;;  %v1275_v15 = vsel %vm8701_vm3, %v1003_v24, %v1274_v44 }
 0x11a   : > { %1280 = vst.msk [vmem:[#allocation2 + $0x4c] sm:$0xf] %vm715_vm6, %v1019_v32  ;;  %1283 = vst [vmem:[#allocation2 + $0x50] sm:$0x1] %v1282_v12  ;;  %v1044_v23 = vor.u32 %v1042_v29, %v1041_v58  ;;  %v1024_v28 = vrot.slane %v1022_v8, 7  ;;  %v1025_v25 = vshll.u32 %v9060_v48, 16  ;;  %v9080_v41 = vpack.c.bf16 %v9048_v16, %v9048_v16 }
 0x11b   : > { %1273 = vst.msk [vmem:[#allocation2 + $0x40] sm:$0xf] %vm715_vm6, %v1002_v17  ;;  %1276 = vst [vmem:[#allocation2 + $0x44] sm:$0x1] %v1275_v15  ;;  %v9082_v42 = vpop.f32.mrb[20].mxu0  ;;  %v1045_v57 = vrot.slane %v1041_v58, 4  ;;  %v9088_v12 = vpack.c.bf16 %v9053_v33, %v9053_v33 }
 0x11c   : > { %v1881_v32 = vrot.slane %v7077_v55, 1  ;;  %v1356_v29 = vld [vmem:[#allocation2 + $0xc] sm:$0xf]  ;;  %v9090_v8 = vpop.f32.mrb[21].mxu0  ;;  %v1292_v44 = vsel %vm8890_vm8, %v1044_v23, %v1291_v19  ;;  %v1027_v63 = vor.u32 %v1025_v25, %v1024_v28  ;;  %v1047_v10 = vshrl.u32 %v9080_v41, 16 }
 0x11d   : > { %v9095_v17 = vcombine.low %v1356_v29, %v1357_v59  ;;  %v1359_v58 = vld [vmem:[#allocation2 + $0x1c] sm:$0xf]  ;;  %v9097_v15 = vpop.f32.mrb[22].mxu0  ;;  %1293 = vst [vmem:[#allocation2 + $0x60] sm:$0xf] %v1292_v44  ;;  %v1028_v45 = vrot.slane %v1024_v28, 4  ;;  %v613_v59 = vadd.f32 %v9033_v62, %v8778_v54  ;;  %v605_v28 = vadd.f32 %v8778_v54, %v9039_v14 }
 0x11e   : > { %v1050_v24 = vshll.u32 %v9080_v41, 16  ;;  %v1030_v55 = vshrl.u32 %v9088_v12, 16  ;;  %v1883_v56 = vsel %vm1877_vm10, %v1881_v32, %v1882_v39  ;;  %v9102_v52 = vpop.f32.mrb[23].mxu0  ;;  %v1285_v19 = vsel %vm8890_vm8, %v1027_v63, %v1284_v46  ;;  %v1410_v25 = vld [vmem:[#allocation2 + $0x18] sm:$0xe] }
 0x11f   : > { %v1049_v23 = vrot.slane %v1047_v10, 7  ;;  %1934 = vrot.lane.b32.xlu1 %v1883_v56, %s8524_s30  ;;  %1286 = vst [vmem:[#allocation2 + $0x54] sm:$0xf] %v1285_v19  ;;  %v1295_v29 = vld [vmem:[#allocation2 + $0x68] sm:$0x1]  ;;  %v1033_v39 = vshll.u32 %v9088_v12, 16  ;;  %v616_v32 = vadd.f32 %v9050_v18, %v8778_v54  ;;  %v7078_v46 = vcombine.low %v1410_v25, %v1359_v58 }
 0x120   : > { %v1032_v44 = vrot.slane %v1030_v55, 7  ;;  %v1288_v16 = vld [vmem:[#allocation2 + $0x5c] sm:$0x1]  ;;  %v9114_v56 = vmax.f32 %v613_v59, 0.0  ;;  %v9116_v26 = vmax.f32 %v605_v28, 0.0  ;;  %v1584_v3 = vshrl.u32 %v9095_v17, 16 }
 0x121   : > { %v1052_v63 = vor.u32 %v1050_v24, %v1049_v23  ;;  %v1054_v10 = vrot.slane %v1049_v23, 4  ;;  %v9118_v14 = vmax.f32 %v616_v32, 0.0  ;;  %v9120_v19 = vld [vmem:[#allocation2 + $0x20] ss:$0 sps:$4 sm:$0x11]   ;;  %v1884_v55 = vrot.slane %v7078_v46, 1 }
 0x122   : > { %12189 = vst [vmem:[#allocation27_spill] sm:$0xff] %v9114_v56  ;;  %12190 = vst [vmem:[#allocation28_spill] sm:$0xff] %v9116_v26  ;;  %v1035_v62 = vor.u32 %v1033_v39, %v1032_v44  ;;  %v1037_v1 = vrot.slane %v1032_v44, 4  ;;  %v9128_v24 = vpack.c.bf16 %v9114_v56, %v9114_v56  ;;  %v9132_v23 = vpack.c.bf16 %v9116_v26, %v9116_v26  ;;  %v9134_v59 = vpop.f32.mrb[24].mxu0  ;;  %v1358_v44 = vld [vmem:[#allocation2 + $0x18] sm:$0xf] }
 0x123   : > { %12191 = vst [vmem:[#allocation29_spill] sm:$0xff] %v9118_v14  ;;  %v1053_v31 = vsel %vm8901_vm9, %v1045_v57, %v1052_v63  ;;  %v1296_v18 = vsel %vm8701_vm3, %v1054_v10, %v1295_v29  ;;  %v9145_v29 = vpack.c.bf16 %v9118_v14, %v9118_v14  ;;  %v9147_v39 = vpop.f32.mrb[25].mxu0  ;;  %v9152_v32 = vcombine.low %v1358_v44, %v1359_v58  ;;  %v1305_v44 = vld [vmem:[#allocation2 + $0x78] sm:$0xf]  ;;  %v1298_v25 = vld [vmem:[#allocation2 + $0x6c] sm:$0xf] }
 0x124   : > { %1294 = vst.msk [vmem:[#allocation2 + $0x64] sm:$0xf] %vm715_vm6, %v1053_v31  ;;  %1297 = vst [vmem:[#allocation2 + $0x68] sm:$0x1] %v1296_v18  ;;  %v1036_v28 = vsel %vm8901_vm9, %v1028_v45, %v1035_v62  ;;  %v1289_v57 = vsel %vm8701_vm3, %v1037_v1, %v1288_v16  ;;  %v1073_v31 = vshrl.u32 %v9128_v24, 16  ;;  %v1056_v45 = vshrl.u32 %v9132_v23, 16 }
 0x125   : > { %1287 = vst.msk [vmem:[#allocation2 + $0x58] sm:$0xf] %vm715_vm6, %v1036_v28  ;;  %1290 = vst [vmem:[#allocation2 + $0x5c] sm:$0x1] %v1289_v57  ;;  %v9154_v1 = vpop.f32.mrb[26].mxu0  ;;  %v1076_v16 = vshll.u32 %v9128_v24, 16 }
 0x126   : > { %v1059_v46 = vshll.u32 %v9132_v23, 16  ;;  %v1081_v63 = vshrl.u32 %v9145_v29, 16  ;;  %v1885_v10 = vrot.slane %v9120_v19, 1  ;;  %v9160_v62 = vpop.f32.mrb[27].mxu0  ;;  %v1075_v18 = vrot.slane %v1073_v31, 7 }
 0x127   : > { %v9162_v28 = vrot.slane %v1056_v45, 7  ;;  %v1084_v57 = vshll.u32 %v9145_v29, 16  ;;  %v1586_v58 = vshll.u32 %v9095_v17, 16  ;;  %v1309_v45 = vld [vmem:[#allocation2 + $0x80] sm:$0x1]  ;;  %v9177_v40 = vmax.f32 %v608_v7, 0.0 }
 0x128   : > { %v1083_v56 = vrot.slane %v1081_v63, 7  ;;  %v1886_v14 = vsel %vm1877_vm10, %v1884_v55, %v1885_v10  ;;  %v1078_v33 = vor.u32 %v1076_v16, %v1075_v18  ;;  %v1079_v61 = vrot.slane %v1075_v18, 4 }
 0x129   : > { %v1061_v31 = vor.u32 %v1059_v46, %v9162_v28  ;;  %1936 = vrot.lane.b32.xlu1 %v1886_v14, %s8524_s30  ;;  %v1588_v38 = vrot.slane %v1586_v58, 1  ;;  %v1593_v63 = vrot.slane %v1591_v21, 1  ;;  %12192 = vst [vmem:[#allocation30_spill] sm:$0xff] %v9177_v40  ;;  %v1596_v16 = vshrl.u32 %v9152_v32, 16  ;;  %v9180_v46 = vld [vmem:[#allocation2 + $0x34] sm:$0xf] }
 0x12a   : > { %v1086_v27 = vor.u32 %v1084_v57, %v1083_v56  ;;  %v1088_v6 = vrot.slane %v1083_v56, 4  ;;  %v1306_v55 = vsel %vm8890_vm8, %v1078_v33, %v1305_v44  ;;  %v9182_v10 = vpop.f32.mrb[28].mxu0  ;;  %v8244_v56 = vld [vmem:[%s12078_s3 + $0x30] sm:$0xff]   ;;  %v1598_v14 = vshll.u32 %v9152_v32, 16 }
 0x12b   : > { %v1299_v11 = vsel %vm8890_vm8, %v1061_v31, %v1298_v25  ;;  %1307 = vst [vmem:[#allocation2 + $0x78] sm:$0xf] %v1306_v55  ;;  %v1589_v7 = vor.u32 %v1588_v38, %v1584_v3  ;;  %v1362_v25 = vld [vmem:[#allocation2 + $0x30] sm:$0xf]  ;;  %v9192_v18 = vpop.f32.mrb[29].mxu0  ;;  %v9199_v58 = vpack.c.bf16 %v9177_v40, %v9177_v40  ;;  %v629_v3 = vadd.f32 %v9082_v42, %v8778_v54 }
 0x12c   : > { %1300 = vst [vmem:[#allocation2 + $0x6c] sm:$0xf] %v1299_v11  ;;  %v1087_v21 = vsel %vm8901_vm9, %v1079_v61, %v1086_v27  ;;  %v1310_v33 = vsel %vm8701_vm3, %v1088_v6, %v1309_v45  ;;  %v1603_v61 = vshll.u32 %v9120_v19, 16  ;;  %v9204_v38 = vld [vmem:[#allocation2 + $0x38] ss:$0 sps:$4 sm:$0x11]   ;;  %7764 = vmatprep.subr.bf16.mxu1 %v8244_v56  ;;  %v621_v31 = vadd.f32 %v8778_v54, %v9090_v8 }
 0x12d   : > { %1308 = vst.msk [vmem:[#allocation2 + $0x7c] sm:$0xf] %vm715_vm6, %v1087_v21  ;;  %1311 = vst [vmem:[#allocation2 + $0x80] sm:$0x1] %v1310_v33  ;;  %v9206_v27 = vpop.f32.mrb[30].mxu0  ;;  %v1594_v6 = vsel %vm1570_vm11, %v1589_v7, %v1593_v63  ;;  %v1600_v44 = vrot.slane %v1598_v14, 1  ;;  %v9212_v45 = vcombine.low %v1362_v25, %v9180_v46  ;;  %7765 = vmatpush3.bf16.msra.mxu1 %v8244_v56 }
 0x12e   : > { %v1062_v19 = vrot.slane %v9162_v28, 4  ;;  %1789 = vrot.lane.b32.xlu0 %v1594_v6, %s8525_s14  ;;  %v1064_v42 = vshrl.u32 %v9199_v58, 16  ;;  %v1067_v55 = vshll.u32 %v9199_v58, 16  ;;  %v9218_v11 = vmax.f32 %v629_v3, 0.0  ;;  %v9220_v63 = vpop.f32.mrb[31].mxu0  ;;  %v8245_v8 = vld [vmem:[%s12078_s3 + $0x38] sm:$0xff]  }
 0x12f   : > { %v1601_v21 = vor.u32 %v1600_v44, %v1596_v16  ;;  %v1605_v33 = vrot.slane %v1603_v61, 1  ;;  %v9225_v56 = vmax.f32 %v621_v31, 0.0  ;;  %v1622_v28 = vshll.u32 %v9212_v45, 16  ;;  %v9228_v7 = vld [vmem:[#allocation2 + $0x28] sm:$0xf]  ;;  %7766 = vmatprep.subr.bf16.mxu1 %v8245_v8 }
 0x130   : > { %12193 = vst [vmem:[#allocation31_spill] sm:$0xff] %v9218_v11  ;;  %v1066_v14 = vrot.slane %v1064_v42, 7  ;;  %v9232_v25 = vpack.c.bf16 %v9218_v11, %v9218_v11  ;;  %v1620_v3 = vshrl.u32 %v9212_v45, 16  ;;  %v1627_v6 = vshll.u32 %v9204_v38, 16  ;;  %v1302_v57 = vld [vmem:[#allocation2 + $0x74] sm:$0x1] }
 0x131   : > { %12194 = vst [vmem:[#allocation32_spill] sm:$0xff] %v9225_v56  ;;  %v1606_v16 = vsel %vm1570_vm11, %v1601_v21, %v1605_v33  ;;  %v9239_v61 = vpack.c.bf16 %v9225_v56, %v9225_v56  ;;  %v1624_v44 = vrot.slane %v1622_v28, 1  ;;  %v632_v31 = vadd.f32 %v9097_v15, %v8778_v54  ;;  %v1360_v42 = vld [vmem:[#allocation2 + $0x24] sm:$0xf]  ;;  %7767 = vmatpush3.bf16.msra.mxu1 %v8245_v8 }
 0x132   : > { %v1069_v26 = vor.u32 %v1067_v55, %v1066_v14  ;;  %v1071_v40 = vrot.slane %v1066_v14, 4  ;;  %1791 = vrot.lane.b32.xlu0 %v1606_v16, %s8525_s14  ;;  %v1107_v22 = vshrl.u32 %v9232_v25, 16  ;;  %v9246_v0 = vcombine.low %v1360_v42, %v9228_v7  ;;  %v9248_v21 = vld [vmem:[#allocation2 + $0x2c] ss:$0 sps:$4 sm:$0x11]   ;;  %v8246_v33 = vld [vmem:[%s12078_s3 + $0x40] sm:$0xff]  }
 0x133   : > { %v1110_v28 = vshll.u32 %v9232_v25, 16  ;;  %v1090_v15 = vshrl.u32 %v9239_v61, 16  ;;  %v1625_v16 = vor.u32 %v1624_v44, %v1620_v3  ;;  %7768 = vmatprep.subr.bf16.mxu1 %v8246_v33  ;;  %v1319_v42 = vld [vmem:[#allocation2 + $0x90] sm:$0xf]  ;;  %v1093_v34 = vshll.u32 %v9239_v61, 16 }
 0x134   : > { %v1070_v55 = vsel %vm8901_vm9, %v1062_v19, %v1069_v26  ;;  %v1303_v8 = vsel %vm8701_vm3, %v1071_v40, %v1302_v57  ;;  %v9259_v14 = vrot.slane %v1107_v22, 7  ;;  %v1629_v47 = vrot.slane %v1627_v6, 1  ;;  %v1312_v19 = vld [vmem:[#allocation2 + $0x84] sm:$0xf]  ;;  %v8247_v57 = vld [vmem:[%s12078_s3 + $0x48] sm:$0xff]  }
 0x135   : > { %1301 = vst.msk [vmem:[#allocation2 + $0x70] sm:$0xf] %vm715_vm6, %v1070_v55  ;;  %1304 = vst [vmem:[#allocation2 + $0x74] sm:$0x1] %v1303_v8  ;;  %v9262_v5 = vrot.slane %v1090_v15, 7  ;;  %v9265_v9 = vmax.f32 %v632_v31, 0.0  ;;  %7769 = vmatpush3.bf16.msra.mxu1 %v8246_v33 }
 0x136   : > { %v1112_v26 = vor.u32 %v1110_v28, %v9259_v14  ;;  %v1610_v22 = vshll.u32 %v9246_v0, 16  ;;  %v1615_v40 = vshll.u32 %v9248_v21, 16  ;;  %v1630_v44 = vsel %vm1570_vm11, %v1625_v16, %v1629_v47  ;;  %v1412_v8 = vld [vmem:[#allocation2 + $0x30] sm:$0xe]  ;;  %7770 = vmatprep.subr.bf16.mxu1 %v8247_v57  ;;  %v1374_v20 = vld [vmem:[#allocation2 + $0x78] sm:$0xf] }
 0x137   : > { %12195 = vst [vmem:[#allocation33_spill] sm:$0xff] %v9265_v9  ;;  %v1095_v3 = vor.u32 %v1093_v34, %v9262_v5  ;;  %v1608_v31 = vshrl.u32 %v9246_v0, 16  ;;  %1795 = vrot.lane.b32.xlu1 %v1630_v44, %s8525_s14  ;;  %v9283_v28 = vpack.c.bf16 %v9265_v9, %v9265_v9  ;;  %v624_v34 = vadd.f32 %v8778_v54, %v9102_v52  ;;  %v9357_v11 = vld [vmem:[#allocation2 + $0x44] ss:$0 sps:$4 sm:$0x11]  }
 0x138   : > { %v1320_v33 = vsel %vm8890_vm8, %v1112_v26, %v1319_v42  ;;  %v1612_v15 = vrot.slane %v1610_v22, 1  ;;  %v1617_v55 = vrot.slane %v1615_v40, 1  ;;  %v7080_v16 = vcombine.low %v1412_v8, %v9180_v46  ;;  %v1411_v26 = vld [vmem:[#allocation2 + $0x24] sm:$0xe]  ;;  %v1333_v9 = vld [vmem:[#allocation2 + $0xa8] sm:$0xf] }
 0x139   : > { %12196 = vst [vmem:[#allocation34_spill] sm:$0xff] %v9283_v28  ;;  %1321 = vst [vmem:[#allocation2 + $0x90] sm:$0xf] %v1320_v33  ;;  %v1313_v47 = vsel %vm8890_vm8, %v1095_v3, %v1312_v19  ;;  %v1891_v42 = vrot.slane %v9204_v38, 1  ;;  %7771 = vmatpush3.bf16.msra.mxu1 %v8247_v57  ;;  %v1115_v44 = vshrl.u32 %v9283_v28, 16  ;;  %v1118_v22 = vshll.u32 %v9283_v28, 16 }
 0x13a   : > { %1314 = vst [vmem:[#allocation2 + $0x84] sm:$0xf] %v1313_v47  ;;  %v1613_v40 = vor.u32 %v1612_v15, %v1608_v31  ;;  %v7079_v33 = vcombine.low %v1411_v26, %v9228_v7  ;;  %v8248_v19 = vld [vmem:[%s12078_s3 + $0x50] sm:$0xff]   ;;  %v9297_v3 = vmax.f32 %v624_v34, 0.0  ;;  %v1890_v52 = vrot.slane %v7080_v16, 1 }
 0x13b   : > { %v1888_v46 = vrot.slane %v9248_v21, 1  ;;  %v645_v38 = vadd.f32 %v9134_v59, %v8778_v54  ;;  %v1117_v57 = vrot.slane %v1115_v44, 7  ;;  %v637_v31 = vadd.f32 %v8778_v54, %v9147_v39  ;;  %v9305_v7 = vld [vmem:[#allocation2 + $0x4c] sm:$0xf]  ;;  %7772 = vmatprep.subr.bf16.mxu1 %v8248_v19  ;;  %v1323_v15 = vld [vmem:[#allocation2 + $0x98] sm:$0x1] }
 0x13c   : > { %12197 = vst [vmem:[#allocation35_spill] sm:$0xff] %v9297_v3  ;;  %v1618_v8 = vsel %vm1570_vm11, %v1613_v40, %v1617_v55  ;;  %v1887_v47 = vrot.slane %v7079_v33, 1  ;;  %v9312_v21 = vpack.c.bf16 %v9297_v3, %v9297_v3  ;;  %v1892_v59 = vsel %vm1877_vm10, %v1890_v52, %v1891_v42  ;;  %v9317_v16 = vld [vmem:[#allocation2 + $0x50] ss:$0 sps:$4 sm:$0x11]  }
 0x13d   : > { %1793 = vrot.lane.b32.xlu0 %v1618_v8, %s8525_s14  ;;  %v9315_v55 = vmax.f32 %v645_v38, 0.0  ;;  %7773 = vmatpush3.bf16.msra.mxu1 %v8248_v19  ;;  %v1113_v39 = vrot.slane %v9259_v14, 4  ;;  %v1120_v26 = vor.u32 %v1118_v22, %v1117_v57  ;;  %v1122_v44 = vrot.slane %v1117_v57, 4  ;;  %v1366_v33 = vld [vmem:[#allocation2 + $0x48] sm:$0xf]  ;;  %v8249_v8 = vld [vmem:[%s12078_s3 + $0x58] sm:$0xff]  }
 0x13e   : > { %1940 = vrot.lane.b32.xlu1 %v1892_v59, %s8524_s30  ;;  %v9321_v40 = vmax.f32 %v637_v31, 0.0  ;;  %v1098_v42 = vshrl.u32 %v9312_v21, 16  ;;  %v9332_v19 = vcombine.low %v1366_v33, %v9305_v7  ;;  %v1316_v38 = vld [vmem:[#allocation2 + $0x8c] sm:$0x1]  ;;  %v1889_v57 = vsel %vm1877_vm10, %v1887_v47, %v1888_v46  ;;  %7774 = vmatprep.subr.bf16.mxu1 %v8249_v8 }
 0x13f   : > { %12198 = vst [vmem:[#allocation36_spill] sm:$0xff] %v9315_v55  ;;  %v9329_v52 = vpack.c.bf16 %v9315_v55, %v9315_v55  ;;  %v1121_v14 = vsel %vm8901_vm9, %v1113_v39, %v1120_v26  ;;  %v1324_v22 = vsel %vm8701_vm3, %v1122_v44, %v1323_v15  ;;  %v1101_v33 = vshll.u32 %v9312_v21, 16  ;;  %v9348_v26 = vld [vmem:[#allocation2 + $0x40] sm:$0xf] }
 0x140   : > { %12199 = vst [vmem:[#allocation37_spill] sm:$0xff] %v9321_v40  ;;  %12200 = vst [vmem:[#allocation38_spill] sm:$0xff] %v9332_v19  ;;  %v9341_v31 = vpack.c.bf16 %v9321_v40, %v9321_v40  ;;  %v1100_v59 = vrot.slane %v1098_v42, 7  ;;  %v1651_v15 = vshll.u32 %v9317_v16, 16  ;;  %v1096_v46 = vrot.slane %v9262_v5, 4 }
 0x141   : > { %1322 = vst.msk [vmem:[#allocation2 + $0x94] sm:$0xf] %vm715_vm6, %v1121_v14  ;;  %1325 = vst [vmem:[#allocation2 + $0x98] sm:$0x1] %v1324_v22  ;;  %1938 = vrot.lane.b32.xlu0 %v1889_v57, %s8524_s30  ;;  %v1141_v39 = vshrl.u32 %v9329_v52, 16  ;;  %7775 = vmatpush3.bf16.msra.mxu1 %v8249_v8  ;;  %v1144_v47 = vshll.u32 %v9329_v52, 16  ;;  %v648_v8 = vadd.f32 %v9154_v1, %v8778_v54 }
 0x142   : > { %v1124_v44 = vshrl.u32 %v9341_v31, 16  ;;  %v1127_v14 = vshll.u32 %v9341_v31, 16  ;;  %v1364_v42 = vld [vmem:[#allocation2 + $0x3c] sm:$0xf]  ;;  %v1103_v22 = vor.u32 %v1101_v33, %v1100_v59  ;;  %v1105_v6 = vrot.slane %v1100_v59, 4 }
 0x143   : > { %v9354_v34 = vrot.slane %v1141_v39, 7  ;;  %v1646_v57 = vshll.u32 %v9332_v19, 16  ;;  %v1644_v5 = vshrl.u32 %v9332_v19, 16  ;;  %v9365_v3 = vcombine.low %v1364_v42, %v9348_v26  ;;  %v1368_v40 = vld [vmem:[#allocation2 + $0x54] sm:$0xf] }
 0x144   : > { %v9359_v56 = vrot.slane %v1124_v44, 7  ;;  %v1104_v59 = vsel %vm8901_vm9, %v1096_v46, %v1103_v22  ;;  %v1317_v33 = vsel %vm8701_vm3, %v1105_v6, %v1316_v38  ;;  %v1653_v28 = vrot.slane %v1651_v15, 1  ;;  %v1340_v19 = vld [vmem:[#allocation2 + $0xb4] sm:$0xf]  ;;  %v1420_v35 = vld [vmem:[#allocation2 + $0x90] sm:$0xe] }
 0x145   : > { %12201 = vst [vmem:[#allocation39_spill] sm:$0xff] %v9365_v3  ;;  %v1146_v39 = vor.u32 %v1144_v47, %v9354_v34  ;;  %1315 = vst.msk [vmem:[#allocation2 + $0x88] sm:$0xf] %vm715_vm6, %v1104_v59  ;;  %v1147_v44 = vrot.slane %v9354_v34, 4  ;;  %v1648_v1 = vrot.slane %v1646_v57, 1  ;;  %v9375_v42 = vmax.f32 %v648_v8, 0.0 }
 0x146   : > { %1318 = vst [vmem:[#allocation2 + $0x8c] sm:$0x1] %v1317_v33  ;;  %v1129_v54 = vor.u32 %v1127_v14, %v9359_v56  ;;  %v1632_v22 = vshrl.u32 %v9365_v3, 16  ;;  %v1634_v6 = vshll.u32 %v9365_v3, 16  ;;  %v1639_v38 = vshll.u32 %v9357_v11, 16 }
 0x147   : > { %12202 = vst [vmem:[#allocation40_spill] sm:$0xff] %v9375_v42  ;;  %v1334_v46 = vsel %vm8890_vm8, %v1146_v39, %v1333_v9  ;;  %v1649_v47 = vor.u32 %v1648_v1, %v1644_v5  ;;  %v9388_v14 = vpack.c.bf16 %v9375_v42, %v9375_v42  ;;  %v1414_v57 = vld [vmem:[#allocation2 + $0x48] sm:$0xe]  ;;  %v9393_v59 = vld [vmem:[%s12077_s2] ss:$0 sm:$0xff]  ;;  %v1897_v1 = vrot.slane %v9317_v16, 1 }
 0x148   : > { %1335 = vst [vmem:[#allocation2 + $0xa8] sm:$0xf] %v1334_v46  ;;  %v1327_v15 = vsel %vm8890_vm8, %v1129_v54, %v1326_v2  ;;  %v1636_v9 = vrot.slane %v1634_v6, 1  ;;  %v1641_v8 = vrot.slane %v1639_v38, 1  ;;  %v640_v2 = vadd.f32 %v9393_v59, %v9160_v62  ;;  %v1413_v46 = vld [vmem:[#allocation2 + $0x3c] sm:$0xe] }
 0x149   : > { %1328 = vst [vmem:[#allocation2 + $0x9c] sm:$0xf] %v1327_v15  ;;  %v7082_v5 = vcombine.low %v1414_v57, %v9305_v7  ;;  %v1654_v33 = vsel %vm1570_vm11, %v1649_v47, %v1653_v28  ;;  %v1149_v39 = vshrl.u32 %v9388_v14, 16  ;;  %v1152_v54 = vshll.u32 %v9388_v14, 16  ;;  %v9411_v57 = vld [vmem:[#allocation2 + $0x64] sm:$0xf] }
 0x14a   : > { %1799 = vrot.lane.b32.xlu1 %v1654_v33, %s8525_s14  ;;  %v1637_v6 = vor.u32 %v1636_v9, %v1632_v22  ;;  %v9403_v38 = vmax.f32 %v640_v2, 0.0  ;;  %v7081_v34 = vcombine.low %v1413_v46, %v9348_v26  ;;  %v1894_v7 = vrot.slane %v9357_v11, 1  ;;  %v1337_v16 = vld [vmem:[#allocation2 + $0xb0] sm:$0x1]  ;;  %v1370_v9 = vld [vmem:[#allocation2 + $0x60] sm:$0xf] }
 0x14b   : > { %v1896_v15 = vrot.slane %v7082_v5, 1  ;;  %v1151_v62 = vrot.slane %v1149_v39, 7  ;;  %v661_v28 = vadd.f32 %v9393_v59, %v9182_v10  ;;  %v653_v47 = vadd.f32 %v9393_v59, %v9192_v18  ;;  %v9424_v39 = vld [vmem:[#allocation2 + $0x68] ss:$0 sps:$4 sm:$0x11]  }
 0x14c   : > { %12203 = vst [vmem:[#allocation41_spill] sm:$0xff] %v9403_v38  ;;  %v1642_v33 = vsel %vm1570_vm11, %v1637_v6, %v1641_v8  ;;  %v9418_v26 = vpack.c.bf16 %v9403_v38, %v9403_v38  ;;  %v1893_v18 = vrot.slane %v7081_v34, 1  ;;  %v1130_v8 = vrot.slane %v9359_v56, 4  ;;  %v1351_v3 = vld [vmem:[#allocation2 + $0xc8] sm:$0x1] }
 0x14d   : > { %v1898_v11 = vsel %vm1877_vm10, %v1896_v15, %v1897_v1  ;;  %v1154_v2 = vor.u32 %v1152_v54, %v1151_v62  ;;  %v1156_v10 = vrot.slane %v1151_v62, 4  ;;  %1797 = vrot.lane.b32.xlu0 %v1642_v33, %s8525_s14  ;;  %v9422_v5 = vmax.f32 %v661_v28, 0.0  ;;  %v1330_v28 = vld [vmem:[#allocation2 + $0xa4] sm:$0x1] }
 0x14e   : > { %v1132_v46 = vshrl.u32 %v9418_v26, 16  ;;  %1944 = vrot.lane.b32.xlu1 %v1898_v11, %s8524_s30  ;;  %v9429_v6 = vmax.f32 %v653_v47, 0.0  ;;  %v9432_v1 = vcombine.low %v1370_v9, %v9411_v57  ;;  %v1135_v15 = vshll.u32 %v9418_v26, 16 }
 0x14f   : > { %12204 = vst [vmem:[#allocation42_spill] sm:$0xff] %v9422_v5  ;;  %v1155_v54 = vsel %vm8901_vm9, %v1147_v44, %v1154_v2  ;;  %v1338_v34 = vsel %vm8701_vm3, %v1156_v10, %v1337_v16  ;;  %v9441_v56 = vpack.c.bf16 %v9422_v5, %v9422_v5  ;;  %v1895_v47 = vsel %vm1877_vm10, %v1893_v18, %v1894_v7  ;;  %v1369_v10 = vld [vmem:[#allocation2 + $0x58] sm:$0xf] }
 0x150   : > { %12205 = vst [vmem:[#allocation43_spill] sm:$0xff] %v9429_v6  ;;  %12206 = vst [vmem:[#allocation44_spill] sm:$0xff] %v9432_v1  ;;  %v1134_v62 = vrot.slane %v1132_v46, 7  ;;  %v9447_v33 = vpack.c.bf16 %v9429_v6, %v9429_v6  ;;  %v1670_v44 = vshll.u32 %v9432_v1, 16  ;;  %v1668_v11 = vshrl.u32 %v9432_v1, 16 }
 0x151   : > { %12207 = vst [vmem:[#allocation45_spill] sm:$0xff] %v9441_v56  ;;  %1336 = vst.msk [vmem:[#allocation2 + $0xac] sm:$0xf] %vm715_vm6, %v1155_v54  ;;  %1942 = vrot.lane.b32.xlu0 %v1895_v47, %s8524_s30  ;;  %v1175_v16 = vshrl.u32 %v9441_v56, 16  ;;  %v1675_v9 = vshll.u32 %v9424_v39, 16  ;;  %v664_v2 = vadd.f32 %v9393_v59, %v9206_v27  ;;  %v1178_v18 = vshll.u32 %v9441_v56, 16 }
 0x152   : > { %1339 = vst [vmem:[#allocation2 + $0xb0] sm:$0x1] %v1338_v34  ;;  %v1137_v46 = vor.u32 %v1135_v15, %v1134_v62  ;;  %v1139_v7 = vrot.slane %v1134_v62, 4  ;;  %v1158_v54 = vshrl.u32 %v9447_v33, 16  ;;  %v1161_v47 = vshll.u32 %v9447_v33, 16 }
 0x153   : > { %v9458_v34 = vld [vmem:[#allocation2 + $0x5c] ss:$0 sps:$4 sm:$0x11]   ;;  %v1177_v22 = vrot.slane %v1175_v16, 7  ;;  %v1672_v55 = vrot.slane %v1670_v44, 1  ;;  %v9461_v42 = vmax.f32 %v664_v2, 0.0  ;;  %v9469_v1 = vcombine.low %v1368_v40, %v1369_v10 }
 0x154   : > { %v1138_v38 = vsel %vm8901_vm9, %v1130_v8, %v1137_v46  ;;  %v1331_v27 = vsel %vm8701_vm3, %v1139_v7, %v1330_v28  ;;  %v1347_v15 = vld [vmem:[#allocation2 + $0xc0] sm:$0xf]  ;;  %v9467_v62 = vrot.slane %v1158_v54, 7  ;;  %v1677_v2 = vrot.slane %v1675_v9, 1 }
 0x155   : > { %12208 = vst [vmem:[#allocation46_spill] sm:$0xff] %v9461_v42  ;;  %12209 = vst [vmem:[#allocation47_spill] sm:$0xff] %v9469_v1  ;;  %v1180_v16 = vor.u32 %v1178_v18, %v1177_v22  ;;  %v1673_v44 = vor.u32 %v1672_v55, %v1668_v11  ;;  %v9477_v28 = vpack.c.bf16 %v9461_v42, %v9461_v42  ;;  %v1663_v7 = vshll.u32 %v9458_v34, 16  ;;  %v1416_v55 = vld [vmem:[#allocation2 + $0x60] sm:$0xe] }
 0x156   : > { %1329 = vst.msk [vmem:[#allocation2 + $0xa0] sm:$0xf] %vm715_vm6, %v1138_v38  ;;  %1332 = vst [vmem:[#allocation2 + $0xa4] sm:$0x1] %v1331_v27  ;;  %v1163_v8 = vor.u32 %v1161_v47, %v9467_v62  ;;  %v1658_v38 = vshll.u32 %v9469_v1, 16  ;;  %v1181_v11 = vrot.slane %v1177_v22, 4  ;;  %v7084_v22 = vcombine.low %v1416_v55, %v9411_v57 }
 0x157   : > { %12210 = vst [vmem:[#allocation48_spill] sm:$0xff] %v9477_v28  ;;  %v1348_v40 = vsel %vm8890_vm8, %v1180_v16, %v1347_v15  ;;  %v1678_v46 = vsel %vm1570_vm11, %v1673_v44, %v1677_v2  ;;  %v1183_v18 = vshrl.u32 %v9477_v28, 16  ;;  %v1656_v54 = vshrl.u32 %v9469_v1, 16  ;;  %v9489_v47 = vld [vmem:[#allocation2 + $0x7c] sm:$0xf] }
 0x158   : > { %1349 = vst [vmem:[#allocation2 + $0xc0] sm:$0xf] %v1348_v40  ;;  %v1341_v9 = vsel %vm8890_vm8, %v1163_v8, %v1340_v19  ;;  %1803 = vrot.lane.b32.xlu1 %v1678_v46, %s8525_s14  ;;  %v1186_v27 = vshll.u32 %v9477_v28, 16  ;;  %v1660_v15 = vrot.slane %v1658_v38, 1  ;;  %v656_v16 = vadd.f32 %v9393_v59, %v9220_v63  ;;  %v1415_v44 = vld [vmem:[#allocation2 + $0x54] sm:$0xe] }
 0x159   : > { %1342 = vst [vmem:[#allocation2 + $0xb4] sm:$0xf] %v1341_v9  ;;  %v1185_v19 = vrot.slane %v1183_v18, 7  ;;  %v1665_v2 = vrot.slane %v1663_v7, 1  ;;  %v1903_v8 = vrot.slane %v9424_v39, 1  ;;  %v7083_v40 = vcombine.low %v1415_v44, %v1369_v10 }
 0x15a   : > { %v9496_v46 = vld [vmem:[#allocation2 + $0x80] ss:$0 sps:$4 sm:$0x11]   ;;  %v1661_v5 = vor.u32 %v1660_v15, %v1656_v54  ;;  %v9498_v9 = vmax.f32 %v656_v16, 0.0  ;;  %v1902_v42 = vrot.slane %v7084_v22, 1  ;;  %v9501_v38 = vcombine.low %v1374_v20, %v9489_v47 }
 0x15b   : > { %v1188_v63 = vor.u32 %v1186_v27, %v1185_v19  ;;  %v1190_v59 = vrot.slane %v1185_v19, 4  ;;  %v1899_v57 = vrot.slane %v7083_v40, 1  ;;  %v1900_v55 = vrot.slane %v9458_v34, 1  ;;  %v1373_v54 = vld [vmem:[#allocation2 + $0x70] sm:$0xf] }
 0x15c   : > { %12211 = vst [vmem:[#allocation49_spill] sm:$0xff] %v9498_v9  ;;  %12212 = vst [vmem:[#allocation50_spill] sm:$0xff] %v9501_v38  ;;  %v1666_v7 = vsel %vm1570_vm11, %v1661_v5, %v1665_v2  ;;  %v9509_v10 = vpack.c.bf16 %v9498_v9, %v9498_v9  ;;  %v1904_v18 = vsel %vm1877_vm10, %v1902_v42, %v1903_v8  ;;  %v1699_v5 = vshll.u32 %v9496_v46, 16  ;;  %v1372_v34 = vld [vmem:[#allocation2 + $0x6c] sm:$0xf] }
 0x15d   : > { %v1189_v15 = vsel %vm8901_vm9, %v1181_v11, %v1188_v63  ;;  %v1352_v27 = vsel %vm8701_vm3, %v1190_v59, %v1351_v3  ;;  %1801 = vrot.lane.b32.xlu0 %v1666_v7, %s8525_s14  ;;  %1948 = vrot.lane.b32.xlu1 %v1904_v18, %s8524_s30  ;;  %v8220_v16 = vld [vmem:[#allocation2 + $0x74] ss:$0 sps:$4 sm:$0x11]   ;;  %v1164_v22 = vrot.slane %v9467_v62, 4  ;;  %v1694_v11 = vshll.u32 %v9501_v38, 16 }
 0x15e   : > { %1350 = vst.msk [vmem:[#allocation2 + $0xc4] sm:$0xf] %vm715_vm6, %v1189_v15  ;;  %1353 = vst [vmem:[#allocation2 + $0xc8] sm:$0x1] %v1352_v27  ;;  %v1166_v42 = vshrl.u32 %v9509_v10, 16  ;;  %v1901_v3 = vsel %vm1877_vm10, %v1899_v57, %v1900_v55  ;;  %v1692_v20 = vshrl.u32 %v9501_v38, 16  ;;  %v9525_v19 = vcombine.low %v1372_v34, %v1373_v54 }
 0x15f   : > { %v1418_v44 = vld [vmem:[#allocation2 + $0x78] sm:$0xe]  ;;  %v1417_v8 = vld [vmem:[#allocation2 + $0x6c] sm:$0xe]  ;;  %v9528_v40 = vld [vmem:[#allocation2 + $0x94] sm:$0xf] }
 0x160   : > { %12213 = vst [vmem:[#allocation51_spill] sm:$0xff] %v9525_v19  ;;  %v7086_v2 = vcombine.low %v1418_v44, %v9489_v47  ;;  %v1168_v62 = vrot.slane %v1166_v42, 7  ;;  %v1169_v63 = vshll.u32 %v9509_v10, 16  ;;  %v1696_v59 = vrot.slane %v1694_v11, 1  ;;  %v1344_v15 = vld [vmem:[#allocation2 + $0xbc] sm:$0x1] }
 0x161   : > { %v7085_v7 = vcombine.low %v1417_v8, %v1373_v54  ;;  %v9531_v18 = vld [vmem:[#allocation2 + $0x98] ss:$0 sps:$4 sm:$0x11]   ;;  %1946 = vrot.lane.b32.xlu0 %v1901_v3, %s8524_s30  ;;  %v1701_v57 = vrot.slane %v1699_v5, 1  ;;  %v1682_v55 = vshll.u32 %v9525_v19, 16  ;;  %v1687_v27 = vshll.u32 %v8220_v16, 16 }
 0x162   : > { %v1909_v34 = vrot.slane %v9496_v46, 1  ;;  %v1171_v47 = vor.u32 %v1169_v63, %v1168_v62  ;;  %v1173_v44 = vrot.slane %v1168_v62, 4  ;;  %v1697_v39 = vor.u32 %v1696_v59, %v1692_v20  ;;  %v1378_v42 = vld [vmem:[#allocation2 + $0x90] sm:$0xf]  ;;  %v9536_v9 = vld [vmem:[#allocation2 + $0x88] sm:$0xf] }
 0x163   : > { %v1906_v6 = vrot.slane %v8220_v16, 1  ;;  %v1680_v54 = vshrl.u32 %v9525_v19, 16  ;;  %v1684_v11 = vrot.slane %v1682_v55, 1  ;;  %v1908_v8 = vrot.slane %v7086_v2, 1  ;;  %v1376_v55 = vld [vmem:[#allocation2 + $0x84] sm:$0xf] }
 0x164   : > { %v9540_v38 = vcombine.low %v1378_v42, %v9528_v40  ;;  %v9542_v5 = vld [vmem:[#allocation2 + $0x8c] ss:$0 sps:$4 sm:$0x11]   ;;  %v1172_v3 = vsel %vm8901_vm9, %v1164_v22, %v1171_v47  ;;  %v1345_v46 = vsel %vm8701_vm3, %v1173_v44, %v1344_v15  ;;  %v1702_v16 = vsel %vm1570_vm11, %v1697_v39, %v1701_v57  ;;  %v1382_v15 = vld [vmem:[#allocation2 + $0xa8] sm:$0xf] }
 0x165   : > { %v1905_v20 = vrot.slane %v7085_v7, 1  ;;  %1343 = vst.msk [vmem:[#allocation2 + $0xb8] sm:$0xf] %vm715_vm6, %v1172_v3  ;;  %1346 = vst [vmem:[#allocation2 + $0xbc] sm:$0x1] %v1345_v46  ;;  %1807 = vrot.lane.b32.xlu1 %v1702_v16, %s8525_s14  ;;  %v1685_v2 = vor.u32 %v1684_v11, %v1680_v54  ;;  %v1689_v62 = vrot.slane %v1687_v27, 1  ;;  %v9554_v22 = vcombine.low %v1376_v55, %v9536_v9 }
 0x166   : > { %12214 = vst [vmem:[#allocation52_spill] sm:$0xff] %v9540_v38  ;;  %v1718_v63 = vshll.u32 %v9540_v38, 16  ;;  %v1723_v59 = vshll.u32 %v9531_v18, 16  ;;  %v9556_v47 = vld [vmem:[#allocation2 + $0xac] sm:$0xf]  ;;  %v1716_v7 = vshrl.u32 %v9540_v38, 16  ;;  %v1910_v42 = vsel %vm1877_vm10, %v1908_v8, %v1909_v34 }
 0x167   : > { %12215 = vst [vmem:[#allocation53_spill] sm:$0xff] %v9554_v22  ;;  %v1690_v39 = vsel %vm1570_vm11, %v1685_v2, %v1689_v62  ;;  %v1711_v44 = vshll.u32 %v9542_v5, 16  ;;  %v9561_v27 = vld [vmem:[#allocation2 + $0xa0] sm:$0xf]  ;;  %v1907_v54 = vsel %vm1877_vm10, %v1905_v20, %v1906_v6  ;;  %v1706_v11 = vshll.u32 %v9554_v22, 16 }
 0x168   : > { %v1720_v57 = vrot.slane %v1718_v63, 1  ;;  %1805 = vrot.lane.b32.xlu0 %v1690_v39, %s8525_s14  ;;  %v7088_v3 = vcombine.low %v1420_v35, %v9528_v40  ;;  %v9568_v46 = vld [vmem:[#allocation2 + $0xb0] ss:$0 sps:$4 sm:$0x11]   ;;  %v9573_v16 = vld [vmem:[%s12078_s3] sm:$0xff]   ;;  %v1725_v62 = vrot.slane %v1723_v59, 1  ;;  %v9578_v6 = vcombine.low %v1382_v15, %v9556_v47 }
 0x169   : > { %1952 = vrot.lane.b32.xlu1 %v1910_v42, %s8524_s30  ;;  %v1915_v63 = vrot.slane %v9531_v18, 1  ;;  %v1419_v34 = vld [vmem:[#allocation2 + $0x84] sm:$0xe]  ;;  %v1380_v8 = vld [vmem:[#allocation2 + $0x9c] sm:$0xf]  ;;  %v1704_v40 = vshrl.u32 %v9554_v22, 16  ;;  %7808 = vmatprep.subr.bf16.mxu1 %v9573_v16 }
 0x16a   : > { %v1721_v2 = vor.u32 %v1720_v57, %v1716_v7  ;;  %12216 = vst [vmem:[#allocation54_spill] sm:$0xff] %v9578_v6  ;;  %v1708_v20 = vrot.slane %v1706_v11, 1  ;;  %v7087_v55 = vcombine.low %v1419_v34, %v9536_v9  ;;  %v9583_v35 = vcombine.low %v1380_v8, %v9561_v27  ;;  %v9585_v39 = vld [vmem:[#allocation2 + $0xa4] ss:$0 sps:$4 sm:$0x11]  }
 0x16b   : > { %v1713_v18 = vrot.slane %v1711_v44, 1  ;;  %v1912_v7 = vrot.slane %v9542_v5, 1  ;;  %v1742_v15 = vshll.u32 %v9578_v6, 16  ;;  %v1914_v42 = vrot.slane %v7088_v3, 1  ;;  %v9594_v34 = vld [vmem:[#allocation2 + $0xc4] sm:$0xf] }
 0x16c   : > { %12217 = vst [vmem:[#allocation55_spill] sm:$0xff] %v9583_v35  ;;  %v1726_v59 = vsel %vm1570_vm11, %v1721_v2, %v1725_v62  ;;  %1950 = vrot.lane.b32.xlu0 %v1907_v54, %s8524_s30  ;;  %v1709_v57 = vor.u32 %v1708_v20, %v1704_v40  ;;  %v1747_v9 = vshll.u32 %v9568_v46, 16  ;;  %v1730_v11 = vshll.u32 %v9583_v35, 16  ;;  %v9598_v44 = vld [vmem:[#allocation2 + $0xb8] sm:$0xf] }
 0x16d   : > { %1811 = vrot.lane.b32.xlu1 %v1726_v59, %s8525_s14  ;;  %v1740_v8 = vshrl.u32 %v9578_v6, 16  ;;  %v1744_v2 = vrot.slane %v1742_v15, 1  ;;  %v1911_v62 = vrot.slane %v7087_v55, 1  ;;  %v1735_v54 = vshll.u32 %v9585_v39, 16  ;;  %v1386_v3 = vld [vmem:[#allocation2 + $0xc0] sm:$0xf] }
 0x16e   : > { %v1714_v5 = vsel %vm1570_vm11, %v1709_v57, %v1713_v18  ;;  %v1732_v38 = vrot.slane %v1730_v11, 1  ;;  %v1728_v20 = vshrl.u32 %v9583_v35, 16  ;;  %v1422_v22 = vld [vmem:[#allocation2 + $0xa8] sm:$0xe]  ;;  %v9604_v19 = vcombine.low %v1386_v3, %v9594_v34  ;;  %v1384_v59 = vld [vmem:[#allocation2 + $0xb4] sm:$0xf] }
 0x16f   : > { %v1745_v40 = vor.u32 %v1744_v2, %v1740_v8  ;;  %v1916_v15 = vsel %vm1877_vm10, %v1914_v42, %v1915_v63  ;;  %v1749_v6 = vrot.slane %v1747_v9, 1  ;;  %v7090_v18 = vcombine.low %v1422_v22, %v9556_v47  ;;  %v9609_v55 = vld [vmem:[#allocation2 + $0xc8] ss:$0 sps:$4 sm:$0x11]   ;;  %v1355_v3 = vld [vmem:[#allocation2 + $0x4] sm:$0xf] }
 0x170   : > { %12218 = vst [vmem:[#allocation56_spill] sm:$0xff] %v9604_v19  ;;  %1809 = vrot.lane.b32.xlu0 %v1714_v5, %s8525_s14  ;;  %v9612_v57 = vcombine.low %v1384_v59, %v9598_v44  ;;  %v1733_v11 = vor.u32 %v1732_v38, %v1728_v20  ;;  %v1766_v8 = vshll.u32 %v9604_v19, 16  ;;  %v783_v2 = vld [vmem:[#allocation2 + $0x8] sm:$0x1]  ;;  %v1913_v35 = vsel %vm1877_vm10, %v1911_v62, %v1912_v7  ;;  %v1421_v42 = vld [vmem:[#allocation2 + $0x9c] sm:$0xe] }
 0x171   : > { %1956 = vrot.lane.b32.xlu1 %v1916_v15, %s8524_s30  ;;  %v1750_v5 = vsel %vm1570_vm11, %v1745_v40, %v1749_v6  ;;  %v1737_v63 = vrot.slane %v1735_v54, 1  ;;  %v1354_v9 = vld [vmem:[#allocation2] sm:$0xf]  ;;  %v1921_v22 = vrot.slane %v9568_v46, 1  ;;  %v7089_v47 = vcombine.low %v1421_v42, %v9561_v27 }
 0x172   : > { %v1768_v59 = vrot.slane %v1766_v8, 1  ;;  %v8238_v1 = vld [vmem:[#allocation2 + $0xbc] ss:$0 sps:$4 sm:$0x11]   ;;  %v1754_v15 = vshll.u32 %v9612_v57, 16  ;;  %v1920_v38 = vrot.slane %v7090_v18, 1  ;;  %v9628_v27 = vcombine.low %v1354_v9, %v1355_v3 }
 0x173   : > { %v1764_v20 = vshrl.u32 %v9604_v19, 16  ;;  %v1771_v7 = vshll.u32 %v9609_v55, 16  ;;  %v784_v6 = vsel %vm8709_vm5, 0, %v783_v2  ;;  %v1738_v46 = vsel %vm1570_vm11, %v1733_v11, %v1737_v63  ;;  %v1408_v40 = vld [vmem:[#allocation2] sm:$0xe] }
 0x174   : > { %1954 = vrot.lane.b32.xlu0 %v1913_v35, %s8524_s30  ;;  %v1756_v62 = vrot.slane %v1754_v15, 1  ;;  %785 = vst [vmem:[#allocation2 + $0x8] sm:$0x1] %v784_v6  ;;  %v1917_v8 = vrot.slane %v7089_v47, 1  ;;  %v1918_v35 = vrot.slane %v9585_v39, 1  ;;  %v1752_v18 = vshrl.u32 %v9612_v57, 16 }
 0x175   : > { %1815 = vrot.lane.b32.xlu1 %v1750_v5, %s8525_s14  ;;  %v1769_v54 = vor.u32 %v1768_v59, %v1764_v20  ;;  %v1759_v42 = vshll.u32 %v8238_v1, 16  ;;  %v1424_v19 = vld [vmem:[#allocation2 + $0xc0] sm:$0xe]  ;;  %v1922_v2 = vsel %vm1877_vm10, %v1920_v38, %v1921_v22  ;;  %v1773_v5 = vrot.slane %v1771_v7, 1  ;;  %v1423_v59 = vld [vmem:[#allocation2 + $0xb4] sm:$0xe] }
 0x176   : > { %v7092_v11 = vcombine.low %v1424_v19, %v9594_v34  ;;  %v1757_v63 = vor.u32 %v1756_v62, %v1752_v18  ;;  %v1574_v9 = vshll.u32 %v9628_v27, 16  ;;  %v7076_v39 = vcombine.low %v1408_v40, %v1355_v3 }
 0x177   : > { %v1774_v47 = vsel %vm1570_vm11, %v1769_v54, %v1773_v5  ;;  %v1919_v15 = vsel %vm1877_vm10, %v1917_v8, %v1918_v35  ;;  %v1761_v20 = vrot.slane %v1759_v42, 1  ;;  %v1927_v6 = vrot.slane %v9609_v55, 1 }
 0x178   : > { %1813 = vrot.lane.b32.xlu0 %v1738_v46, %s8525_s14  ;;  %v7091_v46 = vcombine.low %v1423_v59, %v9598_v44  ;;  %v1926_v22 = vrot.slane %v7092_v11, 1  ;;  %v1572_v38 = vshrl.u32 %v9628_v27, 16  ;;  %v1576_v7 = vrot.slane %v1574_v9, 1  ;;  %v778_v11 = vld [vmem:[#allocation2 + $0xcc] sm:$0x1] }
 0x179   : > { %1960 = vrot.lane.b32.xlu1 %v1922_v2, %s8524_s30  ;;  %v1762_v34 = vsel %vm1570_vm11, %v1757_v63, %v1761_v20  ;;  %v1878_v62 = vrot.slane %v7076_v39, 1  ;;  %v1924_v8 = vrot.slane %v8238_v1, 1  ;;  %v2888_v55 = vrot.slane %v8976_v37, 7  ;;  %v834_v1 = vld [vmem:[#allocation2 + $0xd4] sm:$0x1] }
 0x17a   : > { %v1923_v40 = vrot.slane %v7091_v46, 1  ;;  %v2928_v44 = vrot.slane %v9341_v31, 7  ;;  %v1928_v35 = vsel %vm1877_vm10, %v1926_v22, %v1927_v6  ;;  %v1577_v18 = vor.u32 %v1576_v7, %v1572_v38  ;;  %v8291_v31 = vld [vmem:[%s12080_s5 + $0x70] sm:$0xff]  }
 0x17b   : > { %v8242_v19 = vld [vmem:[#allocation2 + $0x8] ss:$0 sps:$4 sm:$0x11]   ;;  %v2933_v37 = vrot.slane %v9329_v52, 7  ;;  %v2889_v63 = vrot.slane %v2888_v55, 4  ;;  %v2890_v9 = vrot.slane %v9026_v51, 7 }
 0x17c   : > { %1958 = vrot.lane.b32.xlu0 %v1919_v15, %s8524_s30  ;;  %v1879_v3 = vrot.slane %v8242_v19, 1  ;;  %v1579_v54 = vshll.u32 %v8242_v19, 16  ;;  %v1925_v5 = vsel %vm1877_vm10, %v1923_v40, %v1924_v8  ;;  %v2883_v59 = vrot.slane %v8911_v43, 7 }
 0x17d   : > { %1819 = vrot.lane.b32.xlu1 %v1774_v47, %s8525_s14  ;;  %v2929_v47 = vrot.slane %v2928_v44, 4  ;;  %v2930_v15 = vrot.slane %v9418_v26, 7  ;;  %v779_v6 = vsel %vm8701_vm3, 0, %v778_v11  ;;  %v835_v51 = vsel %vm8709_vm5, 0, %v834_v1 }
 0x17e   : > { %v1581_v42 = vrot.slane %v1579_v54, 1  ;;  %v1880_v2 = vsel %vm1877_vm10, %v1878_v62, %v1879_v3  ;;  %780 = vst [vmem:[#allocation2 + $0xcc] sm:$0x1] %v779_v6  ;;  %836 = vst [vmem:[#allocation2 + $0xd4] sm:$0x1] %v835_v51  ;;  %v2891_v22 = vsel %vm9661_vm14, %v2889_v63, %v2890_v9  ;;  %v2934_v50 = vrot.slane %v2933_v37, 4 }
 0x17f   : > { %v9673_v46 = vsel %vm9661_vm14, %v2929_v47, %v2930_v15  ;;  %v2935_v19 = vrot.slane %v9388_v14, 7  ;;  %v2884_v53 = vrot.slane %v2883_v59, 4  ;;  %v2938_v38 = vrot.slane %v9447_v33, 7 }
 0x180   : > { %1817 = vrot.lane.b32.xlu0 %v1762_v34, %s8525_s14  ;;  %v1582_v39 = vsel %vm1570_vm11, %v1577_v18, %v1581_v42  ;;  %v2885_v34 = vrot.slane %v8960_v30, 7  ;;  %v2940_v62 = vrot.slane %v9509_v10, 7  ;;  %v2893_v3 = vrot.slane %v8972_v36, 7 }
 0x181   : > { %1964 = vrot.lane.b32.xlu1 %v1928_v35, %s8524_s30  ;;  %v9690_v7 = vsel %vm9661_vm14, %v2934_v50, %v2935_v19  ;;  %v2895_v54 = vrot.slane %v9020_v49, 7  ;;  %v2939_v8 = vrot.slane %v2938_v38, 4  ;;  %v2898_v35 = vrot.slane %v9060_v48, 7 }
 0x182   : > { %v9699_v40 = vsel %vm9661_vm14, %v2884_v53, %v2885_v34  ;;  %v12221_v49 = vmov 0   ;;  %v2892_v48 = vrot.slane %v2890_v9, 4  ;;  %v2894_v18 = vrot.slane %v2893_v3, 4 }
 0x183   : > { %v9710_v36 = vsel %vm9661_vm14, %v2939_v8, %v2940_v62  ;;  %2816 = vst.msk [vmem:[#allocation3 + $0x14] sm:$0x3] %vm2812_vm15, %v12221_v49  ;;  %2813 = vst.msk [vmem:[#allocation3 + $0x8] sm:$0x3] %vm2812_vm15, %v12221_v49  ;;  %v12137_v42 = vrot.slane %v9477_v28, 7  ;;  %v12138_v11 = vrot.slane %v9441_v56, 7 }
 0x184   : > { %1962 = vrot.lane.b32.xlu0 %v1925_v5, %s8524_s30  ;;  %2820 = vst.msk [vmem:[#allocation3 + $0xe0] sm:$0x3] %vm2812_vm15, %v12221_v49  ;;  %2823 = vst.msk [vmem:[#allocation3 + $0xec] sm:$0x3] %vm2812_vm15, %v12221_v49  ;;  %v2900_v5 = vrot.slane %v9088_v12, 7  ;;  %v2896_v63 = vsel %vm9661_vm14, %v2894_v18, %v2895_v54  ;;  %v2903_v47 = vrot.slane %v9044_v60, 7 }
 0x185   : > { %1932 = vrot.lane.b32.xlu1 %v1880_v2, %s8524_s30  ;;  %v2899_v2 = vrot.slane %v2898_v35, 4  ;;  %v2944_v1 = vrot.slane %v12138_v11, 4  ;;  %v2908_v6 = vrot.slane %v9132_v23, 7  ;;  %vm2102_vm3 = vcmask 785408  }
 0x186   : > { %v2902_v51 = vrot.slane %v2900_v5, 4  ;;  %v2915_v18 = vrot.slane %v9145_v29, 7  ;;  %v2887_v43 = vrot.slane %v2885_v34, 4  ;;  %vm3922_vm5 = vsmask.f32 6400 }
 0x187   : > { %v2901_v9 = vsel %vm9661_vm14, %v2899_v2, %v2900_v5  ;;  %v9732_v12 = vsel %vm9661_vm14, %v2944_v1, %v12137_v42  ;;  %v2909_v53 = vrot.slane %v2908_v6, 4  ;;  %v8256_v2 = vld [vmem:[%s12078_s3 + $0x8] sm:$0xff]   ;;  %v2918_v5 = vrot.slane %v9239_v61, 7  ;;  %v8258_v61 = vld [vmem:[%s12078_s3 + $0x10] sm:$0xff]  }
 0x188   : > { %1787 = vrot.lane.b32.xlu0 %v1582_v39, %s8525_s14  ;;  %12222 = vst [vmem:[#allocation57_spill] sm:$0xff] %v9732_v12  ;;  %v2905_v39 = vrot.slane %v9080_v41, 7 }
 0x189   : > { %2974 = vrot.lane.b32.xlu1 %v2891_v22, %s12155_s15  ;;  %v2904_v22 = vrot.slane %v2903_v47, 4 }
 0x18a   : > { %v2907_v50 = vrot.slane %v2905_v39, 4  ;;  %v9925_v20 = vld [vmem:[#allocation3 + $0x14] ss:$0 sps:$4 sm:$0x11]  }
 0x18b   : > { %v2906_v41 = vsel %vm9661_vm14, %v2904_v22, %v2905_v39  ;;  %v2870_v22 = vrot.slane %v8883_v13, 7  ;;  %v8257_v14 = vld [vmem:[#allocation3 + $0x14] ss:$0 sps:$4 sm:$0x33]  }
 0x18c   : > { %2972 = vrot.lane.b32.xlu0 %v2888_v55, %s12155_s15  ;;  %v2897_v55 = vrot.slane %v2895_v54, 4  ;;  %v3949_v10 = vshrl.u32 %v8257_v14, 16 }
 0x18d   : > { %2978 = vrot.lane.b32.xlu1 %v2893_v3, %s12155_s15  ;;  %v2910_v3 = vrot.slane %v9199_v58, 7 }
 0x18e   : > { %v3951_v34 = vrot.slane %v3949_v10, 1 }
 0x18f   : > { %v2911_v8 = vsel %vm9661_vm14, %v2909_v53, %v2910_v3  ;;  %v2923_v53 = vrot.slane %v9232_v25, 7 }
 0x190   : > { %2976 = vrot.lane.b32.xlu0 %v2892_v48, %s12155_s15  ;;  %v2913_v48 = vrot.slane %v9128_v24, 7  ;;  %v2912_v24 = vrot.slane %v2910_v3, 4 }
 0x191   : > { %2982 = vrot.lane.b32.xlu1 %v2897_v55, %s12155_s15  ;;  %v1935_v54 = vpop.permute.xlu1 %1934 }
 0x192   : > { %v2914_v29 = vrot.slane %v2913_v48, 4 }
 0x194   : > { %2980 = vrot.lane.b32.xlu0 %v2896_v63, %s12155_s15  ;;  %v2919_v63 = vrot.slane %v2918_v5, 4  ;;  %v2916_v39 = vsel %vm9661_vm14, %v2914_v29, %v2915_v18  ;;  %v8251_v29 = vld [vmem:[#allocation2 + $0xd4] ss:$0 sps:$4 sm:$0x11]  }
 0x195   : > { %2986 = vrot.lane.b32.xlu1 %v2901_v9, %s12155_s15  ;;  %v2920_v9 = vrot.slane %v9312_v21, 7 }
 0x198   : > { %2984 = vrot.lane.b32.xlu0 %v2898_v35, %s12155_s15 }
 0x199   : > { %2990 = vrot.lane.b32.xlu1 %v2903_v47, %s12155_s15 }
 0x19b   : > { %v1937_v55 = vpop.permute.xlu1 %1936 }
 0x19c   : > { %2988 = vrot.lane.b32.xlu0 %v2902_v51, %s12155_s15  ;;  %v2868_v51 = vrot.slane %v8865_v4, 7 }
 0x19d   : > { %2994 = vrot.lane.b32.xlu1 %v2907_v50, %s12155_s15  ;;  %v8260_v50 = vld [vmem:[%s12078_s3 + $0x20] sm:$0xff]  }
 0x19e   : > { %v2869_v25 = vrot.slane %v2868_v51, 4 }
 0x1a0   : > { %v1790_v60 = vpop.permute.xlu0 %1789  ;;  %2992 = vrot.lane.b32.xlu0 %v2906_v41, %s12155_s15  ;;  %v2922_v41 = vrot.slane %v2920_v9, 4 }
 0x1a1   : > { %v1971_v23 = vsel %vm457_vm0, %v9095_v17, %v1790_v60  ;;  %2998 = vrot.lane.b32.xlu1 %v2911_v8, %s12155_s15  ;;  %v2872_v8 = vrot.slane %v2870_v22, 4 }
 0x1a2   : > { %v9751_v35 = vsel %vm2004_vm2, %v1971_v23, %v1935_v54  ;;  %v9802_v23 = vld [vmem:[#allocation2 + $0xd0] sm:$0xf] }
 0x1a3   : > { %7776 = vmatprep.mubr.msk.bf16.mxu1 %vm2102_vm3, %v9751_v35 }
 0x1a4   : > { %v1792_v58 = vpop.permute.xlu0 %1791  ;;  %2996 = vrot.lane.b32.xlu0 %v2908_v6, %s12155_s15  ;;  %v2921_v6 = vsel %vm9661_vm14, %v2919_v63, %v2920_v9  ;;  %v12225_v9 = vld [vmem:[#allocation12_spill] sm:$0xff] }
 0x1a5   : > { %v1973_v17 = vsel %vm457_vm0, %v9152_v32, %v1792_v58  ;;  %3002 = vrot.lane.b32.xlu1 %v2913_v48, %s12155_s15  ;;  %v2917_v32 = vrot.slane %v2915_v18, 4  ;;  %v2924_v48 = vrot.slane %v2923_v53, 4  ;;  %v12223_v18 = vld [vmem:[#allocation34_spill] sm:$0xff] }
 0x1a6   : > { %v9766_v1 = vsel %vm2004_vm2, %v1973_v17, %v1937_v55  ;;  %v2925_v55 = vrot.slane %v12223_v18, 7  ;;  %v12227_v18 = vld [vmem:[#allocation38_spill] sm:$0xff] }
 0x1a7   : > { %7777 = vmatmul.mubr.msk.bf16.vlgmr.msra.gmra.mrb[0].mxu1 %vm2102_vm3, %v9766_v1 }
 0x1a8   : > { %7809 = vmatpush3.bf16.msra.mxu1 %v9573_v16  ;;  %3000 = vrot.lane.b32.xlu0 %v2912_v24, %s12155_s15  ;;  %v8259_v16 = vld [vmem:[%s12078_s3 + $0x18] sm:$0xff]   ;;  %v2926_v24 = vsel %vm9661_vm14, %v2924_v48, %v2925_v55 }
 0x1a9   : > { %7810 = vmatprep.subr.bf16.mxu1 %v8256_v2  ;;  %3006 = vrot.lane.b32.xlu1 %v2917_v32, %s12155_s15  ;;  %v1796_v47 = vpop.permute.xlu1 %1795 }
 0x1aa   : > { %v1977_v4 = vsel %vm457_vm0, %v9212_v45, %v1796_v47  ;;  %v8261_v45 = vld [vmem:[%s12078_s3 + $0x28] sm:$0xff]   ;;  %v2875_v47 = vrot.slane %v12225_v9, 7 }
 0x1ab   : > { %v8286_v9 = vld [vmem:[%s12080_s5 + $0x68] sm:$0xff]  }
 0x1ac   : > { %7811 = vmatpush3.bf16.msra.mxu1 %v8256_v2  ;;  %3004 = vrot.lane.b32.xlu0 %v2916_v39, %s12155_s15  ;;  %v2871_v2 = vsel %vm9661_vm14, %v2869_v25, %v2870_v22 }
 0x1ad   : > { %7812 = vmatprep.subr.bf16.mxu1 %v8258_v61  ;;  %3010 = vrot.lane.b32.xlu1 %v2921_v6, %s12155_s15  ;;  %v2927_v6 = vrot.slane %v2925_v55, 4 }
 0x1af   : > { %v1794_v21 = vpop.permute.xlu0 %1793 }
 0x1b0   : > { %7813 = vmatpush3.bf16.msra.mxu1 %v8258_v61  ;;  %3008 = vrot.lane.b32.xlu0 %v2918_v5, %s12155_s15  ;;  %v1941_v3 = vpop.permute.xlu1 %1940  ;;  %v1975_v54 = vsel %vm457_vm0, %v9246_v0, %v1794_v21  ;;  %v1388_v0 = vld [vmem:[#allocation2 + $0xcc] sm:$0xf]  ;;  %v9825_v5 = vld [vmem:[%s12078_s3 + $0x60] sm:$0xff]   ;;  %v12224_v61 = vld [vmem:[#allocation9_spill] sm:$0xff] }
 0x1b1   : > { %7814 = vmatprep.subr.bf16.mxu1 %v8259_v16  ;;  %2948 = vrot.lane.b32.xlu1 %v2868_v51, %s12155_s15  ;;  %v9805_v58 = vsel %vm2004_vm2, %v1977_v4, %v1941_v3  ;;  %v9818_v17 = vcombine.low %v1388_v0, %v9802_v23  ;;  %v2873_v63 = vrot.slane %v12224_v61, 7 }
 0x1b3   : > { %v1939_v60 = vpop.permute.xlu0 %1938  ;;  %v1778_v32 = vshll.u32 %v9818_v17, 16  ;;  %v1776_v51 = vshrl.u32 %v9818_v17, 16  ;;  %v2874_v3 = vrot.slane %v2873_v63, 4 }
 0x1b4   : > { %v9800_v13 = vsel %vm2004_vm2, %v1975_v54, %v1939_v60  ;;  %7815 = vmatpush3.bf16.msra.mxu1 %v8259_v16  ;;  %3012 = vrot.lane.b32.xlu0 %v2922_v41, %s12155_s15  ;;  %v8277_v16 = vld [vmem:[%s12080_s5 + $0x50] sm:$0xff]   ;;  %v2877_v54 = vrot.slane %v2875_v47, 4  ;;  %v12226_v41 = vld [vmem:[#allocation39_spill] sm:$0xff] }
 0x1b5   : > { %7780 = vmatprep.mubr.msk.bf16.mxu1 %vm2102_vm3, %v9800_v13  ;;  %7816 = vmatprep.subr.bf16.mxu1 %v8260_v50  ;;  %v1780_v22 = vrot.slane %v1778_v32, 1  ;;  %v2876_v48 = vsel %vm9661_vm14, %v2874_v3, %v2875_v47  ;;  %v8283_v32 = vld [vmem:[%s12080_s5 + $0x60] sm:$0xff]   ;;  %v2932_v47 = vrot.slane %v2930_v15, 4  ;;  %v8294_v3 = vld [vmem:[%s12080_s5 + $0x78] sm:$0xff]  }
 0x1b6   : > { %7781 = vmatmul.mubr.msk.bf16.gmra.mrb[4].mxu1 %vm2102_vm3, %v9805_v58  ;;  %2952 = vrot.lane.b32.xlu1 %v2872_v8, %s12155_s15 }
 0x1b7   : > { %4714 = vmatpush1.bf16.msra.mxu0 %v8277_v16  ;;  %v1781_v25 = vor.u32 %v1780_v22, %v1776_v51  ;;  %v9891_v22 = vld [vmem:[#allocation3 + $0x10] sm:$0xf] }
 0x1b8   : > { %7817 = vmatpush3.bf16.msra.mxu1 %v8260_v50  ;;  %2950 = vrot.lane.b32.xlu0 %v2871_v2, %s12155_s15  ;;  %v1783_v50 = vshll.u32 %v8251_v29, 16 }
 0x1b9   : > { %7818 = vmatprep.subr.bf16.mxu1 %v8261_v45  ;;  %4715 = vmatprep.subr.bf16.mxu0 %v12221_v49 }
 0x1ba   : > { %3016 = vrot.lane.b32.xlu1 %v2926_v24, %s12155_s15  ;;  %v1785_v8 = vrot.slane %v1783_v50, 1  ;;  %v3144_v50 = vld [vmem:[#allocation3 + $0xc] sm:$0xf] }
 0x1bc   : > { %7819 = vmatpush3.bf16.msra.mxu1 %v8261_v45  ;;  %v1800_v39 = vpop.permute.xlu1 %1799  ;;  %3014 = vrot.lane.b32.xlu0 %v2923_v53, %s12155_s15  ;;  %v8282_v53 = vld [vmem:[%s12080_s5 + $0x58] sm:$0xff]   ;;  %v1425_v45 = vld [vmem:[#allocation2 + $0xcc] sm:$0xe] }
 0x1bd   : > { %7852 = vmatprep.subr.bf16.mxu1 %v9825_v5  ;;  %4716 = vmatpush1.bf16.msra.mxu0 %v8282_v53  ;;  %v1981_v55 = vsel %vm457_vm0, %v12227_v18, %v1800_v39  ;;  %v7093_v61 = vcombine.low %v1425_v45, %v9802_v23  ;;  %v1930_v23 = vrot.slane %v8251_v29, 1  ;;  %v12228_v39 = vld [vmem:[#allocation15_spill] sm:$0xff]  ;;  %v9900_v53 = vcombine.low %v3144_v50, %v9891_v22  ;;  %v8306_v50 = vld [vmem:[%s12080_s5 + $0x98] sm:$0xff]  }
 0x1be   : > { %2954 = vrot.lane.b32.xlu1 %v2873_v63, %s12155_s15  ;;  %4717 = vmatprep.subr.bf16.mxu0 %v12221_v49  ;;  %v1786_v63 = vsel %vm1570_vm11, %v1781_v25, %v1785_v8  ;;  %v2878_v16 = vrot.slane %v12228_v39, 7  ;;  %v12231_v8 = vld [vmem:[#allocation44_spill] sm:$0xff] }
 0x1bf   : > { %v1798_v21 = vpop.permute.xlu0 %1797 }
 0x1c0   : > { %3018 = vrot.lane.b32.xlu0 %v2927_v6, %s12155_s15  ;;  %v1945_v60 = vpop.permute.xlu1 %1944  ;;  %v1979_v4 = vsel %vm457_vm0, %v12226_v41, %v1798_v21  ;;  %v12229_v21 = vld [vmem:[#allocation20_spill] sm:$0xff]  ;;  %v2879_v26 = vrot.slane %v2878_v16, 4 }
 0x1c1   : > { %v9859_v24 = vsel %vm2004_vm2, %v1981_v55, %v1945_v60  ;;  %4718 = vmatpush1.bf16.msra.mxu0 %v8283_v32  ;;  %v2880_v51 = vrot.slane %v12229_v21, 7  ;;  %v12230_v60 = vld [vmem:[#allocation47_spill] sm:$0xff]  ;;  %v3437_v55 = vshll.u32 %v9900_v53, 16 }
 0x1c2   : > { %2958 = vrot.lane.b32.xlu1 %v2877_v54, %s12155_s15  ;;  %4719 = vmatprep.subr.bf16.mxu0 %v12221_v49 }
 0x1c3   : > { %v1943_v0 = vpop.permute.xlu0 %1942  ;;  %v2882_v29 = vrot.slane %v2880_v51, 4 }
 0x1c4   : > { %v9854_v2 = vsel %vm2004_vm2, %v1979_v4, %v1943_v0  ;;  %2956 = vrot.lane.b32.xlu0 %v2876_v48, %s12155_s15  ;;  %v2881_v4 = vsel %vm9661_vm14, %v2879_v26, %v2880_v51  ;;  %v8295_v48 = vld [vmem:[%s12080_s5 + $0x80] sm:$0xff]  }
 0x1c5   : > { %7784 = vmatprep.mubr.msk.bf16.mxu1 %vm2102_vm3, %v9854_v2  ;;  %4720 = vmatpush1.bf16.msra.mxu0 %v8286_v9  ;;  %v2937_v9 = vrot.slane %v2935_v19, 4  ;;  %v12232_v19 = vld [vmem:[#allocation51_spill] sm:$0xff]  ;;  %v12233_v51 = vld [vmem:[#allocation50_spill] sm:$0xff] }
 0x1c6   : > { %3022 = vrot.lane.b32.xlu1 %v9673_v46, %s12155_s15  ;;  %7785 = vmatmul.mubr.msk.bf16.gmra.mrb[8].mxu1 %vm2102_vm3, %v9859_v24  ;;  %v1929_v46 = vrot.slane %v7093_v61, 1  ;;  %v8298_v61 = vld [vmem:[%s12080_s5 + $0x88] sm:$0xff]  }
 0x1c7   : > { %4721 = vmatprep.subr.bf16.mxu0 %v12221_v49 }
 0x1c8   : > { %3020 = vrot.lane.b32.xlu0 %v2928_v44, %s12155_s15  ;;  %v1931_v44 = vsel %vm1877_vm10, %v1929_v46, %v1930_v23  ;;  %v3435_v46 = vshrl.u32 %v9900_v53, 16  ;;  %v3439_v23 = vrot.slane %v3437_v55, 1  ;;  %v12234_v55 = vld [vmem:[#allocation53_spill] sm:$0xff] }
 0x1c9   : > { %4722 = vmatpush1.bf16.msra.mxu0 %v8291_v31 }
 0x1ca   : > { %1821 = vrot.lane.b32.xlu1 %v1786_v63, %s8525_s14  ;;  %v1804_v6 = vpop.permute.xlu1 %1803  ;;  %4723 = vmatprep.subr.bf16.mxu0 %v12221_v49 }
 0x1cb   : > { %v1985_v0 = vsel %vm457_vm0, %v12231_v8, %v1804_v6  ;;  %v3440_v6 = vor.u32 %v3439_v23, %v3435_v46  ;;  %v4368_v8 = vrot.slane %v8257_v14, 2 }
 0x1cc   : > { %3024 = vrot.lane.b32.xlu0 %v2932_v47, %s12155_s15  ;;  %v3442_v47 = vshll.u32 %v9925_v20, 16 }
 0x1cd   : > { %4724 = vmatpush1.bf16.msra.mxu0 %v8294_v3 }
 0x1ce   : > { %2960 = vrot.lane.b32.xlu1 %v2878_v16, %s12155_s15  ;;  %4725 = vmatprep.subr.bf16.mxu0 %v12221_v49  ;;  %v3444_v21 = vrot.slane %v3442_v47, 1 }
 0x1cf   : > { %v1802_v15 = vpop.permute.xlu0 %1801  ;;  %v1949_v54 = vpop.permute.xlu1 %1948 }
 0x1d0   : > { %1966 = vrot.lane.b32.xlu0 %v1931_v44, %s8524_s30  ;;  %v1983_v41 = vsel %vm457_vm0, %v12230_v60, %v1802_v15  ;;  %v9917_v18 = vsel %vm2004_vm2, %v1985_v0, %v1949_v54  ;;  %v2942_v15 = vrot.slane %v2940_v62, 4  ;;  %v3952_v62 = vshll.u32 %v8257_v14, 16  ;;  %v3243_v60 = vld [vmem:[#allocation3 + $0xc] sm:$0xc] }
 0x1d1   : > { %4726 = vmatpush1.bf16.msra.mxu0 %v8295_v48  ;;  %v3766_v0 = vrot.slane %v9925_v20, 1 }
 0x1d2   : > { %2964 = vrot.lane.b32.xlu1 %v2882_v29, %s12155_s15  ;;  %4727 = vmatprep.subr.bf16.mxu0 %v12221_v49  ;;  %v3954_v48 = vrot.slane %v3952_v62, 2  ;;  %v12239_v62 = vld [vmem:[#allocation56_spill] sm:$0xff] }
 0x1d3   : > { %v1947_v25 = vpop.permute.xlu0 %1946 }
 0x1d4   : > { %2962 = vrot.lane.b32.xlu0 %v2881_v4, %s12155_s15  ;;  %v9911_v45 = vsel %vm2004_vm2, %v1983_v41, %v1947_v25  ;;  %v7266_v25 = vcombine.low %v3243_v60, %v9891_v22 }
 0x1d5   : > { %7788 = vmatprep.mubr.msk.bf16.mxu1 %vm2102_vm3, %v9911_v45  ;;  %4728 = vmatpush1.bf16.msra.mxu0 %v8298_v61 }
 0x1d6   : > { %3028 = vrot.lane.b32.xlu1 %v9690_v7, %s12155_s15  ;;  %7789 = vmatmul.mubr.msk.bf16.gmra.mrb[12].mxu1 %vm2102_vm3, %v9917_v18  ;;  %v3203_v7 = vld [vmem:[#allocation3 + $0xc] sm:$0xe]  ;;  %v4367_v61 = vrot.slane %v7266_v25, 2 }
 0x1d7   : > { %v1808_v32 = vpop.permute.xlu1 %1807  ;;  %v7226_v52 = vcombine.low %v3203_v7, %v9891_v22  ;;  %4729 = vmatprep.subr.bf16.mxu0 %v12221_v49 }
 0x1d8   : > { %3026 = vrot.lane.b32.xlu0 %v2933_v37, %s12155_s15  ;;  %v8302_v37 = vld [vmem:[%s12080_s5 + $0x90] sm:$0xff]   ;;  %v1989_v31 = vsel %vm457_vm0, %v12233_v51, %v1808_v32  ;;  %v9997_v23 = vsel %vm4363_vm4, %v4367_v61, %v4368_v8  ;;  %v8269_v8 = vld [vmem:[%s12078_s3 + $0x68] sm:$0xff]   ;;  %v8271_v61 = vld [vmem:[%s12078_s3 + $0x78] sm:$0xff]  }
 0x1d9   : > { %4730 = vmatpush1.bf16.msra.mxu0 %v8302_v37  ;;  %v3944_v29 = vshll.u32 %v7226_v52, 16  ;;  %v3765_v41 = vrot.slane %v7226_v52, 1  ;;  %12236 = vst [vmem:[#allocation34_spill] sm:$0xff] %v9997_v23  ;;  %7315 = vmatprep.mubr.msk.bf16.mxu0 %vm457_vm0, %v9997_v23 }
 0x1da   : > { %2968 = vrot.lane.b32.xlu1 %v9699_v40, %s12155_s15  ;;  %v1806_v63 = vpop.permute.xlu0 %1805  ;;  %4731 = vmatprep.subr.bf16.mxu0 %v12221_v49 }
 0x1db   : > { %v1953_v39 = vpop.permute.xlu1 %1952  ;;  %v1987_v40 = vsel %vm457_vm0, %v12232_v19, %v1806_v63  ;;  %v3946_v30 = vrot.slane %v3944_v29, 2  ;;  %v12235_v63 = vld [vmem:[#allocation52_spill] sm:$0xff]  ;;  %v3767_v47 = vsel %vm1877_vm10, %v3765_v41, %v3766_v0  ;;  %v12237_v19 = vld [vmem:[#allocation55_spill] sm:$0xff] }
 0x1dc   : > { %3030 = vrot.lane.b32.xlu0 %v2937_v9, %s12155_s15  ;;  %v9960_v33 = vsel %vm2004_vm2, %v1989_v31, %v1953_v39 }
 0x1dd   : > { %4732 = vmatpush1.bf16.msra.mxu0 %v8306_v50 }
 0x1de   : > { %3032 = vrot.lane.b32.xlu1 %v2938_v38, %s12155_s15  ;;  %v1951_v16 = vpop.permute.xlu0 %1950  ;;  %v3941_v38 = vshrl.u32 %v7226_v52, 16  ;;  %4937 = vmatprep.subr.bf16.mxu0 %v12221_v49  ;;  %v3955_v52 = vor.u32 %v3954_v48, %v3951_v34 }
 0x1df   : > { %v9955_v44 = vsel %vm2004_vm2, %v1987_v40, %v1951_v16  ;;  %v1812_v26 = vpop.permute.xlu1 %1811 }
 0x1e0   : > { %2966 = vrot.lane.b32.xlu0 %v2883_v59, %s12155_s15  ;;  %7792 = vmatprep.mubr.msk.bf16.mxu1 %vm2102_vm3, %v9955_v44  ;;  %v3445_v59 = vsel %vm1570_vm11, %v3440_v6, %v3444_v21  ;;  %v3943_v4 = vrot.slane %v3941_v38, 1  ;;  %v1993_v9 = vsel %vm457_vm0, %v12235_v63, %v1812_v26  ;;  %v12238_v6 = vld [vmem:[#allocation54_spill] sm:$0xff] }
 0x1e1   : > { %7793 = vmatmul.mubr.msk.bf16.gmra.mrb[16].mxu1 %vm2102_vm3, %v9960_v33 }
 0x1e2   : > { %3036 = vrot.lane.b32.xlu1 %v2942_v15, %s12155_s15  ;;  %v1810_v3 = vpop.permute.xlu0 %1809  ;;  %v3947_v39 = vor.u32 %v3946_v30, %v3943_v4  ;;  %v8270_v30 = vld [vmem:[%s12078_s3 + $0x70] sm:$0xff]  }
 0x1e3   : > { %v1957_v54 = vpop.permute.xlu1 %1956  ;;  %v1991_v32 = vsel %vm457_vm0, %v12234_v55, %v1810_v3 }
 0x1e4   : > { %2970 = vrot.lane.b32.xlu0 %v2887_v43, %s12155_s15  ;;  %v9990_v20 = vsel %vm2004_vm2, %v1993_v9, %v1957_v54 }
 0x1e6   : > { %3664 = vrot.lane.b32.xlu1 %v3445_v59, %s8525_s14  ;;  %v1955_v7 = vpop.permute.xlu0 %1954 }
 0x1e7   : > { %v9987_v22 = vsel %vm2004_vm2, %v1991_v32, %v1955_v7  ;;  %v1816_v46 = vpop.permute.xlu1 %1815 }
 0x1e8   : > { %3034 = vrot.lane.b32.xlu0 %v9710_v36, %s12155_s15  ;;  %7796 = vmatprep.mubr.msk.bf16.mxu1 %vm2102_vm3, %v9987_v22  ;;  %v3956_v36 = vsel %vm3922_vm5, %v3947_v39, %v3955_v52  ;;  %v1997_v21 = vsel %vm457_vm0, %v12238_v6, %v1816_v46 }
 0x1e9   : > { %7797 = vmatmul.mubr.msk.bf16.gmra.mrb[20].mxu1 %vm2102_vm3, %v9990_v20 }
 0x1ea   : > { %v1814_v37 = vpop.permute.xlu0 %1813 }
 0x1eb   : > { %v1961_v14 = vpop.permute.xlu1 %1960  ;;  %v1995_v40 = vsel %vm457_vm0, %v12237_v19, %v1814_v37 }
 0x1ec   : > { %3824 = vrot.lane.b32.xlu0 %v3767_v47, %s8524_s30  ;;  %v10014_v26 = vsel %vm2004_vm2, %v1997_v21, %v1961_v14  ;;  %v8274_v14 = vld [vmem:[%s12078_s3 + $0x80] sm:$0xff]  }
 0x1ee   : > { %v1959_v16 = vpop.permute.xlu0 %1958 }
 0x1ef   : > { %v10011_v51 = vsel %vm2004_vm2, %v1995_v40, %v1959_v16  ;;  %v1820_v31 = vpop.permute.xlu1 %1819 }
 0x1f0   : > { %4265 = vrot.lane.b32.xlu0 %v3956_v36, %s12155_s15  ;;  %7800 = vmatprep.mubr.msk.bf16.mxu1 %vm2102_vm3, %v10011_v51  ;;  %v2001_v50 = vsel %vm457_vm0, %v12239_v62, %v1820_v31 }
 0x1f1   : > { %7801 = vmatmul.mubr.msk.bf16.gmra.mrb[24].mxu1 %vm2102_vm3, %v10014_v26 }
 0x1f2   : > { %v1818_v15 = vpop.permute.xlu0 %1817 }
 0x1f3   : > { %v1965_v38 = vpop.permute.xlu1 %1964  ;;  %v1999_v29 = vsel %vm457_vm0, %v9612_v57, %v1818_v15 }
 0x1f4   : > { %v10029_v59 = vsel %vm2004_vm2, %v2001_v50, %v1965_v38 }
 0x1f5   : > { %12240 = vst [vmem:[#allocation9_spill] sm:$0xff] %v10029_v59 }
 0x1f6   : > { %v1963_v10 = vpop.permute.xlu0 %1962 }
 0x1f7   : > { %v10026_v3 = vsel %vm2004_vm2, %v1999_v29, %v1963_v10  ;;  %v1933_v43 = vpop.permute.xlu1 %1932 }
 0x1f8   : > { %7804 = vmatprep.mubr.msk.bf16.mxu1 %vm2102_vm3, %v10026_v3 }
 0x1f9   : > { %7805 = vmatmul.mubr.msk.bf16.gmra.mrb[28].mxu1 %vm2102_vm3, %v10029_v59 }
 0x1fa   : > { %v1788_v54 = vpop.permute.xlu0 %1787 }
 0x1fb   : > { %v1969_v57 = vsel %vm457_vm0, %v9628_v27, %v1788_v54  ;;  %v2975_v60 = vpop.permute.xlu1 %2974 }
 0x1fc   : > { %3107 = vst.msk [vmem:[#allocation3 + $0x4c] sm:$0xf] %vm715_vm6, %v2975_v60  ;;  %v2006_v41 = vsel %vm2004_vm2, %v1969_v57, %v1933_v43 }
 0x1fd   : > { %7820 = vmatprep.mubr.msk.bf16.mxu1 %vm2102_vm3, %v2006_v41 }
 0x1fe   : > { %v2973_v4 = vpop.permute.xlu0 %2972 }
 0x1ff   : > { %3106 = vst.msk [vmem:[#allocation3 + $0x48] sm:$0xe] %vm3093_vm7, %v2973_v4  ;;  %v2979_v25 = vpop.permute.xlu1 %2978 }
 0x200   : > { %3109 = vst.msk [vmem:[#allocation3 + $0x54] sm:$0xe] %vm3093_vm7, %v2979_v25 }
 0x201   : > { %7821 = vmatmul.mubr.msk.bf16.vlgmr.msra.gmra.mrb[0].mxu1 %vm2102_vm3, %v9751_v35 }
 0x202   : > { %7824 = vmatprep.mubr.msk.bf16.mxu1 %vm2102_vm3, %v9766_v1  ;;  %v2977_v27 = vpop.permute.xlu0 %2976  ;;  %7853 = vmatpush3.bf16.msra.mxu1 %v9825_v5 }
 0x203   : > { %3108 = vst.msk [vmem:[#allocation3 + $0x50] sm:$0x1] %vm718_vm1, %v2977_v27  ;;  %v2983_v0 = vpop.permute.xlu1 %2982  ;;  %7854 = vmatprep.subr.bf16.mxu1 %v8269_v8  ;;  %v10055_v34 = vld [vmem:[#allocation3 + $0x4c] sm:$0xf] }
 0x204   : > { %3111 = vst.msk [vmem:[#allocation3 + $0x5c] sm:$0x1] %vm718_vm1, %v2983_v0 }
 0x206   : > { %v2981_v48 = vpop.permute.xlu0 %2980  ;;  %v3208_v35 = vld [vmem:[#allocation3 + $0x48] sm:$0xe]  ;;  %7855 = vmatpush3.bf16.msra.mxu1 %v8269_v8  ;;  %v8278_v8 = vld [vmem:[%s12078_s3 + $0x88] sm:$0xff]  }
 0x207   : > { %v3154_v55 = vld [vmem:[#allocation3 + $0x48] sm:$0xf]  ;;  %3110 = vst.msk [vmem:[#allocation3 + $0x58] sm:$0xf] %vm715_vm6, %v2981_v48  ;;  %v2987_v32 = vpop.permute.xlu1 %2986  ;;  %v10059_v5 = vcombine.low %v3208_v35, %v10055_v34  ;;  %7856 = vmatprep.subr.bf16.mxu1 %v8270_v30  ;;  %v3209_v40 = vld [vmem:[#allocation3 + $0x54] sm:$0xe] }
 0x208   : > { %v10062_v7 = vcombine.low %v3154_v55, %v10055_v34  ;;  %3113 = vst.msk [vmem:[#allocation3 + $0x64] sm:$0xf] %vm715_vm6, %v2987_v32  ;;  %v10071_v9 = vld [vmem:[#allocation3 + $0x48] sm:$0xc]  ;;  %v3156_v31 = vld [vmem:[#allocation3 + $0x54] sm:$0xf] }
 0x209   : > { %7825 = vmatmul.mubr.msk.bf16.gmra.mrb[4].mxu1 %vm2102_vm3, %v9800_v13  ;;  %v4026_v39 = vshrl.u32 %v10059_v5, 16  ;;  %v3780_v36 = vrot.slane %v10059_v5, 1  ;;  %v4029_v50 = vshll.u32 %v10059_v5, 16  ;;  %v7271_v43 = vcombine.low %v10071_v9, %v10055_v34 }
 0x20a   : > { %12241 = vst [vmem:[#allocation12_spill] sm:$0xff] %v10062_v7  ;;  %v3497_v63 = vshll.u32 %v10062_v7, 16  ;;  %7828 = vmatprep.mubr.msk.bf16.mxu1 %vm2102_vm3, %v9805_v58  ;;  %v2985_v46 = vpop.permute.xlu0 %2984  ;;  %v8262_v47 = vld [vmem:[#allocation3 + $0x50] ss:$0 sps:$4 sm:$0x11]   ;;  %7857 = vmatpush3.bf16.msra.mxu1 %v8270_v30  ;;  %v3495_v21 = vshrl.u32 %v10062_v7, 16 }
 0x20b   : > { %3112 = vst.msk [vmem:[#allocation3 + $0x60] sm:$0xe] %vm3093_vm7, %v2985_v46  ;;  %v2991_v52 = vpop.permute.xlu1 %2990  ;;  %v8264_v37 = vld [vmem:[#allocation3 + $0x5c] ss:$0 sps:$4 sm:$0x11]   ;;  %7858 = vmatprep.subr.bf16.mxu1 %v8271_v61  ;;  %v3781_v19 = vrot.slane %v8262_v47, 1 }
 0x20c   : > { %3115 = vst.msk [vmem:[#allocation3 + $0x6c] sm:$0xe] %vm3093_vm7, %v2991_v52  ;;  %v3499_v16 = vrot.slane %v3497_v63, 1  ;;  %v3502_v6 = vshll.u32 %v8262_v47, 16  ;;  %v10084_v62 = vrot.slane %v4026_v39, 1  ;;  %v3784_v60 = vrot.slane %v8264_v37, 1 }
 0x20d   : > { %v8266_v15 = vld [vmem:[#allocation3 + $0x50] ss:$0 sps:$4 sm:$0x33]   ;;  %v3782_v29 = vsel %vm1877_vm10, %v3780_v36, %v3781_v19  ;;  %v8267_v25 = vld [vmem:[#allocation3 + $0x5c] ss:$0 sps:$4 sm:$0x33]  }
 0x20e   : > { %v2989_v38 = vpop.permute.xlu0 %2988  ;;  %v3157_v10 = vld [vmem:[#allocation3 + $0x58] sm:$0xf]  ;;  %7859 = vmatpush3.bf16.msra.mxu1 %v8271_v61  ;;  %3834 = vrot.lane.b32.xlu0 %v3782_v29, %s8524_s30  ;;  %v4034_v4 = vshrl.u32 %v8266_v15, 16  ;;  %v3500_v27 = vor.u32 %v3499_v16, %v3495_v21  ;;  %v3504_v0 = vrot.slane %v3502_v6, 1  ;;  %v3514_v30 = vshll.u32 %v8264_v37, 16 }
 0x20f   : > { %3114 = vst.msk [vmem:[#allocation3 + $0x68] sm:$0x1] %vm718_vm1, %v2989_v38  ;;  %v2995_v54 = vpop.permute.xlu1 %2994  ;;  %v7232_v57 = vcombine.low %v3209_v40, %v3157_v10  ;;  %v10091_v41 = vcombine.low %v3156_v31, %v3157_v10  ;;  %7860 = vmatprep.subr.bf16.mxu1 %v8274_v14  ;;  %v4037_v34 = vshll.u32 %v8266_v15, 16  ;;  %v4383_v32 = vrot.slane %v8266_v15, 2 }
 0x210   : > { %3117 = vst.msk [vmem:[#allocation3 + $0x74] sm:$0x1] %vm718_vm1, %v2995_v54  ;;  %v4036_v61 = vrot.slane %v4034_v4, 1  ;;  %v4051_v46 = vshrl.u32 %v8267_v25, 16  ;;  %v4054_v36 = vshll.u32 %v8267_v25, 16  ;;  %v4031_v19 = vrot.slane %v4029_v50, 2 }
 0x211   : > { %12242 = vst [vmem:[#allocation39_spill] sm:$0xff] %v10091_v41  ;;  %7829 = vmatmul.mubr.msk.bf16.gmra.mrb[8].mxu1 %vm2102_vm3, %v9854_v2  ;;  %v3783_v48 = vrot.slane %v7232_v57, 1  ;;  %v3507_v35 = vshrl.u32 %v10091_v41, 16  ;;  %v3509_v55 = vshll.u32 %v10091_v41, 16  ;;  %v4043_v63 = vshrl.u32 %v7232_v57, 16 }
 0x212   : > { %7832 = vmatprep.mubr.msk.bf16.mxu1 %vm2102_vm3, %v9859_v24  ;;  %v2993_v5 = vpop.permute.xlu0 %2992  ;;  %v4046_v9 = vshll.u32 %v7232_v57, 16  ;;  %7861 = vmatpush3.bf16.msra.mxu1 %v8274_v14  ;;  %v4039_v37 = vrot.slane %v4037_v34, 2  ;;  %v4382_v6 = vrot.slane %v7271_v43, 2  ;;  %v3516_v31 = vrot.slane %v3514_v30, 1  ;;  %v3159_v30 = vld [vmem:[#allocation3 + $0x64] sm:$0xf] }
 0x213   : > { %3116 = vst.msk [vmem:[#allocation3 + $0x70] sm:$0xf] %vm715_vm6, %v2993_v5  ;;  %v3785_v47 = vsel %vm1877_vm10, %v3783_v48, %v3784_v60  ;;  %v2999_v39 = vpop.permute.xlu1 %2998  ;;  %v3511_v52 = vrot.slane %v3509_v55, 1  ;;  %7862 = vmatprep.subr.bf16.mxu1 %v8278_v8  ;;  %v4045_v40 = vrot.slane %v4043_v63, 1  ;;  %v4053_v14 = vrot.slane %v4051_v46, 1 }
 0x214   : > { %3836 = vrot.lane.b32.xlu1 %v3785_v47, %s8524_s30  ;;  %3119 = vst.msk [vmem:[#allocation3 + $0x7c] sm:$0xf] %vm715_vm6, %v2999_v39  ;;  %v4048_v16 = vrot.slane %v4046_v9, 2  ;;  %v4056_v15 = vrot.slane %v4054_v36, 2  ;;  %v10108_v29 = vsel %vm4363_vm4, %v4382_v6, %v4383_v32  ;;  %v3505_v10 = vsel %vm1570_vm11, %v3500_v27, %v3504_v0  ;;  %v3158_v48 = vld [vmem:[#allocation3 + $0x60] sm:$0xf] }
 0x215   : > { %v3512_v21 = vor.u32 %v3511_v52, %v3507_v35  ;;  %12243 = vst [vmem:[#allocation38_spill] sm:$0xff] %v10108_v29  ;;  %v4040_v50 = vor.u32 %v4039_v37, %v4036_v61  ;;  %v4032_v43 = vor.u32 %v4031_v19, %v10084_v62  ;;  %v3210_v62 = vld [vmem:[#allocation3 + $0x60] sm:$0xe]  ;;  %v10138_v61 = vcombine.low %v3158_v48, %v3159_v30  ;;  %v3160_v52 = vld [vmem:[#allocation3 + $0x6c] sm:$0xf] }
 0x216   : > { %v2997_v38 = vpop.permute.xlu0 %2996  ;;  %7863 = vmatpush3.bf16.msra.mxu1 %v8278_v8  ;;  %v4049_v60 = vor.u32 %v4048_v16, %v4045_v40  ;;  %v4057_v4 = vor.u32 %v4056_v15, %v4053_v14  ;;  %v10130_v55 = vcombine.low %v3210_v62, %v3159_v30  ;;  %v10134_v32 = vld [vmem:[#allocation3 + $0x68] ss:$0 sps:$4 sm:$0x11]   ;;  %v3211_v40 = vld [vmem:[#allocation3 + $0x6c] sm:$0xe] }
 0x217   : > { %3118 = vst.msk [vmem:[#allocation3 + $0x78] sm:$0xe] %vm3093_vm7, %v2997_v38  ;;  %v3517_v54 = vsel %vm1570_vm11, %v3512_v21, %v3516_v31  ;;  %v3003_v57 = vpop.permute.xlu1 %3002  ;;  %8004 = vmatprep.subr.bf16.mxu1 %v12221_v49  ;;  %v4041_v8 = vsel %vm3922_vm5, %v4032_v43, %v4040_v50  ;;  %v10136_v5 = vld [vmem:[#allocation3 + $0x74] ss:$0 sps:$4 sm:$0x11]   ;;  %12244 = vst [vmem:[#allocation15_spill] sm:$0xff] %v10138_v61 }
 0x218   : > { %3674 = vrot.lane.b32.xlu1 %v3505_v10, %s8525_s14  ;;  %3676 = vrot.lane.b32.xlu0 %v3517_v54, %s8525_s14  ;;  %3121 = vst.msk [vmem:[#allocation3 + $0x84] sm:$0xe] %vm3093_vm7, %v3003_v57  ;;  %v4058_v27 = vsel %vm3922_vm5, %v4049_v60, %v4057_v4  ;;  %v8284_v47 = vld [vmem:[#allocation3 + $0x74] ss:$0 sps:$4 sm:$0x33]   ;;  %v4060_v39 = vshrl.u32 %v10130_v55, 16 }
 0x219   : > { %7833 = vmatmul.mubr.msk.bf16.gmra.mrb[12].mxu1 %vm2102_vm3, %v9911_v45  ;;  %v3521_v37 = vshll.u32 %v10138_v61, 16  ;;  %v3786_v19 = vrot.slane %v10130_v55, 1  ;;  %v3519_v6 = vshrl.u32 %v10138_v61, 16  ;;  %v3526_v21 = vshll.u32 %v10134_v32, 16 }
 0x21a   : > { %7836 = vmatprep.mubr.msk.bf16.mxu1 %vm2102_vm3, %v9917_v18  ;;  %v3001_v25 = vpop.permute.xlu0 %3000  ;;  %v3161_v46 = vld [vmem:[#allocation3 + $0x70] sm:$0xf]  ;;  %v3787_v14 = vrot.slane %v10134_v32, 1  ;;  %v3538_v38 = vshll.u32 %v10136_v5, 16  ;;  %v4063_v10 = vshll.u32 %v10130_v55, 16  ;;  %v4085_v57 = vshrl.u32 %v8284_v47, 16 }
 0x21b   : > { %3120 = vst.msk [vmem:[#allocation3 + $0x80] sm:$0x1] %vm718_vm1, %v3001_v25  ;;  %v3007_v0 = vpop.permute.xlu1 %3006  ;;  %v10147_v16 = vcombine.low %v3160_v52, %v3161_v46  ;;  %v10153_v15 = vcombine.low %v3211_v40, %v3161_v46  ;;  %v4088_v50 = vshll.u32 %v8284_v47, 16  ;;  %v10159_v60 = vrot.slane %v4060_v39, 1  ;;  %v3163_v25 = vld [vmem:[#allocation3 + $0x7c] sm:$0xf] }
 0x21c   : > { %4275 = vrot.lane.b32.xlu1 %v4041_v8, %s12155_s15  ;;  %4277 = vrot.lane.b32.xlu0 %v4058_v27, %s12155_s15  ;;  %3123 = vst.msk [vmem:[#allocation3 + $0x8c] sm:$0x1] %vm718_vm1, %v3007_v0  ;;  %v3523_v43 = vrot.slane %v3521_v37, 1  ;;  %v8285_v4 = vld [vmem:[#allocation3 + $0x68] ss:$0 sps:$4 sm:$0x33]  }
 0x21d   : > { %12245 = vst [vmem:[#allocation20_spill] sm:$0xff] %v10147_v16  ;;  %v3533_v27 = vshll.u32 %v10147_v16, 16  ;;  %v10166_v0 = vrot.slane %v3526_v21, 1  ;;  %v4077_v32 = vshrl.u32 %v10153_v15, 16  ;;  %v4080_v46 = vshll.u32 %v10153_v15, 16 }
 0x21e   : > { %v3005_v34 = vpop.permute.xlu0 %3004  ;;  %v3212_v30 = vld [vmem:[#allocation3 + $0x78] sm:$0xe]  ;;  %v10178_v47 = vrot.slane %v4085_v57, 1  ;;  %v10180_v39 = vrot.slane %v4088_v50, 2  ;;  %v4068_v52 = vshrl.u32 %v8285_v4, 16  ;;  %v4071_v37 = vshll.u32 %v8285_v4, 16 }
 0x21f   : > { %3122 = vst.msk [vmem:[#allocation3 + $0x88] sm:$0xf] %vm715_vm6, %v3005_v34  ;;  %v3011_v35 = vpop.permute.xlu1 %3010  ;;  %v3162_v62 = vld [vmem:[#allocation3 + $0x78] sm:$0xf]  ;;  %v10186_v21 = vld [vmem:[#allocation3 + $0x4] sm:$0xf] }
 0x220   : > { %3125 = vst.msk [vmem:[#allocation3 + $0x94] sm:$0xf] %vm715_vm6, %v3011_v35  ;;  %v10170_v35 = vrot.slane %v3538_v38, 1  ;;  %v10184_v40 = vcombine.low %v3162_v62, %v3163_v25  ;;  %12246 = vst [vmem:[#allocation47_spill] sm:$0xff] %v10186_v21  ;;  %v10193_v50 = vrot.slane %v4077_v32, 1 }
 0x221   : > { %7837 = vmatmul.mubr.msk.bf16.gmra.mrb[16].mxu1 %vm2102_vm3, %v9955_v44  ;;  %v3164_v12 = vld [vmem:[#allocation3 + $0x84] sm:$0xf] }
 0x222   : > { %7840 = vmatprep.mubr.msk.bf16.mxu1 %vm2102_vm3, %v9960_v33  ;;  %v3009_v63 = vpop.permute.xlu0 %3008 }
 0x223   : > { %3124 = vst.msk [vmem:[#allocation3 + $0x90] sm:$0xe] %vm3093_vm7, %v3009_v63  ;;  %v2949_v9 = vpop.permute.xlu1 %2948  ;;  %v10173_v63 = vrot.slane %v4063_v10, 2  ;;  %v10188_v10 = vrot.slane %v3533_v27, 1  ;;  %v10204_v27 = vrot.slane %v4071_v37, 2 }
 0x224   : > { %3094 = vst.msk [vmem:[#allocation3 + $0x18] sm:$0xe] %vm3093_vm7, %v2949_v9  ;;  %v10215_v48 = vld [vmem:[#allocation3 + $0x8c] ss:$0 sps:$4 sm:$0x11]  }
 0x226   : > { %v3013_v36 = vpop.permute.xlu0 %3012  ;;  %v3165_v55 = vld [vmem:[#allocation3 + $0x88] sm:$0xf] }
 0x227   : > { %3126 = vst.msk [vmem:[#allocation3 + $0x98] sm:$0x1] %vm718_vm1, %v3013_v36  ;;  %v10182_v36 = vcombine.low %v3212_v30, %v3163_v25  ;;  %v10198_v25 = vrot.slane %v4080_v46, 2  ;;  %v10202_v30 = vrot.slane %v4068_v52, 1  ;;  %v3788_v46 = vsel %vm1877_vm10, %v3786_v19, %v3787_v14 }
 0x228   : > { %v2953_v31 = vpop.permute.xlu1 %2952  ;;  %v3524_v52 = vor.u32 %v3523_v43, %v3519_v6  ;;  %v3545_v19 = vshll.u32 %v10184_v40, 16  ;;  %v10234_v28 = vcombine.low %v3164_v12, %v3165_v55  ;;  %v3562_v12 = vshll.u32 %v10215_v48, 16 }
 0x229   : > { %3096 = vst.msk [vmem:[#allocation3 + $0x20] sm:$0x1] %vm718_vm1, %v2953_v31  ;;  %7841 = vmatmul.mubr.msk.bf16.gmra.mrb[20].mxu1 %vm2102_vm3, %v9987_v22  ;;  %v3202_v31 = vld [vmem:[#allocation3] sm:$0xe] }
 0x22a   : > { %7844 = vmatprep.mubr.msk.bf16.mxu1 %vm2102_vm3, %v9990_v20  ;;  %v2951_v8 = vpop.permute.xlu0 %2950  ;;  %v10218_v37 = vcombine.low %v3202_v31, %v10186_v21  ;;  %v3213_v31 = vld [vmem:[#allocation3 + $0x84] sm:$0xe]  ;;  %v3214_v59 = vld [vmem:[#allocation3 + $0x90] sm:$0xe] }
 0x22b   : > { %3095 = vst.msk [vmem:[#allocation3 + $0x1c] sm:$0xf] %vm715_vm6, %v2951_v8  ;;  %v10190_v8 = vld [vmem:[#allocation3 + $0x80] ss:$0 sps:$4 sm:$0x11]   ;;  %v10232_v7 = vcombine.low %v3213_v31, %v3165_v55 }
 0x22c   : > { %v3017_v34 = vpop.permute.xlu1 %3016  ;;  %v3204_v42 = vld [vmem:[#allocation3 + $0x18] sm:$0xe]  ;;  %12247 = vst [vmem:[#allocation44_spill] sm:$0xff] %v10218_v37 }
 0x22d   : > { %3128 = vst.msk [vmem:[#allocation3 + $0xa0] sm:$0xf] %vm715_vm6, %v3017_v34  ;;  %v3146_v11 = vld [vmem:[#allocation3 + $0x18] sm:$0xf]  ;;  %v4111_v31 = vshrl.u32 %v10232_v7, 16 }
 0x22e   : > { %v3015_v38 = vpop.permute.xlu0 %3014 }
 0x22f   : > { %3127 = vst.msk [vmem:[#allocation3 + $0x9c] sm:$0xe] %vm3093_vm7, %v3015_v38 }
 0x230   : > { %v2955_v57 = vpop.permute.xlu1 %2954  ;;  %v8272_v34 = vld [vmem:[#allocation3 + $0x20] ss:$0 sps:$4 sm:$0x11]  }
 0x231   : > { %3097 = vst.msk [vmem:[#allocation3 + $0x24] sm:$0xe] %vm3093_vm7, %v2955_v57  ;;  %v10196_v4 = vld [vmem:[#allocation3 + $0x20] ss:$0 sps:$4 sm:$0x33]   ;;  %7845 = vmatmul.mubr.msk.bf16.gmra.mrb[24].mxu1 %vm2102_vm3, %v10011_v51  ;;  %v3769_v6 = vrot.slane %v8272_v34, 1 }
 0x232   : > { %7848 = vmatprep.mubr.msk.bf16.mxu1 %vm2102_vm3, %v10014_v26  ;;  %v3019_v32 = vpop.permute.xlu0 %3018  ;;  %v10210_v57 = vld [vmem:[#allocation3 + $0x1c] sm:$0xf]  ;;  %v3454_v14 = vshll.u32 %v8272_v34, 16  ;;  %v3966_v43 = vshrl.u32 %v10196_v4, 16  ;;  %v4094_v34 = vshrl.u32 %v10182_v36, 16 }
 0x233   : > { %3129 = vst.msk [vmem:[#allocation3 + $0xa4] sm:$0x1] %vm718_vm1, %v3019_v32  ;;  %v7227_v38 = vcombine.low %v3204_v42, %v10210_v57  ;;  %v10223_v54 = vcombine.low %v3146_v11, %v10210_v57  ;;  %v3550_v32 = vshll.u32 %v10190_v8, 16  ;;  %v3969_v11 = vshll.u32 %v10196_v4, 16 }
 0x234   : > { %v2959_v62 = vpop.permute.xlu1 %2958 }
 0x235   : > { %12248 = vst [vmem:[#allocation51_spill] sm:$0xff] %v10223_v54  ;;  %3099 = vst.msk [vmem:[#allocation3 + $0x2c] sm:$0x1] %vm718_vm1, %v2959_v62  ;;  %v3768_v23 = vrot.slane %v7227_v38, 1  ;;  %v3449_v42 = vshll.u32 %v10223_v54, 16  ;;  %v3958_v61 = vshrl.u32 %v7227_v38, 16 }
 0x236   : > { %v2957_v9 = vpop.permute.xlu0 %2956  ;;  %v3961_v41 = vshll.u32 %v7227_v38, 16  ;;  %v3447_v37 = vshrl.u32 %v10223_v54, 16  ;;  %v3971_v54 = vrot.slane %v3969_v11, 2  ;;  %v10260_v11 = vld [vmem:[#allocation3 + $0x94] sm:$0xf] }
 0x237   : > { %3098 = vst.msk [vmem:[#allocation3 + $0x28] sm:$0xf] %vm715_vm6, %v2957_v9  ;;  %v3770_v62 = vsel %vm1877_vm10, %v3768_v23, %v3769_v6  ;;  %v3451_v29 = vrot.slane %v3449_v42, 1  ;;  %v3960_v21 = vrot.slane %v3958_v61, 1  ;;  %v3456_v9 = vrot.slane %v3454_v14, 1 }
 0x238   : > { %v3023_v56 = vpop.permute.xlu1 %3022  ;;  %3826 = vrot.lane.b32.xlu0 %v3770_v62, %s8524_s30  ;;  %v3963_v38 = vrot.slane %v3961_v41, 2  ;;  %v3968_v6 = vrot.slane %v3966_v43, 1  ;;  %v8296_v42 = vld [vmem:[#allocation3 + $0x8c] ss:$0 sps:$4 sm:$0x33]   ;;  %v3547_v41 = vrot.slane %v3545_v19, 1  ;;  %v3529_v14 = vsel %vm1570_vm11, %v3524_v52, %v10166_v0 }
 0x239   : > { %3131 = vst.msk [vmem:[#allocation3 + $0xac] sm:$0xf] %vm715_vm6, %v3023_v56  ;;  %7849 = vmatmul.mubr.msk.bf16.gmra.mrb[28].mxu1 %vm2102_vm3, %v10026_v3  ;;  %v3452_v23 = vor.u32 %v3451_v29, %v3447_v37  ;;  %v3557_v56 = vshll.u32 %v10234_v28, 16  ;;  %v10250_v62 = vrot.slane %v3550_v32, 1  ;;  %v12249_v19 = vshrl.u32 %v10147_v16, 16 }
 0x23a   : > { %7864 = vmatprep.mubr.msk.bf16.mxu1 %vm2102_vm3, %v9766_v1  ;;  %v3021_v61 = vpop.permute.xlu0 %3020  ;;  %v3964_v37 = vor.u32 %v3963_v38, %v3960_v21  ;;  %v4114_v1 = vshll.u32 %v10232_v7, 16  ;;  %v8297_v43 = vld [vmem:[#allocation3 + $0x80] ss:$0 sps:$4 sm:$0x33]   ;;  %v10269_v21 = vrot.slane %v3562_v12, 1  ;;  %v10271_v38 = vrot.slane %v4094_v34, 1 }
 0x23b   : > { %3130 = vst.msk [vmem:[#allocation3 + $0xa8] sm:$0xe] %vm3093_vm7, %v3021_v61  ;;  %v3457_v55 = vsel %vm1570_vm11, %v3452_v23, %v3456_v9  ;;  %v3536_v32 = vor.u32 %v10188_v10, %v12249_v19  ;;  %v4083_v23 = vor.u32 %v10198_v25, %v10193_v50  ;;  %v3972_v0 = vor.u32 %v3971_v54, %v3968_v6  ;;  %v3148_v25 = vld [vmem:[#allocation3 + $0x24] sm:$0xf] }
 0x23c   : > { %v10255_v29 = vpop.permute.xlu1 %1821  ;;  %3838 = vrot.lane.b32.xlu0 %v3788_v46, %s8524_s30  ;;  %3666 = vrot.lane.b32.xlu1 %v3457_v55, %s8525_s14  ;;  %v3555_v52 = vshrl.u32 %v10234_v28, 16  ;;  %v4119_v9 = vshrl.u32 %v8296_v42, 16  ;;  %v4122_v61 = vshll.u32 %v8296_v42, 16  ;;  %v12250_v55 = vrot.slane %v10136_v5, 1 }
 0x23d   : > { %v12251_v16 = vrot.slane %v10153_v15, 1  ;;  %v4091_v50 = vor.u32 %v10180_v39, %v10178_v47  ;;  %v3559_v34 = vrot.slane %v3557_v56, 1  ;;  %v10283_v54 = vrot.slane %v4111_v31, 1  ;;  %v10299_v56 = vld [vmem:[#allocation3 + $0xa0] sm:$0xf] }
 0x23e   : > { %v3025_v46 = vpop.permute.xlu0 %3024  ;;  %v10281_v12 = vld [vmem:[#allocation3 + $0x28] sm:$0xf]  ;;  %v3973_v6 = vsel %vm3922_vm5, %v3964_v37, %v3972_v0  ;;  %v10290_v15 = vrot.slane %v4114_v1, 2  ;;  %v3541_v47 = vsel %vm1570_vm11, %v3536_v32, %v10170_v35  ;;  %v4066_v39 = vor.u32 %v10173_v63, %v10159_v60  ;;  %v10304_v1 = vld [vmem:[#allocation3 + $0x98] ss:$0 sps:$4 sm:$0x33]  }
 0x23f   : > { %v3791_v10 = vsel %vm1877_vm10, %v12251_v16, %v12250_v55  ;;  %3132 = vst.msk [vmem:[#allocation3 + $0xb0] sm:$0x1] %vm718_vm1, %v3025_v46  ;;  %v10288_v5 = vcombine.low %v3148_v25, %v10281_v12  ;;  %v4102_v16 = vshrl.u32 %v8297_v43, 16  ;;  %v4105_v31 = vshll.u32 %v8297_v43, 16  ;;  %v3215_v32 = vld [vmem:[#allocation3 + $0x9c] sm:$0xe] }
 0x240   : > { %v2961_v42 = vpop.permute.xlu1 %2960  ;;  %4267 = vrot.lane.b32.xlu0 %v3973_v6, %s12155_s15  ;;  %3840 = vrot.lane.b32.xlu1 %v3791_v10, %s8524_s30  ;;  %v10302_v37 = vcombine.low %v3214_v59, %v10260_v11  ;;  %v4092_v19 = vsel %vm3922_vm5, %v4083_v23, %v4091_v50  ;;  %v4074_v0 = vor.u32 %v10204_v27, %v10202_v30  ;;  %v10311_v35 = vld [vmem:[#allocation3 + $0x2c] ss:$0 sps:$4 sm:$0x11]   ;;  %v12252_v63 = vshrl.u32 %v10184_v40, 16  ;;  %v8403_v27 = vld [vmem:[%s12080_s5 + $0x50] sm:$0xff]  }
 0x241   : > { %3100 = vst.msk [vmem:[#allocation3 + $0x30] sm:$0xe] %vm3093_vm7, %v2961_v42  ;;  %7865 = vmatmul.mubr.msk.bf16.vlgmr.msra.gmra.mrb[0].mxu1 %vm2102_vm3, %v9800_v13  ;;  %v3461_v60 = vshll.u32 %v10288_v5, 16  ;;  %v3795_v13 = vrot.slane %v10232_v7, 1  ;;  %v4121_v46 = vrot.slane %v4119_v9, 1  ;;  %v4124_v23 = vrot.slane %v4122_v61, 2 }
 0x242   : > { %v3548_v43 = vor.u32 %v3547_v41, %v12252_v63  ;;  %7868 = vmatprep.mubr.msk.bf16.mxu1 %vm2102_vm3, %v9805_v58  ;;  %v10318_v59 = vpop.permute.xlu0 %1966  ;;  %v12253_v55 = vshll.u32 %v10182_v36, 16  ;;  %8014 = vmatpush1.bf16.msra.mxu1 %v8403_v27  ;;  %v3560_v50 = vor.u32 %v3559_v34, %v3555_v52  ;;  %v4117_v58 = vor.u32 %v10290_v15, %v10283_v54  ;;  %v3166_v34 = vld [vmem:[#allocation3 + $0x90] sm:$0xf]  ;;  %v3168_v15 = vld [vmem:[#allocation3 + $0x9c] sm:$0xf] }
 0x243   : > { %v3463_v10 = vrot.slane %v3461_v60, 1  ;;  %v10330_v25 = vrot.slane %v4102_v16, 1  ;;  %8005 = vmatprep.subr.bf16.mxu1 %v12221_v49  ;;  %v10336_v7 = vrot.slane %v4105_v31, 2  ;;  %v10339_v9 = vcombine.low %v3215_v32, %v10299_v56  ;;  %v3205_v32 = vld [vmem:[#allocation3 + $0x24] sm:$0xe] }
 0x244   : > { %v10323_v30 = vrot.slane %v12253_v55, 2  ;;  %v2965_v41 = vpop.permute.xlu1 %2964  ;;  %3680 = vrot.lane.b32.xlu0 %v3541_v47, %s8525_s14  ;;  %3678 = vrot.lane.b32.xlu1 %v3529_v14, %s8525_s14  ;;  %v4128_v52 = vshrl.u32 %v10302_v37, 16  ;;  %v4131_v61 = vshll.u32 %v10302_v37, 16  ;;  %v3459_v54 = vshrl.u32 %v10288_v5, 16 }
 0x245   : > { %3102 = vst.msk [vmem:[#allocation3 + $0x38] sm:$0x1] %vm718_vm1, %v2965_v41  ;;  %v3466_v6 = vshll.u32 %v10311_v35, 16  ;;  %v4136_v42 = vshrl.u32 %v10304_v1, 16  ;;  %v4139_v14 = vshll.u32 %v10304_v1, 16  ;;  %v4075_v47 = vsel %vm3922_vm5, %v4066_v39, %v4074_v0  ;;  %v8404_v41 = vld [vmem:[%s12080_s5 + $0x58] sm:$0xff]  }
 0x246   : > { %v2963_v16 = vpop.permute.xlu0 %2962  ;;  %v12254_v31 = vrot.slane %v10190_v8, 1  ;;  %v12255_v60 = vrot.slane %v10182_v36, 1  ;;  %v10355_v55 = vsel %vm1570_vm11, %v3548_v43, %v10250_v62  ;;  %v4125_v27 = vor.u32 %v4124_v23, %v4121_v46  ;;  %8015 = vmatpush1.bf16.msra.mxu1 %v8404_v41  ;;  %v10371_v43 = vld [vmem:[#allocation3 + $0xa4] ss:$0 sps:$4 sm:$0x33]  }
 0x247   : > { %3101 = vst.msk [vmem:[#allocation3 + $0x34] sm:$0xf] %vm715_vm6, %v2963_v16  ;;  %v3464_v0 = vor.u32 %v3463_v10, %v3459_v54  ;;  %v10362_v8 = vcombine.low %v3205_v32, %v10281_v12  ;;  %v12256_v36 = vrot.slane %v10215_v48, 1  ;;  %v4100_v62 = vor.u32 %v10323_v30, %v10271_v38  ;;  %8006 = vmatprep.subr.bf16.mxu1 %v12221_v49  ;;  %v3244_v32 = vld [vmem:[#allocation3 + $0x18] sm:$0xc] }
 0x248   : > { %v3794_v63 = vsel %vm1877_vm10, %v12255_v60, %v12254_v31  ;;  %v3029_v39 = vpop.permute.xlu1 %3028  ;;  %4281 = vrot.lane.b32.xlu0 %v4092_v19, %s12155_s15  ;;  %4279 = vrot.lane.b32.xlu1 %v4075_v47, %s12155_s15  ;;  %v10379_v46 = vsel %vm1570_vm11, %v3560_v50, %v10269_v21  ;;  %v10382_v48 = vsel %vm3922_vm5, %v4117_v58, %v4125_v27  ;;  %v3468_v19 = vrot.slane %v3466_v6, 1  ;;  %v10396_v21 = vld [vmem:[#allocation3 + $0x90] sm:$0xc]  ;;  %v10410_v6 = vld [vmem:[#allocation3 + $0x2c] ss:$0 sps:$4 sm:$0x33]  }
 0x249   : > { %v10367_v31 = vsel %vm1877_vm10, %v3795_v13, %v12256_v36  ;;  %3134 = vst.msk [vmem:[#allocation3 + $0xb8] sm:$0xf] %vm715_vm6, %v3029_v39  ;;  %v4145_v13 = vshrl.u32 %v10339_v9, 16  ;;  %v10386_v38 = vcombine.low %v3166_v34, %v10260_v11  ;;  %7869 = vmatmul.mubr.msk.bf16.gmra.mrb[4].mxu1 %vm2102_vm3, %v9854_v2  ;;  %v4148_v23 = vshll.u32 %v10339_v9, 16 }
 0x24a   : > { %v10391_v30 = vrot.slane %v4128_v52, 1  ;;  %v10394_v10 = vcombine.low %v3168_v15, %v10299_v56  ;;  %7872 = vmatprep.mubr.msk.bf16.mxu1 %vm2102_vm3, %v9859_v24  ;;  %v3027_v50 = vpop.permute.xlu0 %3026  ;;  %v4108_v58 = vor.u32 %v10336_v7, %v10330_v25  ;;  %v10402_v34 = vrot.slane %v4131_v61, 2  ;;  %v10408_v52 = vld [vmem:[#allocation3 + $0x98] ss:$0 sps:$4 sm:$0x11]   ;;  %v8405_v15 = vld [vmem:[%s12080_s5 + $0x60] sm:$0xff]  }
 0x24b   : > { %12257 = vst [vmem:[#allocation50_spill] sm:$0xff] %v10386_v38  ;;  %v10404_v2 = vrot.slane %v4136_v42, 1  ;;  %v10406_v54 = vrot.slane %v4139_v14, 2  ;;  %8016 = vmatpush1.bf16.msra.mxu1 %v8405_v15  ;;  %3133 = vst.msk [vmem:[#allocation3 + $0xb4] sm:$0xe] %vm3093_vm7, %v3027_v50  ;;  %v3469_v24 = vsel %vm1570_vm11, %v3464_v0, %v3468_v19  ;;  %v3771_v7 = vrot.slane %v10362_v8, 1 }
 0x24c   : > { %12258 = vst [vmem:[#allocation53_spill] sm:$0xff] %v10394_v10  ;;  %v2969_v25 = vpop.permute.xlu1 %2968  ;;  %v4153_v61 = vshrl.u32 %v10371_v43, 16  ;;  %v4156_v42 = vshll.u32 %v10371_v43, 16  ;;  %8007 = vmatprep.subr.bf16.mxu1 %v12221_v49  ;;  %3842 = vrot.lane.b32.xlu0 %v3794_v63, %s8524_s30  ;;  %v10424_v14 = vrot.slane %v4145_v13, 1  ;;  %v3798_v16 = vrot.slane %v10302_v37, 1  ;;  %v8406_v15 = vld [vmem:[%s12080_s5 + $0x68] sm:$0xff]  }
 0x24d   : > { %3668 = vrot.lane.b32.xlu1 %v3469_v24, %s8525_s14  ;;  %3104 = vst.msk [vmem:[#allocation3 + $0x40] sm:$0xf] %vm715_vm6, %v2969_v25  ;;  %v3975_v47 = vshrl.u32 %v10362_v8, 16  ;;  %v3978_v60 = vshll.u32 %v10362_v8, 16  ;;  %v3772_v27 = vrot.slane %v10311_v35, 1  ;;  %v10430_v41 = vrot.slane %v4148_v23, 2 }
 0x24e   : > { %v10432_v39 = vld [vmem:[#allocation3 + $0xa4] ss:$0 sps:$4 sm:$0x11]   ;;  %v3581_v63 = vshll.u32 %v10394_v10, 16  ;;  %v3031_v36 = vpop.permute.xlu0 %3030  ;;  %v10438_v13 = vsel %vm3922_vm5, %v4100_v62, %v4108_v58  ;;  %v3983_v8 = vshrl.u32 %v10410_v6, 16  ;;  %v3986_v35 = vshll.u32 %v10410_v6, 16 }
 0x24f   : > { %v10444_v23 = vld [vmem:[#allocation3 + $0xac] sm:$0xf]  ;;  %v3216_v50 = vld [vmem:[#allocation3 + $0xa8] sm:$0xe]  ;;  %8017 = vmatpush1.bf16.msra.mxu1 %v8406_v15  ;;  %3135 = vst.msk [vmem:[#allocation3 + $0xbc] sm:$0x1] %vm718_vm1, %v3031_v36  ;;  %v3773_v62 = vsel %vm1877_vm10, %v3771_v7, %v3772_v27  ;;  %v7267_v0 = vcombine.low %v3244_v32, %v10210_v57  ;;  %v10510_v37 = vsel %vm457_vm0, %v9818_v17, %v10255_v29 }
 0x250   : > { %v3033_v58 = vpop.permute.xlu1 %3032  ;;  %v4155_v24 = vrot.slane %v4153_v61, 1  ;;  %v4158_v25 = vrot.slane %v4156_v42, 2  ;;  %8008 = vmatprep.subr.bf16.mxu1 %v12221_v49  ;;  %3828 = vrot.lane.b32.xlu0 %v3773_v62, %s8524_s30  ;;  %v3799_v15 = vrot.slane %v10408_v52, 1  ;;  %v3977_v19 = vrot.slane %v3975_v47, 1 }
 0x251   : > { %3844 = vrot.lane.b32.xlu1 %v10367_v31, %s8524_s30  ;;  %3136 = vst.msk [vmem:[#allocation3 + $0xc0] sm:$0xe] %vm3093_vm7, %v3033_v58  ;;  %v3980_v36 = vrot.slane %v3978_v60, 2  ;;  %v3569_v7 = vshll.u32 %v10386_v38, 16  ;;  %7873 = vmatmul.mubr.msk.bf16.gmra.mrb[8].mxu1 %vm2102_vm3, %v9911_v45  ;;  %v3801_v57 = vrot.slane %v10339_v9, 1  ;;  %v3583_v61 = vrot.slane %v3581_v63, 1 }
 0x252   : > { %v3586_v42 = vshll.u32 %v10432_v39, 16  ;;  %v10464_v32 = vcombine.low %v3216_v50, %v10444_v23  ;;  %7876 = vmatprep.mubr.msk.bf16.mxu1 %vm2102_vm3, %v9917_v18  ;;  %v2967_v31 = vpop.permute.xlu0 %2966  ;;  %v4151_v47 = vor.u32 %v10430_v41, %v10424_v14  ;;  %v4142_v60 = vor.u32 %v10406_v54, %v10404_v2  ;;  %v8407_v9 = vld [vmem:[%s12080_s5 + $0x70] sm:$0xff]  }
 0x253   : > { %v3985_v27 = vrot.slane %v3983_v8, 1  ;;  %v3988_v45 = vrot.slane %v3986_v35, 2  ;;  %8018 = vmatpush1.bf16.msra.mxu1 %v8407_v9  ;;  %3103 = vst.msk [vmem:[#allocation3 + $0x3c] sm:$0xe] %vm3093_vm7, %v2967_v31  ;;  %v4159_v50 = vor.u32 %v4158_v25, %v4155_v24  ;;  %v3802_v18 = vrot.slane %v10432_v39, 1 }
 0x254   : > { %v3037_v63 = vpop.permute.xlu1 %3036  ;;  %v3579_v62 = vshrl.u32 %v10394_v10, 16  ;;  %v4370_v58 = vrot.slane %v7267_v0, 2  ;;  %8009 = vmatprep.subr.bf16.mxu1 %v12221_v49  ;;  %v10479_v14 = vld [vmem:[#allocation3 + $0x9c] sm:$0xc]  ;;  %3684 = vrot.lane.b32.xlu0 %v10379_v46, %s8525_s14  ;;  %v3981_v2 = vor.u32 %v3980_v36, %v3977_v19  ;;  %v4371_v54 = vrot.slane %v10196_v4, 2 }
 0x255   : > { %3682 = vrot.lane.b32.xlu1 %v10355_v55, %s8525_s14  ;;  %3138 = vst.msk [vmem:[#allocation3 + $0xc8] sm:$0x1] %vm718_vm1, %v3037_v63  ;;  %v3571_v41 = vrot.slane %v3569_v7, 1  ;;  %v3574_v39 = vshll.u32 %v10408_v52, 16  ;;  %v3170_v0 = vld [vmem:[#allocation3 + $0xa8] sm:$0xf]  ;;  %v10497_v19 = vsel %vm1877_vm10, %v3798_v16, %v3799_v15  ;;  %v3989_v4 = vor.u32 %v3988_v45, %v3985_v27 }
 0x256   : > { %v10488_v8 = vld [vmem:[#allocation3 + $0xb0] ss:$0 sps:$4 sm:$0x33]   ;;  %v3584_v35 = vor.u32 %v3583_v61, %v3579_v62  ;;  %v3588_v24 = vrot.slane %v3586_v42, 1  ;;  %v3567_v25 = vshrl.u32 %v10386_v38, 16  ;;  %v4162_v46 = vshrl.u32 %v10464_v32, 16  ;;  %v2971_v55 = vpop.permute.xlu0 %2970 }
 0x257   : > { %v10491_v31 = vld [vmem:[#allocation3 + $0x38] ss:$0 sps:$4 sm:$0x11]   ;;  %v4165_v52 = vshll.u32 %v10464_v32, 16  ;;  %v8408_v7 = vld [vmem:[%s12080_s5 + $0x78] sm:$0xff]   ;;  %v4160_v16 = vsel %vm3922_vm5, %v4151_v47, %v4159_v50  ;;  %v3803_v15 = vsel %vm1877_vm10, %v3801_v57, %v3802_v18  ;;  %v12259_v42 = vor.u32 %v10402_v34, %v10391_v30 }
 0x258   : > { %v10499_v36 = vld [vmem:[#allocation3 + $0x38] ss:$0 sps:$4 sm:$0x33]   ;;  %8019 = vmatpush1.bf16.msra.mxu1 %v8408_v7  ;;  %3105 = vst.msk [vmem:[#allocation3 + $0x44] sm:$0x1] %vm718_vm1, %v2971_v55  ;;  %4285 = vrot.lane.b32.xlu0 %v10382_v48, %s12155_s15  ;;  %v10527_v17 = vsel %vm3922_vm5, %v3981_v2, %v3989_v4  ;;  %v10530_v29 = vsel %vm4363_vm4, %v4370_v58, %v4371_v54  ;;  %v3576_v30 = vrot.slane %v3574_v39, 1  ;;  %v3665_v58 = vpop.permute.xlu1 %3664 }
 0x259   : > { %v4143_v27 = vsel %vm3922_vm5, %v12259_v42, %v4142_v60  ;;  %8010 = vmatprep.subr.bf16.mxu1 %v12221_v49  ;;  %v10520_v45 = vld [vmem:[#allocation3 + $0xa8] sm:$0xc]  ;;  %4283 = vrot.lane.b32.xlu1 %v10438_v13, %s12155_s15  ;;  %v3572_v57 = vor.u32 %v3571_v41, %v3567_v25  ;;  %v10532_v34 = vld [vmem:[#allocation3 + $0x34] sm:$0xf]  ;;  %v3206_v47 = vld [vmem:[#allocation3 + $0x30] sm:$0xe]  ;;  %v10539_v48 = vsel %vm1570_vm11, %v3584_v35, %v3588_v24 }
 0x25a   : > { %v10534_v60 = vld [vmem:[#allocation3 + $0x24] sm:$0xc]  ;;  %7877 = vmatmul.mubr.msk.bf16.gmra.mrb[12].mxu1 %vm2102_vm3, %v9955_v44  ;;  %v3478_v13 = vshll.u32 %v10491_v31, 16  ;;  %v4170_v9 = vshrl.u32 %v10488_v8, 16  ;;  %v10543_v63 = vld [vmem:[#allocation3 + $0xb8] sm:$0xf]  ;;  %v10546_v18 = vcombine.low %v3170_v0, %v10444_v23  ;;  %v3035_v62 = vpop.permute.xlu0 %3034 }
 0x25b   : > { %v3172_v50 = vld [vmem:[#allocation3 + $0xb4] sm:$0xf]  ;;  %7880 = vmatprep.mubr.msk.bf16.mxu1 %vm2102_vm3, %v9960_v33  ;;  %v4000_v44 = vshrl.u32 %v10499_v36, 16  ;;  %v3150_v2 = vld [vmem:[#allocation3 + $0x30] sm:$0xf]  ;;  %v10551_v54 = vrot.slane %v4162_v46, 1  ;;  %v10561_v33 = vcombine.low %v3206_v47, %v10532_v34  ;;  %v10573_v55 = vsel %vm1570_vm11, %v3572_v57, %v3576_v30 }
 0x25c   : > { %v10553_v41 = vrot.slane %v4165_v52, 2  ;;  %v4173_v39 = vshll.u32 %v10488_v8, 16  ;;  %v8409_v35 = vld [vmem:[%s12080_s5 + $0x80] sm:$0xff]   ;;  %3137 = vst.msk [vmem:[#allocation3 + $0xc4] sm:$0xf] %vm715_vm6, %v3035_v62  ;;  %v4003_v0 = vshll.u32 %v10499_v36, 16  ;;  %v10565_v24 = vcombine.low %v3150_v2, %v10532_v34  ;;  %4289 = vrot.lane.b32.xlu0 %v4160_v16, %s12155_s15 }
 0x25d   : > { %8020 = vmatpush1.bf16.msra.mxu1 %v8409_v35  ;;  %v3217_v25 = vld [vmem:[#allocation3 + $0xb4] sm:$0xe]  ;;  %3848 = vrot.lane.b32.xlu1 %v3803_v15, %s8524_s30  ;;  %v10575_v4 = vld [vmem:[#allocation3 + $0xb0] ss:$0 sps:$4 sm:$0x11]   ;;  %v10580_v7 = vcombine.low %v3172_v50, %v10543_v63  ;;  %v4427_v47 = vsel %vm457_vm0, %v9900_v53, %v3665_v58  ;;  %v3775_v16 = vrot.slane %v10491_v31, 1 }
 0x25e   : > { %12260 = vst [vmem:[#allocation52_spill] sm:$0xff] %v10565_v24  ;;  %8011 = vmatprep.subr.bf16.mxu1 %v12221_v49  ;;  %v10577_v52 = vld [vmem:[#allocation3 + $0xbc] ss:$0 sps:$4 sm:$0x33]   ;;  %v10587_v62 = vrot.slane %v3478_v13, 1  ;;  %v10589_v15 = vrot.slane %v4170_v9, 1  ;;  %v3825_v57 = vpop.permute.xlu0 %3824  ;;  %v4168_v2 = vor.u32 %v10553_v41, %v10551_v54  ;;  %v10596_v35 = vcombine.low %v3217_v25, %v10543_v63 }
 0x25f   : > { %v10591_v30 = vrot.slane %v4000_v44, 1  ;;  %v4175_v50 = vrot.slane %v4173_v39, 2  ;;  %v8410_v53 = vld [vmem:[%s12080_s5 + $0x88] sm:$0xff]   ;;  %v3992_v31 = vshrl.u32 %v10561_v33, 16  ;;  %v3995_v13 = vshll.u32 %v10561_v33, 16 }
 0x260   : > { %v10603_v9 = vrot.slane %v4003_v0, 2  ;;  %v3473_v58 = vshll.u32 %v10565_v24, 16  ;;  %4287 = vrot.lane.b32.xlu0 %v4143_v27, %s12155_s15  ;;  %v4467_v44 = vsel %vm2004_vm2, %v4427_v47, %v3825_v57  ;;  %v4187_v54 = vshrl.u32 %v10577_v52, 16  ;;  %v10613_v39 = vld [vmem:[#allocation3 + $0xbc] ss:$0 sps:$4 sm:$0x11]  }
 0x261   : > { %8021 = vmatpush1.bf16.msra.mxu1 %v8410_v53  ;;  %3846 = vrot.lane.b32.xlu1 %v10497_v19, %s8524_s30  ;;  %v4190_v41 = vshll.u32 %v10577_v52, 16  ;;  %v3605_v0 = vshll.u32 %v10580_v7, 16  ;;  %v3774_v25 = vrot.slane %v10561_v33, 1  ;;  %v3471_v27 = vshrl.u32 %v10565_v24, 16  ;;  %v3207_v46 = vld [vmem:[#allocation3 + $0x3c] sm:$0xe] }
 0x262   : > { %8012 = vmatprep.subr.bf16.mxu1 %v12221_v49  ;;  %7881 = vmatmul.mubr.msk.bf16.gmra.mrb[16].mxu1 %vm2102_vm3, %v9987_v22  ;;  %v3804_v53 = vrot.slane %v10464_v32, 1  ;;  %v3593_v19 = vshll.u32 %v10546_v18, 16  ;;  %v4266_v47 = vpop.permute.xlu0 %4265  ;;  %v4176_v57 = vor.u32 %v4175_v50, %v10589_v15  ;;  %v3805_v42 = vrot.slane %v10575_v4, 1  ;;  %v8411_v33 = vld [vmem:[%s12080_s5 + $0x90] sm:$0xff]   ;;  %v8340_v15 = vld [vmem:[%s12080_s5] sm:$0xff]  }
 0x263   : > { %7884 = vmatprep.mubr.msk.bf16.mxu1 %vm2102_vm3, %v9990_v20  ;;  %v4179_v61 = vshrl.u32 %v10596_v35, 16  ;;  %v4182_v22 = vshll.u32 %v10596_v35, 16  ;;  %v10632_v32 = vsel %vm2102_vm3, %v4467_v44, %v4266_v47  ;;  %v3994_v24 = vrot.slane %v3992_v31, 1  ;;  %v10643_v31 = vld [vmem:[#allocation3 + $0x40] sm:$0xf] }
 0x264   : > { %12261 = vst [vmem:[#allocation55_spill] sm:$0xff] %v10632_v32  ;;  %v3997_v20 = vrot.slane %v3995_v13, 2  ;;  %v3475_v10 = vrot.slane %v3473_v58, 1  ;;  %4269 = vrot.lane.b32.xlu0 %v10527_v17, %s12155_s15  ;;  %v4189_v50 = vrot.slane %v4187_v54, 1  ;;  %v3607_v38 = vrot.slane %v3605_v0, 1  ;;  %4746 = vmatmul.mubr.bf16.vlgmr.msra.gmra.mrb[32].mxu0 %v10632_v32  ;;  %v8412_v32 = vld [vmem:[%s12080_s5 + $0x98] sm:$0xff]  }
 0x265   : > { %8022 = vmatpush1.bf16.msra.mxu1 %v8411_v33  ;;  %3688 = vrot.lane.b32.xlu1 %v10539_v48, %s8525_s14  ;;  %v4192_v33 = vrot.slane %v4190_v41, 2  ;;  %v3610_v44 = vshll.u32 %v10613_v39, 16  ;;  %v4006_v13 = vor.u32 %v10603_v9, %v10591_v30  ;;  %v3595_v58 = vrot.slane %v3593_v19, 1  ;;  %v3152_v19 = vld [vmem:[#allocation3 + $0x3c] sm:$0xf] }
 0x266   : > { %8013 = vmatprep.subr.bf16.mxu1 %v12221_v49  ;;  %v3598_v47 = vshll.u32 %v10575_v4, 16  ;;  %v10650_v17 = vcombine.low %v3207_v46, %v10643_v31  ;;  %7316 = vmatprep.mubr.msk.bf16.mxu0 %vm457_vm0, %v10530_v29  ;;  %v3776_v48 = vsel %vm1877_vm10, %v3774_v25, %v3775_v16  ;;  %v4181_v54 = vrot.slane %v4179_v61, 1  ;;  %v8342_v61 = vld [vmem:[%s12080_s5 + $0x8] sm:$0xff]  }
 0x267   : > { %v4184_v41 = vrot.slane %v4182_v22, 2  ;;  %v3603_v0 = vshrl.u32 %v10580_v7, 16  ;;  %v3998_v30 = vor.u32 %v3997_v20, %v3994_v24  ;;  %v3476_v9 = vor.u32 %v3475_v10, %v3471_v27  ;;  %4938 = vmatpush1.bf16.msra.mxu0 %v8340_v15  ;;  %v10665_v16 = vld [vmem:[#allocation3 + $0xb4] sm:$0xc] }
 0x268   : > { %v4177_v4 = vsel %vm3922_vm5, %v4168_v2, %v4176_v57  ;;  %v3591_v46 = vshrl.u32 %v10546_v18, 16  ;;  %3830 = vrot.lane.b32.xlu0 %v3776_v48, %s8524_s30  ;;  %v3806_v10 = vsel %vm1877_vm10, %v3804_v53, %v3805_v42  ;;  %v4193_v24 = vor.u32 %v4192_v33, %v4189_v50  ;;  %v10671_v27 = vld [vmem:[#allocation3 + $0x44] ss:$0 sps:$4 sm:$0x33]   ;;  %v3246_v57 = vld [vmem:[#allocation3 + $0x30] sm:$0xc]  ;;  %4939 = vmatprep.subr.bf16.mxu0 %v12221_v49 }
 0x269   : > { %8023 = vmatpush1.bf16.msra.mxu1 %v8412_v32  ;;  %3686 = vrot.lane.b32.xlu1 %v10573_v55, %s8525_s14  ;;  %v3608_v2 = vor.u32 %v3607_v38, %v3603_v0  ;;  %v3612_v25 = vrot.slane %v3610_v44, 1  ;;  %v3600_v32 = vrot.slane %v3598_v47, 1  ;;  %v4009_v20 = vshrl.u32 %v10650_v17, 16  ;;  %v10680_v38 = vld [vmem:[#allocation3 + $0x44] ss:$0 sps:$4 sm:$0x11]  }
 0x26a   : > { %5182 = vmatprep.subr.bf16.mxu1 %v12221_v49  ;;  %7885 = vmatmul.mubr.msk.bf16.gmra.mrb[20].mxu1 %vm2102_vm3, %v10011_v51  ;;  %v3596_v22 = vor.u32 %v3595_v58, %v3591_v46  ;;  %v7269_v15 = vcombine.low %v3246_v57, %v10532_v34  ;;  %v4185_v55 = vor.u32 %v4184_v41, %v4181_v54  ;;  %v4012_v42 = vshll.u32 %v10650_v17, 16  ;;  %v10686_v51 = vld [vmem:[#allocation3 + $0xc4] sm:$0xf]  ;;  %v10695_v58 = vld [vmem:[#allocation3 + $0xc8] ss:$0 sps:$4 sm:$0x33]  }
 0x26b   : > { %7888 = vmatprep.mubr.msk.bf16.mxu1 %vm2102_vm3, %v10014_v26  ;;  %v10684_v53 = vcombine.low %v3152_v19, %v10643_v31  ;;  %v7280_v50 = vcombine.low %v10665_v16, %v10543_v63  ;;  %v4007_v34 = vsel %vm3922_vm5, %v3998_v30, %v4006_v13  ;;  %v3481_v33 = vsel %vm1570_vm11, %v3476_v9, %v10587_v62  ;;  %v8345_v47 = vld [vmem:[%s12080_s5 + $0x10] sm:$0xff]   ;;  %v3218_v48 = vld [vmem:[#allocation3 + $0xc0] sm:$0xe] }
 0x26c   : > { %v3777_v26 = vrot.slane %v10650_v17, 1  ;;  %v3808_v44 = vrot.slane %v10613_v39, 1  ;;  %4940 = vmatpush1.bf16.msra.mxu0 %v8342_v61  ;;  %4271 = vrot.lane.b32.xlu0 %v4007_v34, %s12155_s15  ;;  %v4194_v63 = vsel %vm3922_vm5, %v4185_v55, %v4193_v24  ;;  %v3613_v13 = vsel %vm1570_vm11, %v3608_v2, %v3612_v25  ;;  %v8352_v39 = vld [vmem:[%s12080_s5 + $0x30] sm:$0xff]  }
 0x26d   : > { %3670 = vrot.lane.b32.xlu1 %v3481_v33, %s8525_s14  ;;  %v4017_v62 = vshrl.u32 %v10671_v27, 16  ;;  %v4020_v17 = vshll.u32 %v10671_v27, 16  ;;  %v10707_v54 = vsel %vm1570_vm11, %v3596_v22, %v3600_v32  ;;  %v10710_v41 = vcombine.low %v3218_v48, %v10686_v51  ;;  %4941 = vmatprep.subr.bf16.mxu0 %v12221_v49  ;;  %v12264_v33 = vld [vmem:[#allocation9_spill] sm:$0xff] }
 0x26e   : > { %v12262_v0 = vcombine.low %v10534_v60, %v10281_v12  ;;  %v4374_v9 = vrot.slane %v10410_v6, 2  ;;  %v3778_v46 = vrot.slane %v10680_v38, 1  ;;  %v10718_v19 = vrot.slane %v4009_v20, 1  ;;  %v3247_v6 = vld [vmem:[#allocation3 + $0x3c] sm:$0xc]  ;;  %v8347_v60 = vld [vmem:[%s12080_s5 + $0x18] sm:$0xff]  }
 0x26f   : > { %v10720_v61 = vrot.slane %v4012_v42, 2  ;;  %v3485_v16 = vshll.u32 %v10684_v53, 16  ;;  %v3490_v24 = vshll.u32 %v10680_v38, 16  ;;  %v4204_v2 = vshrl.u32 %v10695_v58, 16 }
 0x270   : > { %v4373_v30 = vrot.slane %v12262_v0, 2  ;;  %v4207_v25 = vshll.u32 %v10695_v58, 16  ;;  %4942 = vmatpush1.bf16.msra.mxu0 %v8345_v47  ;;  %4291 = vrot.lane.b32.xlu0 %v4177_v4, %s12155_s15  ;;  %v10734_v57 = vrot.slane %v4017_v62, 1  ;;  %v10736_v22 = vrot.slane %v4020_v17, 2  ;;  %v3174_v0 = vld [vmem:[#allocation3 + $0xc0] sm:$0xf] }
 0x271   : > { %3850 = vrot.lane.b32.xlu1 %v3806_v10, %s8524_s30  ;;  %v12263_v32 = vcombine.low %v10396_v21, %v10260_v11  ;;  %v4401_v55 = vrot.slane %v10304_v1, 2  ;;  %v4196_v42 = vshrl.u32 %v10710_v41, 16  ;;  %v4199_v34 = vshll.u32 %v10710_v41, 16  ;;  %4943 = vmatprep.subr.bf16.mxu0 %v12221_v49  ;;  %v8330_v38 = vld [vmem:[#allocation3 + $0xc8] ss:$0 sps:$4 sm:$0x11]  }
 0x272   : > { %v10727_v12 = vsel %vm4363_vm4, %v4373_v30, %v4374_v9  ;;  %7889 = vmatmul.mubr.msk.bf16.gmra.mrb[24].mxu1 %vm2102_vm3, %v10026_v3  ;;  %v4376_v4 = vrot.slane %v7269_v15, 2  ;;  %v4377_v10 = vrot.slane %v10499_v36, 2  ;;  %v12265_v1 = vcombine.low %v10479_v14, %v10299_v56  ;;  %v8349_v56 = vld [vmem:[%s12080_s5 + $0x20] sm:$0xff]   ;;  %v3142_v30 = vld [vmem:[#allocation3] sm:$0xf] }
 0x273   : > { %v4400_v20 = vrot.slane %v12263_v32, 2  ;;  %7892 = vmatprep.mubr.msk.bf16.mxu1 %vm2102_vm3, %v12264_v33  ;;  %v4404_v3 = vrot.slane %v10371_v43, 2  ;;  %v7270_v47 = vcombine.low %v3247_v6, %v10643_v31  ;;  %v4380_v36 = vrot.slane %v10671_v27, 2  ;;  %v10783_v6 = vld [vmem:[#allocation3 + $0x8] ss:$0 sps:$4 sm:$0x11]  }
 0x274   : > { %v4403_v21 = vrot.slane %v12265_v1, 2  ;;  %v10759_v15 = vsel %vm4363_vm4, %v4376_v4, %v4377_v10  ;;  %v12266_v62 = vcombine.low %v10520_v45, %v10444_v23  ;;  %v4407_v48 = vrot.slane %v10488_v8, 2  ;;  %4944 = vmatpush1.bf16.msra.mxu0 %v8347_v60  ;;  %4293 = vrot.lane.b32.xlu0 %v4194_v63, %s12155_s15  ;;  %v3258_v23 = vld [vmem:[#allocation3 + $0xc0] sm:$0xc]  ;;  %v8351_v60 = vld [vmem:[%s12080_s5 + $0x28] sm:$0xff]   ;;  %v12269_v10 = vld [vmem:[#allocation44_spill] sm:$0xff] }
 0x275   : > { %v10751_v11 = vsel %vm4363_vm4, %v4400_v20, %v4401_v55  ;;  %3692 = vrot.lane.b32.xlu1 %v3613_v13, %s8525_s14  ;;  %v4379_v14 = vrot.slane %v7270_v47, 2  ;;  %v4409_v31 = vrot.slane %v7280_v50, 2  ;;  %v4410_v27 = vrot.slane %v10577_v52, 2  ;;  %4945 = vmatprep.subr.bf16.mxu0 %v12221_v49  ;;  %v12267_v55 = vld [vmem:[#allocation47_spill] sm:$0xff] }
 0x276   : > { %v4406_v17 = vrot.slane %v12266_v62, 2  ;;  %v10772_v43 = vsel %vm4363_vm4, %v4403_v21, %v4404_v3  ;;  %v3779_v45 = vsel %vm1877_vm10, %v3777_v26, %v3778_v46  ;;  %v3487_v8 = vrot.slane %v3485_v16, 1  ;;  %v10833_v21 = vld [vmem:[#allocation3 + $0x8] ss:$0 sps:$4 sm:$0x33]  }
 0x277   : > { %v7281_v63 = vcombine.low %v3258_v23, %v10686_v51  ;;  %v4023_v13 = vor.u32 %v10736_v22, %v10734_v57  ;;  %v10786_v52 = vcombine.low %v3174_v0, %v10686_v51  ;;  %v10789_v50 = vsel %vm4363_vm4, %v4379_v14, %v4380_v36  ;;  %v8355_v14 = vld [vmem:[%s12080_s5 + $0x38] sm:$0xff]  }
 0x278   : > { %v10777_v9 = vsel %vm4363_vm4, %v4406_v17, %v4407_v48  ;;  %v10792_v26 = vsel %vm4363_vm4, %v4409_v31, %v4410_v27  ;;  %v4198_v46 = vrot.slane %v4196_v42, 1  ;;  %v4201_v16 = vrot.slane %v4199_v34, 2  ;;  %4946 = vmatpush1.bf16.msra.mxu0 %v8349_v56  ;;  %3832 = vrot.lane.b32.xlu0 %v3779_v45, %s8524_s30 }
 0x279   : > { %v4412_v32 = vrot.slane %v7281_v63, 2  ;;  %v4413_v57 = vrot.slane %v10695_v58, 2  ;;  %v2040_v51 = vsel %vm2004_vm2, %v10510_v37, %v10318_v59  ;;  %3690 = vrot.lane.b32.xlu1 %v10707_v54, %s8525_s14  ;;  %v3807_v22 = vrot.slane %v10596_v35, 1  ;;  %4947 = vmatprep.subr.bf16.mxu0 %v12221_v49  ;;  %v12268_v37 = vld [vmem:[#allocation38_spill] sm:$0xff] }
 0x27a   : > { %v3483_v20 = vshrl.u32 %v10684_v53, 16  ;;  %v10807_v42 = vcombine.low %v3142_v30, %v12267_v55  ;;  %7893 = vmatmul.mubr.msk.bf16.gmra.mrb[28].mxu1 %vm2102_vm3, %v2040_v51  ;;  %v4015_v58 = vor.u32 %v10720_v61, %v10718_v19  ;;  %v4206_v34 = vrot.slane %v4204_v2, 1 }
 0x27b   : > { %v4209_v4 = vrot.slane %v4207_v25, 2  ;;  %v10814_v59 = vsel %vm4363_vm4, %v4412_v32, %v4413_v57  ;;  %7320 = vmatprep.mubr.msk.bf16.mxu1 %vm457_vm0, %v12268_v37  ;;  %v3809_v35 = vsel %vm1877_vm10, %v3807_v22, %v3808_v44  ;;  %v3492_v54 = vrot.slane %v3490_v24, 1 }
 0x27c   : > { %v3762_v33 = vrot.slane %v12269_v10, 1  ;;  %v3763_v19 = vrot.slane %v10783_v6, 1  ;;  %v4024_v61 = vsel %vm3922_vm5, %v4015_v58, %v4023_v13  ;;  %v3488_v2 = vor.u32 %v3487_v8, %v3483_v20  ;;  %4948 = vmatpush1.bf16.msra.mxu0 %v8351_v60  ;;  %v3249_v58 = vld [vmem:[#allocation3 + $0x54] sm:$0xc] }
 0x27d   : > { %v4202_v25 = vor.u32 %v4201_v16, %v4198_v46  ;;  %v3617_v1 = vshll.u32 %v10786_v52, 16  ;;  %3852 = vrot.lane.b32.xlu1 %v3809_v35, %s8524_s30  ;;  %4273 = vrot.lane.b32.xlu0 %v4024_v61, %s12155_s15  ;;  %v3425_v44 = vshll.u32 %v10807_v42, 16  ;;  %v4210_v24 = vor.u32 %v4209_v4, %v4206_v34  ;;  %v8359_v34 = vld [vmem:[%s12080_s5 + $0x48] sm:$0xff]   ;;  %v12270_v4 = vld [vmem:[#allocation45_spill] sm:$0xff] }
 0x27e   : > { %4949 = vmatprep.subr.bf16.mxu0 %v12221_v49  ;;  %v3764_v3 = vsel %vm1877_vm10, %v3762_v33, %v3763_v19  ;;  %v3423_v47 = vshrl.u32 %v10807_v42, 16  ;;  %v3430_v36 = vshll.u32 %v10783_v6, 16  ;;  %v3493_v62 = vsel %vm1570_vm11, %v3488_v2, %v3492_v54  ;;  %v8357_v6 = vld [vmem:[%s12080_s5 + $0x40] sm:$0xff]   ;;  %v8413_v54 = vld [vmem:[#allocation3 + $0x58] sm:$0xf] }
 0x27f   : > { %v4211_v17 = vsel %vm3922_vm5, %v4202_v25, %v4210_v24  ;;  %v3810_v48 = vrot.slane %v10710_v41, 1  ;;  %v3619_v56 = vrot.slane %v3617_v1, 1  ;;  %v3811_v31 = vrot.slane %v8330_v38, 1  ;;  %v12272_v1 = vld [vmem:[#allocation48_spill] sm:$0xff] }
 0x280   : > { %4950 = vmatpush1.bf16.msra.mxu0 %v8352_v39  ;;  %v3615_v27 = vshrl.u32 %v10786_v52, 16  ;;  %v3427_v23 = vrot.slane %v3425_v44, 1  ;;  %v3924_v45 = vshrl.u32 %v12269_v10, 16  ;;  %v3622_v8 = vshll.u32 %v8330_v38, 16  ;;  %v3835_v2 = vpop.permute.xlu0 %3834  ;;  %v12274_v44 = vld [vmem:[#allocation12_spill] sm:$0xff] }
 0x281   : > { %3672 = vrot.lane.b32.xlu1 %v3493_v62, %s8525_s14  ;;  %4295 = vrot.lane.b32.xlu0 %v4211_v17, %s12155_s15  ;;  %v3927_v0 = vshll.u32 %v12269_v10, 16  ;;  %v3932_v41 = vshrl.u32 %v10833_v21, 16  ;;  %v3935_v30 = vshll.u32 %v10833_v21, 16  ;;  %v3812_v63 = vsel %vm1877_vm10, %v3810_v48, %v3811_v31 }
 0x282   : > { %4951 = vmatprep.subr.bf16.mxu0 %v12221_v49  ;;  %v3620_v13 = vor.u32 %v3619_v56, %v3615_v27  ;;  %v3428_v46 = vor.u32 %v3427_v23, %v3423_v47  ;;  %v3432_v16 = vrot.slane %v3430_v36, 1  ;;  %v3926_v60 = vrot.slane %v3924_v45, 1  ;;  %v8334_v36 = vld [vmem:[%s12080_s5 + $0xa0] sm:$0xff]   ;;  %v8414_v56 = vld [vmem:[#allocation3 + $0x5c] ss:$0 sps:$4 sm:$0x33]  }
 0x283   : > { %v3624_v32 = vrot.slane %v3622_v8, 1  ;;  %v3929_v57 = vrot.slane %v3927_v0, 2  ;;  %v3934_v51 = vrot.slane %v3932_v41, 1  ;;  %v3937_v22 = vrot.slane %v3935_v30, 2  ;;  %v3250_v27 = vld [vmem:[#allocation3 + $0x60] sm:$0xc] }
 0x284   : > { %4952 = vmatpush1.bf16.msra.mxu0 %v8355_v14  ;;  %v12271_v35 = vrot.slane %v12270_v4, 7  ;;  %v7272_v10 = vcombine.low %v3249_v58, %v8413_v54  ;;  %v3433_v33 = vsel %vm1570_vm11, %v3428_v46, %v3432_v16  ;;  %v12273_v39 = vrot.slane %v12272_v1, 7  ;;  %v8335_v45 = vld [vmem:[%s12080_s5 + $0xa8] sm:$0xff]   ;;  %v8415_v8 = vld [vmem:[#allocation3 + $0x64] sm:$0xf]  ;;  %v8336_v16 = vld [vmem:[%s12080_s5 + $0xb0] sm:$0xff]  }
 0x285   : > { %3822 = vrot.lane.b32.xlu0 %v3764_v3, %s8524_s30  ;;  %3854 = vrot.lane.b32.xlu1 %v3812_v63, %s8524_s30  ;;  %v3625_v55 = vsel %vm1570_vm11, %v3620_v13, %v3624_v32  ;;  %v3930_v19 = vor.u32 %v3929_v57, %v3926_v60  ;;  %v3938_v61 = vor.u32 %v3937_v22, %v3934_v51  ;;  %v4386_v14 = vrot.slane %v8414_v56, 2  ;;  %v12275_v41 = vld [vmem:[#allocation39_spill] sm:$0xff]  ;;  %v12276_v13 = vld [vmem:[#allocation57_spill] sm:$0xff]  ;;  %v8353_v58 = vld [vmem:[%s12080_s5 + $0xd0] sm:$0xff]  }
 0x286   : > { %4953 = vmatprep.subr.bf16.mxu0 %v12221_v49  ;;  %v3837_v20 = vpop.permute.xlu1 %3836  ;;  %v2947_v38 = vrot.slane %v12273_v39, 4  ;;  %v4385_v3 = vrot.slane %v7272_v10, 2  ;;  %v7273_v0 = vcombine.low %v3250_v27, %v8415_v8  ;;  %v8339_v22 = vld [vmem:[%s12080_s5 + $0xb8] sm:$0xff]   ;;  %v8418_v27 = vld [vmem:[#allocation3 + $0x74] ss:$0 sps:$4 sm:$0x33]  }
 0x287   : > { %v3939_v47 = vsel %vm3922_vm5, %v3930_v19, %v3938_v61  ;;  %v8360_v61 = vld [vmem:[%s12080_s5 + $0xe8] sm:$0xff]  }
 0x288   : > { %4954 = vmatpush1.bf16.msra.mxu0 %v8357_v6  ;;  %v10888_v23 = vsel %vm4363_vm4, %v4385_v3, %v4386_v14  ;;  %v8416_v6 = vld [vmem:[#allocation3 + $0x68] ss:$0 sps:$4 sm:$0x33]   ;;  %v4388_v32 = vrot.slane %v7273_v0, 2  ;;  %v3252_v0 = vld [vmem:[#allocation3 + $0x78] sm:$0xc] }
 0x289   : > { %3038 = vrot.lane.b32.xlu0 %v12271_v35, %s12155_s15  ;;  %3694 = vrot.lane.b32.xlu1 %v3625_v55, %s8525_s14  ;;  %v4389_v46 = vrot.slane %v8416_v6, 2  ;;  %v8348_v55 = vld [vmem:[%s12080_s5 + $0xc8] sm:$0xff]   ;;  %v8358_v35 = vld [vmem:[%s12080_s5 + $0xe0] sm:$0xff]  }
 0x28a   : > { %4955 = vmatprep.subr.bf16.mxu0 %v12221_v49  ;;  %v3675_v25 = vpop.permute.xlu1 %3674  ;;  %v3677_v62 = vpop.permute.xlu0 %3676 }
 0x28b   : > { %v4437_v24 = vsel %vm457_vm0, %v12274_v44, %v3675_v25  ;;  %v4439_v30 = vsel %vm457_vm0, %v12275_v41, %v3677_v62  ;;  %v10910_v51 = vsel %vm4363_vm4, %v4388_v32, %v4389_v46  ;;  %v8417_v44 = vld [vmem:[#allocation3 + $0x70] sm:$0xf]  ;;  %v12279_v46 = vld [vmem:[#allocation20_spill] sm:$0xff] }
 0x28c   : > { %4956 = vmatpush1.bf16.msra.mxu0 %v8359_v34  ;;  %v4477_v48 = vsel %vm2004_vm2, %v4437_v24, %v3835_v2  ;;  %v4479_v60 = vsel %vm2004_vm2, %v4439_v30, %v3837_v20  ;;  %v8344_v20 = vld [vmem:[%s12080_s5 + $0xc0] sm:$0xff]   ;;  %v8356_v34 = vld [vmem:[%s12080_s5 + $0xd8] sm:$0xff]  }
 0x28d   : > { %3042 = vrot.lane.b32.xlu0 %v2947_v38, %s12155_s15  ;;  %3662 = vrot.lane.b32.xlu1 %v3433_v33, %s8525_s14  ;;  %v12277_v33 = vld [vmem:[#allocation51_spill] sm:$0xff]  ;;  %v3251_v38 = vld [vmem:[#allocation3 + $0x6c] sm:$0xc] }
 0x28e   : > { %5459 = vmatprep.subr.bf16.mxu0 %v12221_v49  ;;  %v4276_v17 = vpop.permute.xlu1 %4275  ;;  %v4278_v63 = vpop.permute.xlu0 %4277  ;;  %v7274_v24 = vcombine.low %v3251_v38, %v8417_v44  ;;  %v8422_v44 = vld [vmem:[#allocation3 + $0x8c] ss:$0 sps:$4 sm:$0x33]  }
 0x28f   : > { %v10883_v31 = vsel %vm2102_vm3, %v4477_v48, %v4276_v17  ;;  %v10906_v57 = vsel %vm2102_vm3, %v4479_v60, %v4278_v63  ;;  %v8420_v60 = vld [vmem:[#allocation3 + $0x80] ss:$0 sps:$4 sm:$0x33]  }
 0x290   : > { %4786 = vmatmul.mubr.bf16.vlgmr.msra.gmra.mrb[32].mxu1 %v10883_v31  ;;  %v4391_v17 = vrot.slane %v7274_v24, 2  ;;  %v4395_v32 = vrot.slane %v8420_v60, 2  ;;  %v4398_v24 = vrot.slane %v8422_v44, 2 }
 0x291   : > { %4263 = vrot.lane.b32.xlu1 %v3939_v47, %s12155_s15  ;;  %7321 = vmatprep.mubr.msk.bf16.mxu1 %vm457_vm0, %v10888_v23 }
 0x292   : > { %5183 = vmatpush1.bf16.msra.mxu1 %v8334_v36  ;;  %v12278_v36 = vld [vmem:[#allocation15_spill] sm:$0xff] }
 0x293   : > { %5184 = vmatprep.subr.bf16.mxu1 %v12221_v49 }
 0x295   : > { %3040 = vrot.lane.b32.xlu1 %v12276_v13, %s12155_s15  ;;  %v8419_v13 = vld [vmem:[#allocation3 + $0x7c] sm:$0xf]  ;;  %s12021_s15 = scalar_lea.hbm %s12086_s11, %s7589_s16 }
 0x296   : > { %5185 = vmatpush1.bf16.msra.mxu1 %v8335_v45  ;;  %v4392_v45 = vrot.slane %v8418_v27, 2  ;;  %v7275_v6 = vcombine.low %v3252_v0, %v8419_v13 }
 0x297   : > { %5186 = vmatprep.subr.bf16.mxu1 %v12221_v49 }
 0x298   : > { %4794 = vmatmul.mubr.bf16.gmra.mrb[36].mxu1 %v10906_v57  ;;  %v10960_v41 = vsel %vm4363_vm4, %v4391_v17, %v4392_v45 }
 0x299   : > { %7322 = vmatprep.mubr.msk.bf16.mxu1 %vm457_vm0, %v10910_v51 }
 0x29a   : > { %5187 = vmatpush1.bf16.msra.mxu1 %v8336_v16 }
 0x29b   : > { %5188 = vmatprep.subr.bf16.mxu1 %v12221_v49 }
 0x29e   : > { %5189 = vmatpush1.bf16.msra.mxu1 %v8339_v22 }
 0x29f   : > { %5190 = vmatprep.subr.bf16.mxu1 %v12221_v49 }
 0x2a2   : > { %5191 = vmatpush1.bf16.msra.mxu1 %v8344_v20 }
 0x2a3   : > { %5192 = vmatprep.subr.bf16.mxu1 %v12221_v49 }
 0x2a6   : > { %5193 = vmatpush1.bf16.msra.mxu1 %v8348_v55 }
 0x2a7   : > { %5194 = vmatprep.subr.bf16.mxu1 %v12221_v49 }
 0x2aa   : > { %5195 = vmatpush1.bf16.msra.mxu1 %v8353_v58  ;;  %v3827_v4 = vpop.permute.xlu0 %3826  ;;  %v4394_v58 = vrot.slane %v7275_v6, 2 }
 0x2ab   : > { %5196 = vmatprep.subr.bf16.mxu1 %v12221_v49 }
 0x2ae   : > { %5197 = vmatpush1.bf16.msra.mxu1 %v8356_v34  ;;  %v3667_v54 = vpop.permute.xlu1 %3666  ;;  %v3839_v10 = vpop.permute.xlu0 %3838 }
 0x2af   : > { %5198 = vmatprep.subr.bf16.mxu1 %v12221_v49  ;;  %v4429_v19 = vsel %vm457_vm0, %v12277_v33, %v3667_v54  ;;  %v8421_v54 = vld [vmem:[#allocation3 + $0x88] sm:$0xf] }
 0x2b0   : > { %v4469_v1 = vsel %vm2004_vm2, %v4429_v19, %v3827_v4  ;;  %v3253_v4 = vld [vmem:[#allocation3 + $0x84] sm:$0xc] }
 0x2b2   : > { %5199 = vmatpush1.bf16.msra.mxu1 %v8358_v35  ;;  %v3841_v2 = vpop.permute.xlu1 %3840  ;;  %v4268_v25 = vpop.permute.xlu0 %4267  ;;  %v10972_v35 = vsel %vm4363_vm4, %v4394_v58, %v4395_v32 }
 0x2b3   : > { %5200 = vmatprep.subr.bf16.mxu1 %v12221_v49  ;;  %v10946_v39 = vsel %vm2102_vm3, %v4469_v1, %v4268_v25 }
 0x2b4   : > { %4754 = vmatmul.mubr.bf16.gmra.mrb[36].mxu0 %v10946_v39 }
 0x2b5   : > { %7317 = vmatprep.mubr.msk.bf16.mxu0 %vm457_vm0, %v10727_v12 }
 0x2b6   : > { %5201 = vmatpush1.bf16.msra.mxu1 %v8360_v61  ;;  %v3679_v3 = vpop.permute.xlu1 %3678  ;;  %v3681_v47 = vpop.permute.xlu0 %3680 }
 0x2b7   : > { %5736 = vmatprep.subr.bf16.mxu1 %v12221_v49  ;;  %v4441_v62 = vsel %vm457_vm0, %v12278_v36, %v3679_v3  ;;  %v4443_v16 = vsel %vm457_vm0, %v12279_v46, %v3681_v47  ;;  %v12280_v46 = vld [vmem:[#allocation50_spill] sm:$0xff] }
 0x2b8   : > { %v4481_v56 = vsel %vm2004_vm2, %v4441_v62, %v3839_v10  ;;  %v4483_v22 = vsel %vm2004_vm2, %v4443_v16, %v3841_v2  ;;  %v7276_v10 = vcombine.low %v3253_v4, %v8421_v54 }
 0x2ba   : > { %v4280_v48 = vpop.permute.xlu1 %4279  ;;  %v4282_v14 = vpop.permute.xlu0 %4281  ;;  %v4397_v2 = vrot.slane %v7276_v10, 2 }
 0x2bb   : > { %v10956_v8 = vsel %vm2102_vm3, %v4481_v56, %v4280_v48  ;;  %v10968_v34 = vsel %vm2102_vm3, %v4483_v22, %v4282_v14  ;;  %v12281_v22 = vld [vmem:[#allocation53_spill] sm:$0xff] }
 0x2bc   : > { %4802 = vmatmul.mubr.bf16.gmra.mrb[40].mxu1 %v10956_v8  ;;  %v10984_v47 = vsel %vm4363_vm4, %v4397_v2, %v4398_v24 }
 0x2bd   : > { %7323 = vmatprep.mubr.msk.bf16.mxu1 %vm457_vm0, %v10960_v41 }
 0x2be   : > { %v3843_v63 = vpop.permute.xlu0 %3842 }
 0x2bf   : > { %v3669_v30 = vpop.permute.xlu1 %3668 }
 0x2c0   : > { %v4431_v27 = vsel %vm457_vm0, %v10288_v5, %v3669_v30 }
 0x2c2   : > { %v3829_v55 = vpop.permute.xlu0 %3828 }
 0x2c3   : > { %v3845_v20 = vpop.permute.xlu1 %3844  ;;  %v4471_v45 = vsel %vm2004_vm2, %v4431_v27, %v3829_v55  ;;  %v12282_v55 = vld [vmem:[#allocation52_spill] sm:$0xff] }
 0x2c4   : > { %4810 = vmatmul.mubr.bf16.gmra.mrb[44].mxu1 %v10968_v34 }
 0x2c5   : > { %7324 = vmatprep.mubr.msk.bf16.mxu1 %vm457_vm0, %v10972_v35 }
 0x2c6   : > { %v3685_v19 = vpop.permute.xlu0 %3684 }
 0x2c7   : > { %v3683_v33 = vpop.permute.xlu1 %3682  ;;  %v4447_v62 = vsel %vm457_vm0, %v10234_v28, %v3685_v19 }
 0x2c8   : > { %v4445_v61 = vsel %vm457_vm0, %v10184_v40, %v3683_v33  ;;  %v4487_v17 = vsel %vm2004_vm2, %v4447_v62, %v3845_v20  ;;  %v8423_v62 = vld [vmem:[#allocation3 + $0x4] sm:$0xf] }
 0x2c9   : > { %v4485_v1 = vsel %vm2004_vm2, %v4445_v61, %v3843_v63 }
 0x2ca   : > { %v4286_v38 = vpop.permute.xlu0 %4285 }
 0x2cb   : > { %v4284_v25 = vpop.permute.xlu1 %4283  ;;  %v10992_v14 = vsel %vm2102_vm3, %v4487_v17, %v4286_v38 }
 0x2cc   : > { %v10980_v3 = vsel %vm2102_vm3, %v4485_v1, %v4284_v25  ;;  %v3242_v1 = vld [vmem:[#allocation3] sm:$0xc] }
 0x2cd   : > { %4818 = vmatmul.mubr.bf16.gmra.mrb[48].mxu1 %v10980_v3  ;;  %v7265_v17 = vcombine.low %v3242_v1, %v8423_v62  ;;  %v11079_v1 = vld [vmem:[#allocation3 + $0xe0] ss:$0 sps:$4 sm:$0x11]  }
 0x2ce   : > { %7325 = vmatprep.mubr.msk.bf16.mxu1 %vm457_vm0, %v10984_v47  ;;  %v4290_v40 = vpop.permute.xlu0 %4289 }
 0x2cf   : > { %v3849_v36 = vpop.permute.xlu1 %3848  ;;  %v4364_v27 = vrot.slane %v7265_v17, 2  ;;  %v8364_v17 = vld [vmem:[%s12080_s5 + $0x140] sm:$0xff]  }
 0x2d2   : > { %v4288_v56 = vpop.permute.xlu0 %4287 }
 0x2d3   : > { %v3847_v48 = vpop.permute.xlu1 %3846 }
 0x2d5   : > { %4826 = vmatmul.mubr.bf16.gmra.mrb[52].mxu1 %v10992_v14 }
 0x2d6   : > { %7326 = vmatprep.mubr.msk.bf16.mxu1 %vm457_vm0, %v10751_v11  ;;  %v4270_v63 = vpop.permute.xlu0 %4269 }
 0x2d7   : > { %v3689_v0 = vpop.permute.xlu1 %3688  ;;  %v11001_v28 = vsel %vm2102_vm3, %v4471_v45, %v4270_v63  ;;  %v4365_v45 = vrot.slane %v10833_v21, 2 }
 0x2d8   : > { %4762 = vmatmul.mubr.bf16.gmra.mrb[40].mxu0 %v11001_v28  ;;  %v4451_v20 = vsel %vm457_vm0, %v12281_v22, %v3689_v0  ;;  %v3178_v22 = vld [vmem:[#allocation3 + $0xd8] sm:$0xf] }
 0x2d9   : > { %7318 = vmatprep.mubr.msk.bf16.mxu0 %vm457_vm0, %v10759_v15  ;;  %v4491_v10 = vsel %vm2004_vm2, %v4451_v20, %v3849_v36  ;;  %v3179_v20 = vld [vmem:[#allocation3 + $0xdc] sm:$0xf] }
 0x2da   : > { %v3831_v6 = vpop.permute.xlu0 %3830  ;;  %v11028_v61 = vsel %vm2102_vm3, %v4491_v10, %v4290_v40  ;;  %v11068_v10 = vcombine.low %v3178_v22, %v3179_v20 }
 0x2db   : > { %v3687_v13 = vpop.permute.xlu1 %3686 }
 0x2dc   : > { %v4449_v5 = vsel %vm457_vm0, %v12280_v46, %v3687_v13  ;;  %12283 = vst [vmem:[#allocation54_spill] sm:$0xff] %v11068_v10 }
 0x2dd   : > { %v4489_v30 = vsel %vm2004_vm2, %v4449_v5, %v3847_v48  ;;  %v4366_v5 = vsel %vm4363_vm4, %v4364_v27, %v4365_v45  ;;  %v3646_v45 = vshll.u32 %v11079_v1, 16 }
 0x2de   : > { %v11010_v16 = vsel %vm2102_vm3, %v4489_v30, %v4288_v56  ;;  %v4272_v32 = vpop.permute.xlu0 %4271 }
 0x2df   : > { %v3671_v60 = vpop.permute.xlu1 %3670  ;;  %4834 = vmatmul.mubr.bf16.gmra.mrb[56].mxu1 %v11010_v16 }
 0x2e0   : > { %v4433_v58 = vsel %vm457_vm0, %v12282_v55, %v3671_v60  ;;  %7327 = vmatprep.mubr.msk.bf16.mxu1 %vm457_vm0, %v10772_v43 }
 0x2e1   : > { %v4473_v4 = vsel %vm2004_vm2, %v4433_v58, %v3831_v6 }
 0x2e2   : > { %v11021_v54 = vsel %vm2102_vm3, %v4473_v4, %v4272_v32  ;;  %v4292_v19 = vpop.permute.xlu0 %4291 }
 0x2e3   : > { %v3851_v33 = vpop.permute.xlu1 %3850  ;;  %4770 = vmatmul.mubr.bf16.gmra.mrb[44].mxu0 %v11021_v54 }
 0x2e4   : > { %7319 = vmatprep.mubr.msk.bf16.mxu0 %vm457_vm0, %v10789_v50 }
 0x2e6   : > { %v4294_v25 = vpop.permute.xlu0 %4293 }
 0x2e7   : > { %v3693_v2 = vpop.permute.xlu1 %3692  ;;  %4842 = vmatmul.mubr.bf16.gmra.mrb[60].mxu1 %v11028_v61 }
 0x2e8   : > { %7328 = vmatprep.mubr.msk.bf16.mxu1 %vm457_vm0, %v10777_v9 }
 0x2ea   : > { %v3833_v44 = vpop.permute.xlu0 %3832 }
 0x2eb   : > { %v3691_v38 = vpop.permute.xlu1 %3690 }
 0x2ec   : > { %v4453_v24 = vsel %vm457_vm0, %v10546_v18, %v3691_v38  ;;  %v4455_v18 = vsel %vm457_vm0, %v10580_v7, %v3693_v2  ;;  %v3641_v38 = vshll.u32 %v11068_v10, 16 }
 0x2ed   : > { %v4493_v36 = vsel %vm2004_vm2, %v4453_v24, %v3851_v33 }
 0x2ee   : > { %v11037_v40 = vsel %vm2102_vm3, %v4493_v36, %v4292_v19  ;;  %v3643_v27 = vrot.slane %v3641_v38, 1 }
 0x2ef   : > { %v3853_v48 = vpop.permute.xlu1 %3852  ;;  %4850 = vmatmul.mubr.bf16.gmra.mrb[64].mxu1 %v11037_v40  ;;  %v4274_v56 = vpop.permute.xlu0 %4273 }
 0x2f0   : > { %7329 = vmatprep.mubr.msk.bf16.mxu1 %vm457_vm0, %v10792_v26  ;;  %v4495_v0 = vsel %vm2004_vm2, %v4455_v18, %v3853_v48  ;;  %v12284_v48 = vld [vmem:[#allocation34_spill] sm:$0xff]  ;;  %v8373_v18 = vld [vmem:[%s12080_s5 + $0xf8] sm:$0xff]  }
 0x2f1   : > { %v11051_v30 = vsel %vm2102_vm3, %v4495_v0, %v4294_v25  ;;  %v8363_v25 = vld [vmem:[%s12080_s5 + $0xf0] sm:$0xff]  }
 0x2f3   : > { %v3673_v63 = vpop.permute.xlu1 %3672  ;;  %v4296_v13 = vpop.permute.xlu0 %4295 }
 0x2f4   : > { %v4435_v6 = vsel %vm457_vm0, %v10684_v53, %v3673_v63 }
 0x2f5   : > { %v4475_v46 = vsel %vm2004_vm2, %v4435_v6, %v3833_v44 }
 0x2f6   : > { %v11054_v60 = vsel %vm2102_vm3, %v4475_v46, %v4274_v56  ;;  %v3639_v56 = vshrl.u32 %v11068_v10, 16 }
 0x2f7   : > { %v3855_v21 = vpop.permute.xlu1 %3854  ;;  %4778 = vmatmul.mubr.bf16.gmra.mrb[48].mxu0 %v11054_v60  ;;  %4858 = vmatmul.mubr.bf16.gmra.mrb[68].mxu1 %v11051_v30  ;;  %v3823_v7 = vpop.permute.xlu0 %3822 }
 0x2f8   : > { %7330 = vmatprep.mubr.msk.bf16.mxu1 %vm457_vm0, %v10814_v59  ;;  %7341 = vmatprep.mubr.msk.bf16.mxu0 %vm457_vm0, %v4366_v5  ;;  %v8375_v5 = vld [vmem:[%s12080_s5 + $0x148] sm:$0xff]  }
 0x2fb   : > { %v3695_v53 = vpop.permute.xlu1 %3694  ;;  %v3039_v32 = vpop.permute.xlu0 %3038 }
 0x2fc   : > { %v4457_v55 = vsel %vm457_vm0, %v10786_v52, %v3695_v53  ;;  %3139 = vst.msk [vmem:[#allocation3 + $0xcc] sm:$0xe] %vm3093_vm7, %v3039_v32  ;;  %v3220_v52 = vld [vmem:[#allocation3 + $0xd8] sm:$0xe]  ;;  %v8377_v53 = vld [vmem:[%s12080_s5 + $0x100] sm:$0xff]  }
 0x2fd   : > { %v4497_v58 = vsel %vm2004_vm2, %v4457_v55, %v3855_v21  ;;  %v11083_v36 = vcombine.low %v3220_v52, %v3179_v20  ;;  %v3644_v21 = vor.u32 %v3643_v27, %v3639_v56 }
 0x2fe   : > { %v11066_v4 = vsel %vm2102_vm3, %v4497_v58, %v4296_v13  ;;  %v3181_v58 = vld [vmem:[#allocation3 + $0xe8] sm:$0xf] }
 0x2ff   : > { %v3663_v33 = vpop.permute.xlu1 %3662  ;;  %4866 = vmatmul.mubr.bf16.gmra.mrb[72].mxu1 %v11066_v4  ;;  %v3043_v19 = vpop.permute.xlu0 %3042  ;;  %v4230_v63 = vshrl.u32 %v11083_v36, 16  ;;  %v4233_v13 = vshll.u32 %v11083_v36, 16 }
 0x300   : > { %v4425_v2 = vsel %vm457_vm0, %v10807_v42, %v3663_v33  ;;  %3141 = vst.msk [vmem:[#allocation3 + $0xd4] sm:$0x1] %vm718_vm1, %v3043_v19  ;;  %7387 = vmatprep.mubr.msk.bf16.mxu1 %vm457_vm0, %v10530_v29  ;;  %v8369_v42 = vld [vmem:[#allocation3 + $0xe0] ss:$0 sps:$4 sm:$0x33]   ;;  %v8378_v19 = vld [vmem:[%s12080_s5 + $0x150] sm:$0xff]  }
 0x301   : > { %v4465_v24 = vsel %vm2004_vm2, %v4425_v2, %v3823_v7  ;;  %v4238_v6 = vshrl.u32 %v8369_v42, 16  ;;  %v4241_v46 = vshll.u32 %v8369_v42, 16  ;;  %v3648_v7 = vrot.slane %v3646_v45, 1  ;;  %v3221_v33 = vld [vmem:[#allocation3 + $0xe4] sm:$0xe]  ;;  %v12285_v2 = vld [vmem:[#allocation55_spill] sm:$0xff] }
 0x302   : > { %v11110_v32 = vrot.slane %v4230_v63, 1  ;;  %v11112_v22 = vrot.slane %v4233_v13, 2  ;;  %v8379_v42 = vld [vmem:[%s12080_s5 + $0x108] sm:$0xff]   ;;  %v11137_v56 = vcombine.low %v3221_v33, %v3181_v58  ;;  %v8380_v13 = vld [vmem:[%s12080_s5 + $0x158] sm:$0xff]   ;;  %v11161_v33 = vld [vmem:[%s12079_s4] ss:$0 sm:$0xff] }
 0x303   : > { %v4264_v44 = vpop.permute.xlu1 %4263  ;;  %v11114_v20 = vrot.slane %v4238_v6, 1  ;;  %v11116_v55 = vrot.slane %v4241_v46, 2  ;;  %v3219_v38 = vld [vmem:[#allocation3 + $0xcc] sm:$0xe] }
 0x304   : > { %v4505_v62 = vsel %vm2102_vm3, %v4465_v24, %v4264_v44  ;;  %v11127_v44 = vsel %vm1570_vm11, %v3644_v21, %v3648_v7  ;;  %v3259_v27 = vld [vmem:[#allocation3 + $0xcc] sm:$0xc]  ;;  %v4250_v21 = vshll.u32 %v11137_v56, 16 }
 0x305   : > { %4970 = vmatmul.mubr.bf16.vlgmr.msra.gmra.mrb[52].mxu0 %v4505_v62 }
 0x306   : > { %7342 = vmatprep.mubr.msk.bf16.mxu0 %vm457_vm0, %v12284_v48  ;;  %5460 = vmatpush1.bf16.msra.mxu0 %v8363_v25  ;;  %v3180_v25 = vld [vmem:[#allocation3 + $0xe4] sm:$0xf]  ;;  %v4236_v48 = vor.u32 %v11112_v22, %v11110_v32 }
 0x307   : > { %v3041_v0 = vpop.permute.xlu1 %3040  ;;  %5215 = vmatmul.mubr.bf16.vlgmr.msra.gmra.mrb[76].mxu1 %v10946_v39  ;;  %5461 = vmatprep.subr.bf16.mxu0 %v12221_v49  ;;  %v8361_v52 = vld [vmem:[#allocation3 + $0xd4] ss:$0 sps:$4 sm:$0x11]   ;;  %v11151_v7 = vcombine.low %v3180_v25, %v3181_v58 }
 0x308   : > { %3140 = vst.msk [vmem:[#allocation3 + $0xd0] sm:$0xf] %vm715_vm6, %v3041_v0  ;;  %7388 = vmatprep.mubr.msk.bf16.mxu1 %vm457_vm0, %v10727_v12  ;;  %5737 = vmatpush1.bf16.msra.mxu1 %v8364_v17  ;;  %v8370_v24 = vld [vmem:[#allocation3 + $0xd4] ss:$0 sps:$4 sm:$0x33]   ;;  %v3814_v46 = vrot.slane %v8361_v52, 1 }
 0x309   : > { %5738 = vmatprep.subr.bf16.mxu1 %v12221_v49  ;;  %v3176_v17 = vld [vmem:[#allocation3 + $0xcc] sm:$0xf]  ;;  %12286 = vst [vmem:[#allocation56_spill] sm:$0xff] %v11151_v7  ;;  %v4224_v58 = vshll.u32 %v8370_v24, 16 }
 0x30a   : > { %5462 = vmatpush1.bf16.msra.mxu0 %v8373_v18  ;;  %v11144_v0 = vld [vmem:[#allocation3 + $0xec] ss:$0 sps:$4 sm:$0x11]  }
 0x30b   : > { %5463 = vmatprep.subr.bf16.mxu0 %v12221_v49  ;;  %v3658_v63 = vshll.u32 %v11144_v0, 16 }
 0x30c   : > { %5739 = vmatpush1.bf16.msra.mxu1 %v8375_v5  ;;  %v3634_v5 = vshll.u32 %v8361_v52, 16  ;;  %v4416_v52 = vrot.slane %v8370_v24, 2 }
 0x30d   : > { %4978 = vmatmul.mubr.bf16.gmra.mrb[56].mxu0 %v12285_v2  ;;  %5740 = vmatprep.subr.bf16.mxu1 %v12221_v49 }
 0x30e   : > { %7343 = vmatprep.mubr.msk.bf16.mxu0 %vm457_vm0, %v10530_v29  ;;  %5464 = vmatpush1.bf16.msra.mxu0 %v8377_v53  ;;  %v4244_v29 = vor.u32 %v11116_v55, %v11114_v20  ;;  %v4221_v20 = vshrl.u32 %v8370_v24, 16  ;;  %v8381_v55 = vld [vmem:[%s12080_s5 + $0x110] sm:$0xff]   ;;  %v3653_v24 = vshll.u32 %v11151_v7, 16 }
 0x30f   : > { %5223 = vmatmul.mubr.bf16.gmra.mrb[80].mxu1 %v11001_v28  ;;  %v3177_v62 = vld [vmem:[#allocation3 + $0xd0] sm:$0xf]  ;;  %5465 = vmatprep.subr.bf16.mxu0 %v12221_v49 }
 0x310   : > { %7389 = vmatprep.mubr.msk.bf16.mxu1 %vm457_vm0, %v10759_v15  ;;  %v7242_v45 = vcombine.low %v3219_v38, %v3177_v62  ;;  %v11142_v18 = vcombine.low %v3176_v17, %v3177_v62  ;;  %5741 = vmatpush1.bf16.msra.mxu1 %v8378_v19  ;;  %v7282_v6 = vcombine.low %v3259_v27, %v3177_v62  ;;  %v8382_v17 = vld [vmem:[%s12080_s5 + $0x160] sm:$0xff]   ;;  %v3636_v62 = vrot.slane %v3634_v5, 1  ;;  %v8383_v5 = vld [vmem:[%s12080_s5 + $0x118] sm:$0xff]  }
 0x311   : > { %5742 = vmatprep.subr.bf16.mxu1 %v12221_v49 }
 0x312   : > { %v3813_v53 = vrot.slane %v7242_v45, 1  ;;  %v3629_v32 = vshll.u32 %v11142_v18, 16  ;;  %v4213_v22 = vshrl.u32 %v7242_v45, 16  ;;  %5466 = vmatpush1.bf16.msra.mxu0 %v8379_v42  ;;  %v4216_v19 = vshll.u32 %v7242_v45, 16 }
 0x313   : > { %5467 = vmatprep.subr.bf16.mxu0 %v12221_v49  ;;  %v4415_v2 = vrot.slane %v7282_v6, 2  ;;  %v3627_v38 = vshrl.u32 %v11142_v18, 16 }
 0x314   : > { %v3815_v25 = vsel %vm1877_vm10, %v3813_v53, %v3814_v46  ;;  %v3631_v42 = vrot.slane %v3629_v32, 1  ;;  %5743 = vmatpush1.bf16.msra.mxu1 %v8380_v13  ;;  %v7866_v27 = vpop.f32.mrb[0].mxu1  ;;  %v4215_v45 = vrot.slane %v4213_v22, 1  ;;  %v4218_v6 = vrot.slane %v4216_v19, 2 }
 0x315   : > { %4986 = vmatmul.mubr.bf16.gmra.mrb[60].mxu0 %v10946_v39  ;;  %3856 = vrot.lane.b32.xlu0 %v3815_v25, %s8524_s30  ;;  %v11174_v46 = vsel %vm4363_vm4, %v4415_v2, %v4416_v52  ;;  %v2748_v53 = vadd.f32 %v7866_v27, %v11161_v33  ;;  %v2580_v32 = vpop.f32.mrb[1].mxu1  ;;  %v11180_v39 = vld [vmem:[#allocation3 + $0xec] ss:$0 sps:$4 sm:$0x33]   ;;  %v4245_v2 = vsel %vm3922_vm5, %v4236_v48, %v4244_v29  ;;  %v4223_v52 = vrot.slane %v4221_v20, 1  ;;  %v8384_v29 = vld [vmem:[%s12080_s5 + $0x168] sm:$0xff]  }
 0x316   : > { %7344 = vmatprep.mubr.msk.bf16.mxu0 %vm457_vm0, %v10727_v12  ;;  %v3632_v13 = vor.u32 %v3631_v42, %v3627_v38  ;;  %5468 = vmatpush1.bf16.msra.mxu0 %v8381_v55  ;;  %v2746_v22 = vadd.f32 %v11161_v33, %v2580_v32  ;;  %v7867_v19 = vpop.f32.mrb[2].mxu1  ;;  %v4226_v25 = vrot.slane %v4224_v58, 2  ;;  %v3819_v27 = vrot.slane %v11137_v56, 1 }
 0x317   : > { %5231 = vmatmul.mubr.bf16.gmra.mrb[84].mxu1 %v11021_v54  ;;  %5744 = vmatprep.subr.bf16.mxu1 %v12221_v49  ;;  %v2749_v38 = vadd.f32 %v7867_v19, %v11161_v33  ;;  %v2583_v42 = vpop.f32.mrb[3].mxu1  ;;  %v3651_v48 = vshrl.u32 %v11151_v7, 16  ;;  %v4219_v58 = vor.u32 %v4218_v6, %v4215_v45  ;;  %v3655_v32 = vrot.slane %v3653_v24, 1  ;;  %v8385_v45 = vld [vmem:[%s12080_s5 + $0x120] sm:$0xff]  }
 0x318   : > { %7390 = vmatprep.mubr.msk.bf16.mxu1 %vm457_vm0, %v10789_v50  ;;  %v3637_v55 = vsel %vm1570_vm11, %v3632_v13, %v3636_v62  ;;  %5745 = vmatpush1.bf16.msra.mxu1 %v8382_v17  ;;  %v2747_v20 = vadd.f32 %v11161_v33, %v2583_v42  ;;  %v4247_v62 = vshrl.u32 %v11137_v56, 16  ;;  %v2780_v13 = vmax.f32 %v2748_v53, 0.0 }
 0x319   : > { %3698 = vrot.lane.b32.xlu0 %v11127_v44, %s8525_s14  ;;  %3696 = vrot.lane.b32.xlu1 %v3637_v55, %s8525_s14  ;;  %v2781_v19 = vmax.f32 %v2749_v38, 0.0  ;;  %v4255_v17 = vshrl.u32 %v11180_v39, 16  ;;  %v2778_v42 = vmax.f32 %v2746_v22, 0.0  ;;  %v4227_v10 = vor.u32 %v4226_v25, %v4223_v52  ;;  %v8386_v38 = vld [vmem:[%s12080_s5 + $0x170] sm:$0xff]  }
 0x31a   : > { %5469 = vmatprep.subr.bf16.mxu0 %v12221_v49  ;;  %5746 = vmatprep.subr.bf16.mxu1 %v12221_v49  ;;  %v2779_v7 = vmax.f32 %v2747_v20, 0.0  ;;  %v4258_v44 = vshll.u32 %v11180_v39, 16  ;;  %v12288_v22 = vrot.slane %v11079_v1, 1  ;;  %v12289_v52 = vrot.slane %v11083_v36, 1 }
 0x31b   : > { %5470 = vmatpush1.bf16.msra.mxu0 %v8383_v5  ;;  %v11211_v6 = vpack.c.bf16 %v2781_v19, %v2780_v13  ;;  %v4228_v53 = vsel %vm3922_vm5, %v4219_v58, %v4227_v10  ;;  %v3660_v5 = vrot.slane %v3658_v63, 1  ;;  %v12290_v10 = vrot.slane %v11144_v0, 1  ;;  %v8387_v19 = vld [vmem:[%s12080_s5 + $0x128] sm:$0xff]  }
 0x31c   : > { %5747 = vmatpush1.bf16.msra.mxu1 %v8384_v29  ;;  %5471 = vmatprep.subr.bf16.mxu0 %v12221_v49  ;;  %v11214_v56 = vpack.c.bf16 %v2779_v7, %v2778_v42  ;;  %v7870_v24 = vpop.f32.mrb[4].mxu1  ;;  %v3818_v25 = vsel %vm1877_vm10, %v12289_v52, %v12288_v22  ;;  %v3656_v36 = vor.u32 %v3655_v32, %v3651_v48  ;;  %v4252_v20 = vrot.slane %v4250_v21, 2  ;;  %v8388_v22 = vld [vmem:[%s12080_s5 + $0x178] sm:$0xff]  }
 0x31d   : > { %4994 = vmatmul.mubr.bf16.gmra.mrb[64].mxu0 %v11001_v28  ;;  %4299 = vrot.lane.b32.xlu0 %v4245_v2, %s12287_s12  ;;  %v2752_v7 = vadd.f32 %v7870_v24, %v11161_v33  ;;  %v2596_v55 = vpop.f32.mrb[5].mxu1  ;;  %v3821_v1 = vsel %vm1877_vm10, %v3819_v27, %v12290_v10  ;;  %v4249_v2 = vrot.slane %v4247_v62, 1  ;;  %v4257_v58 = vrot.slane %v4255_v17, 1  ;;  %v8390_v24 = vld [vmem:[%s12080_s5 + $0x130] sm:$0xff]  }
 0x31e   : > { %4297 = vrot.lane.b32.xlu1 %v4228_v53, %s12287_s12  ;;  %7345 = vmatprep.mubr.msk.bf16.mxu0 %vm457_vm0, %v10759_v15  ;;  %v2750_v63 = vadd.f32 %v11161_v33, %v2596_v55  ;;  %v7871_v29 = vpop.f32.mrb[6].mxu1  ;;  %v4260_v13 = vrot.slane %v4258_v44, 2  ;;  %v3661_v32 = vsel %vm1570_vm11, %v3656_v36, %v3660_v5  ;;  %v12291_v5 = vld [vmem:[#allocation11_spill] sm:$0xff] }
 0x31f   : > { %5239 = vmatmul.mubr.bf16.gmra.mrb[88].mxu1 %v11054_v60  ;;  %5472 = vmatpush1.bf16.msra.mxu0 %v8385_v45  ;;  %v2753_v42 = vadd.f32 %v7871_v29, %v11161_v33  ;;  %v2599_v0 = vpop.f32.mrb[7].mxu1  ;;  %v2784_v21 = vmax.f32 %v2752_v7, 0.0  ;;  %v4253_v44 = vor.u32 %v4252_v20, %v4249_v2 }
 0x320   : > { %7391 = vmatprep.mubr.msk.bf16.mxu1 %vm457_vm0, %v12268_v37  ;;  %5748 = vmatprep.subr.bf16.mxu1 %v12221_v49  ;;  %v2751_v27 = vadd.f32 %v11161_v33, %v2599_v0  ;;  %v2782_v62 = vmax.f32 %v2750_v63, 0.0  ;;  %v4261_v45 = vor.u32 %v4260_v13, %v4257_v58  ;;  %v8392_v63 = vld [vmem:[%s12080_s5 + $0x138] sm:$0xff]   ;;  %v8391_v58 = vld [vmem:[%s12080_s5 + $0x180] sm:$0xff]  }
 0x321   : > { %3860 = vrot.lane.b32.xlu0 %v3821_v1, %s8524_s30  ;;  %5749 = vmatpush1.bf16.msra.mxu1 %v8386_v38  ;;  %v2785_v48 = vmax.f32 %v2753_v42, 0.0  ;;  %v12292_v38 = vld [vmem:[#allocation8_spill] sm:$0xff]  ;;  %v12295_v42 = vld [vmem:[#allocation14_spill] sm:$0xff] }
 0x322   : > { %3858 = vrot.lane.b32.xlu1 %v3818_v25, %s8524_s30  ;;  %5473 = vmatprep.subr.bf16.mxu0 %v12221_v49  ;;  %v2783_v17 = vmax.f32 %v2751_v27, 0.0  ;;  %v12293_v7 = vpack.c.bf16 %v12291_v5, %v12292_v38  ;;  %v4262_v2 = vsel %vm3922_vm5, %v4253_v44, %v4261_v45  ;;  %v12300_v38 = vld [vmem:[#allocation10_spill] sm:$0xff] }
 0x323   : > { %5474 = vmatpush1.bf16.msra.mxu0 %v8387_v19  ;;  %5750 = vmatprep.subr.bf16.mxu1 %v12221_v49  ;;  %v11252_v53 = vpack.c.bf16 %v2785_v48, %v2784_v21  ;;  %v12294_v19 = vld [vmem:[#allocation17_spill] sm:$0xff] }
 0x324   : > { %5475 = vmatprep.subr.bf16.mxu0 %v12221_v49  ;;  %v11258_v52 = vpack.c.bf16 %v2783_v17, %v2782_v62  ;;  %v7874_v25 = vpop.f32.mrb[8].mxu1  ;;  %v12296_v0 = vpack.c.bf16 %v12294_v19, %v12295_v42  ;;  %v8393_v17 = vld [vmem:[%s12080_s5 + $0x188] sm:$0xff]  }
 0x325   : > { %5002 = vmatmul.mubr.bf16.gmra.mrb[68].mxu0 %v11021_v54  ;;  %6245 = vrot.lane.b32.xlu0 %v12293_v7, %s8524_s30  ;;  %v2756_v55 = vadd.f32 %v7874_v25, %v11161_v33  ;;  %v2612_v10 = vpop.f32.mrb[9].mxu1  ;;  %v12301_v7 = vld [vmem:[#allocation7_spill] sm:$0xff] }
 0x326   : > { %3700 = vrot.lane.b32.xlu1 %v3661_v32, %s8525_s14  ;;  %7346 = vmatprep.mubr.msk.bf16.mxu0 %vm457_vm0, %v10789_v50  ;;  %v2754_v1 = vadd.f32 %v11161_v33, %v2612_v10  ;;  %v7875_v36 = vpop.f32.mrb[10].mxu1  ;;  %s377_s14 = sand.u32 1, %s8513_s18  }
 0x327   : > { %5247 = vmatmul.mubr.bf16.gmra.mrb[92].mxu1 %v10883_v31  ;;  %5476 = vmatpush1.bf16.msra.mxu0 %v8390_v24  ;;  %v2757_v29 = vadd.f32 %v7875_v36, %v11161_v33  ;;  %v2615_v20 = vpop.f32.mrb[11].mxu1  ;;  %v2788_v27 = vmax.f32 %v2756_v55, 0.0  ;;  %v12297_v24 = vld [vmem:[#allocation22_spill] sm:$0xff]  ;;  %v12302_v55 = vpack.c.bf16 %v12300_v38, %v12301_v7  ;;  %v12312_v38 = vld [vmem:[#allocation21_spill] sm:$0xff]  ;;  %s6986_s13 = sshll.u32 %s377_s14, 8  ;;  %s12034_s21 = scalar_lea.sflag [#allocation5], %s377_s14 }
 0x328   : > { %7392 = vmatprep.mubr.msk.bf16.mxu1 %vm457_vm0, %v10888_v23  ;;  %5751 = vmatpush1.bf16.msra.mxu1 %v8388_v22  ;;  %v2755_v13 = vadd.f32 %v11161_v33, %v2615_v20  ;;  %v2786_v48 = vmax.f32 %v2754_v1, 0.0  ;;  %v12298_v22 = vld [vmem:[#allocation19_spill] sm:$0xff]  ;;  %v12303_v20 = vld [vmem:[#allocation26_spill] sm:$0xff] }
 0x329   : > { %6249 = vrot.lane.b32.xlu0 %v12296_v0, %s8524_s30  ;;  %5752 = vmatprep.subr.bf16.mxu1 %v12221_v49  ;;  %v2789_v21 = vmax.f32 %v2757_v29, 0.0  ;;  %v12299_v25 = vpack.c.bf16 %v12297_v24, %v12298_v22  ;;  %v12306_v0 = vld [vmem:[#allocation16_spill] sm:$0xff]  ;;  %v12309_v24 = vld [vmem:[#allocation30_spill] sm:$0xff] }
 0x32a   : > { %4301 = vrot.lane.b32.xlu1 %v4262_v2, %s12287_s12  ;;  %5477 = vmatprep.subr.bf16.mxu0 %v12221_v49  ;;  %v2787_v32 = vmax.f32 %v2755_v13, 0.0  ;;  %v12310_v22 = vld [vmem:[#allocation28_spill] sm:$0xff]  ;;  %v12313_v7 = vld [vmem:[#allocation18_spill] sm:$0xff]  ;;  %s11899_s12 = scalar_lea.vmem [#allocation4], %s6986_s13  ;;  %s8527_s13 = smov [#allocation4]  }
 0x32b   : > { %5478 = vmatpush1.bf16.msra.mxu0 %v8392_v63  ;;  %v11289_v62 = vpack.c.bf16 %v2789_v21, %v2788_v27  ;;  %v12307_v27 = vld [vmem:[#allocation13_spill] sm:$0xff]  ;;  %s8463_s16 = sshll.u32 %s8527_s13, 4  ;;  %s8464_s16 = int_to_ptr.vmem [resolvable:$false] %s8463_s16 }
 0x32c   : > { %5753 = vmatpush1.bf16.msra.mxu1 %v8391_v58  ;;  %v11294_v44 = vpack.c.bf16 %v2787_v32, %v2786_v48  ;;  %v12304_v58 = vld [vmem:[#allocation24_spill] sm:$0xff]  ;;  %s8465_s22 = scalar_lea.vmem %s8464_s16, 8192 }
 0x32d   : > { %v7878_v45 = vpop.f32.mrb[12].mxu1  ;;  %5010 = vmatmul.mubr.bf16.gmra.mrb[72].mxu0 %v11054_v60  ;;  %6253 = vrot.lane.b32.xlu0 %v12299_v25, %s8524_s30  ;;  %v12305_v13 = vpack.c.bf16 %v12303_v20, %v12304_v58  ;;  %v12311_v25 = vpack.c.bf16 %v12309_v24, %v12310_v22  ;;  %v12315_v58 = vld [vmem:[#allocation35_spill] sm:$0xff] }
 0x32e   : > { %v2760_v5 = vadd.f32 %v7878_v45, %v11161_v33  ;;  %6247 = vrot.lane.b32.xlu1 %v12302_v55, %s8524_s30  ;;  %v2628_v10 = vpop.f32.mrb[13].mxu1  ;;  %7347 = vmatprep.mubr.msk.bf16.mxu0 %vm457_vm0, %v12268_v37  ;;  %v12314_v55 = vpack.c.bf16 %v12312_v38, %v12313_v7 }
 0x32f   : > { %v2758_v1 = vadd.f32 %v11161_v33, %v2628_v10  ;;  %v7879_v36 = vpop.f32.mrb[14].mxu1  ;;  %5255 = vmatmul.mubr.bf16.gmra.mrb[96].mxu1 %v10906_v57  ;;  %5754 = vmatprep.subr.bf16.mxu1 %v12221_v49  ;;  %v12308_v49 = vpack.c.bf16 %v12306_v0, %v12307_v27 }
 0x330   : > { %v2761_v2 = vadd.f32 %v7879_v36, %v11161_v33  ;;  %v2631_v63 = vpop.f32.mrb[15].mxu1  ;;  %7393 = vmatprep.mubr.msk.bf16.mxu1 %vm457_vm0, %v10910_v51  ;;  %5755 = vmatpush1.bf16.msra.mxu1 %v8393_v17  ;;  %v2792_v19 = vmax.f32 %v2760_v5, 0.0 }
 0x331   : > { %v2759_v29 = vadd.f32 %v11161_v33, %v2631_v63  ;;  %6257 = vrot.lane.b32.xlu0 %v12305_v13, %s8524_s30  ;;  %v2790_v21 = vmax.f32 %v2758_v1, 0.0  ;;  %v11342_v1 = vld [vmem:[%s12083_s8] sm:$0xff]   ;;  %v12316_v13 = vld [vmem:[#allocation32_spill] sm:$0xff] }
 0x332   : > { %v2793_v42 = vmax.f32 %v2761_v2, 0.0  ;;  %6251 = vrot.lane.b32.xlu1 %v12308_v49, %s8524_s30  ;;  %7896 = vmatprep.subr.bf16.mxu0 %v11342_v1  ;;  %v12318_v49 = vld [vmem:[#allocation25_spill] sm:$0xff] }
 0x333   : > { %v2791_v48 = vmax.f32 %v2759_v29, 0.0 }
 0x334   : > { %v11323_v32 = vpack.c.bf16 %v2793_v42, %v2792_v19  ;;  %v12317_v19 = vpack.c.bf16 %v12315_v58, %v12316_v13 }
 0x335   : > { %v11325_v45 = vpack.c.bf16 %v2791_v48, %v2790_v21  ;;  %v7882_v17 = vpop.f32.mrb[16].mxu1  ;;  %5018 = vmatmul.mubr.bf16.gmra.mrb[76].mxu0 %v10883_v31  ;;  %6261 = vrot.lane.b32.xlu0 %v12311_v25, %s8524_s30  ;;  %v12319_v21 = vld [vmem:[#allocation23_spill] sm:$0xff] }
 0x336   : > { %v2764_v5 = vadd.f32 %v7882_v17, %v11161_v33  ;;  %6255 = vrot.lane.b32.xlu1 %v12314_v55, %s8524_s30  ;;  %v2644_v10 = vpop.f32.mrb[17].mxu1  ;;  %7348 = vmatprep.mubr.msk.bf16.mxu0 %vm457_vm0, %v10888_v23  ;;  %v12320_v48 = vpack.c.bf16 %v12318_v49, %v12319_v21 }
 0x337   : > { %v2762_v36 = vadd.f32 %v11161_v33, %v2644_v10  ;;  %v7883_v2 = vpop.f32.mrb[18].mxu1  ;;  %5263 = vmatmul.mubr.bf16.gmra.mrb[100].mxu1 %v10956_v8  ;;  %v11355_v42 = vpop.f32.mrb[32].mxu0 }
 0x338   : > { %v2765_v63 = vadd.f32 %v7883_v2, %v11161_v33  ;;  %v2647_v29 = vpop.f32.mrb[19].mxu1  ;;  %7394 = vmatprep.mubr.msk.bf16.mxu1 %vm457_vm0, %v10960_v41  ;;  %v2796_v0 = vmax.f32 %v2764_v5, 0.0  ;;  %v4749_v17 = vpop.f32.mrb[33].mxu0  ;;  %v12321_v5 = vld [vmem:[#allocation41_spill] sm:$0xff] }
 0x339   : > { %v2763_v20 = vadd.f32 %v11161_v33, %v2647_v29  ;;  %6265 = vrot.lane.b32.xlu0 %v12317_v19, %s8524_s30  ;;  %v2794_v24 = vmax.f32 %v2762_v36, 0.0  ;;  %v11361_v25 = vpop.f32.mrb[34].mxu0  ;;  %v12322_v2 = vld [vmem:[#allocation37_spill] sm:$0xff]  ;;  %v12328_v17 = vld [vmem:[#allocation43_spill] sm:$0xff] }
 0x33a   : > { %v2797_v27 = vmax.f32 %v2765_v63, 0.0  ;;  %6259 = vrot.lane.b32.xlu1 %v12320_v48, %s8524_s30  ;;  %v4752_v7 = vpop.f32.mrb[35].mxu0  ;;  %v12323_v63 = vpack.c.bf16 %v12321_v5, %v12322_v2  ;;  %v12324_v36 = vld [vmem:[#allocation29_spill] sm:$0xff]  ;;  %v12331_v5 = vld [vmem:[#allocation31_spill] sm:$0xff] }
 0x33b   : > { %v2795_v22 = vmax.f32 %v2763_v20, 0.0  ;;  %v12325_v20 = vld [vmem:[#allocation27_spill] sm:$0xff]  ;;  %v12327_v48 = vld [vmem:[#allocation49_spill] sm:$0xff] }
 0x33c   : > { %v11363_v38 = vpack.c.bf16 %v2797_v27, %v2796_v0  ;;  %v12326_v58 = vpack.c.bf16 %v12324_v36, %v12325_v20 }
 0x33d   : > { %v11365_v55 = vpack.c.bf16 %v2795_v22, %v2794_v24  ;;  %v7886_v10 = vpop.f32.mrb[20].mxu1  ;;  %5026 = vmatmul.mubr.bf16.gmra.mrb[80].mxu0 %v10906_v57  ;;  %6269 = vrot.lane.b32.xlu0 %v12323_v63, %s8524_s30  ;;  %v12329_v24 = vpack.c.bf16 %v12327_v48, %v12328_v17 }
 0x33e   : > { %v2768_v29 = vadd.f32 %v7886_v10, %v11161_v33  ;;  %6263 = vrot.lane.b32.xlu1 %v12326_v58, %s8524_s30  ;;  %v2660_v13 = vpop.f32.mrb[21].mxu1  ;;  %7349 = vmatprep.mubr.msk.bf16.mxu0 %vm457_vm0, %v10910_v51  ;;  %v12330_v10 = vld [vmem:[#allocation33_spill] sm:$0xff] }
 0x33f   : > { %v2766_v19 = vadd.f32 %v11161_v33, %v2660_v13  ;;  %v7887_v0 = vpop.f32.mrb[22].mxu1  ;;  %5271 = vmatmul.mubr.bf16.gmra.mrb[104].mxu1 %v10968_v34  ;;  %v12332_v2 = vpack.c.bf16 %v12330_v10, %v12331_v5  ;;  %v12336_v5 = vld [vmem:[#allocation46_spill] sm:$0xff] }
 0x340   : > { %v2769_v27 = vadd.f32 %v7887_v0, %v11161_v33  ;;  %v2663_v49 = vpop.f32.mrb[23].mxu1  ;;  %7395 = vmatprep.mubr.msk.bf16.mxu1 %vm457_vm0, %v10972_v35  ;;  %v2800_v22 = vmax.f32 %v2768_v29, 0.0  ;;  %v12334_v29 = vld [vmem:[#allocation36_spill] sm:$0xff] }
 0x341   : > { %v2767_v21 = vadd.f32 %v11161_v33, %v2663_v49  ;;  %6273 = vrot.lane.b32.xlu0 %v12329_v24, %s8524_s30  ;;  %v2798_v63 = vmax.f32 %v2766_v19, 0.0  ;;  %v12333_v49 = vld [vmem:[#allocation40_spill] sm:$0xff] }
 0x342   : > { %v2801_v7 = vmax.f32 %v2769_v27, 0.0  ;;  %6267 = vrot.lane.b32.xlu1 %v12332_v2, %s8524_s30  ;;  %v12335_v27 = vpack.c.bf16 %v12333_v49, %v12334_v29  ;;  %v12337_v2 = vld [vmem:[#allocation42_spill] sm:$0xff] }
 0x343   : > { %v2799_v36 = vmax.f32 %v2767_v21, 0.0 }
 0x344   : > { %v11393_v20 = vpack.c.bf16 %v2801_v7, %v2800_v22 }
 0x345   : > { %v11395_v58 = vpack.c.bf16 %v2799_v36, %v2798_v63  ;;  %v7890_v13 = vpop.f32.mrb[24].mxu1  ;;  %5034 = vmatmul.mubr.bf16.gmra.mrb[84].mxu0 %v10956_v8  ;;  %v12338_v63 = vpack.c.bf16 %v12336_v5, %v12337_v2 }
 0x346   : > { %v2772_v0 = vadd.f32 %v7890_v13, %v11161_v33  ;;  %6271 = vrot.lane.b32.xlu1 %v12335_v27, %s8524_s30  ;;  %v2676_v48 = vpop.f32.mrb[25].mxu1  ;;  %7350 = vmatprep.mubr.msk.bf16.mxu0 %vm457_vm0, %v10960_v41 }
 0x347   : > { %v2770_v19 = vadd.f32 %v11161_v33, %v2676_v48  ;;  %v7891_v21 = vpop.f32.mrb[26].mxu1  ;;  %5279 = vmatmul.mubr.bf16.gmra.mrb[108].mxu1 %v10980_v3 }
 0x348   : > { %v2773_v17 = vadd.f32 %v7891_v21, %v11161_v33  ;;  %v2679_v24 = vpop.f32.mrb[27].mxu1  ;;  %7396 = vmatprep.mubr.msk.bf16.mxu1 %vm457_vm0, %v10984_v47  ;;  %v2804_v7 = vmax.f32 %v2772_v0, 0.0 }
 0x349   : > { %v2771_v22 = vadd.f32 %v11161_v33, %v2679_v24  ;;  %v2802_v36 = vmax.f32 %v2770_v19, 0.0 }
 0x34a   : > { %v2805_v10 = vmax.f32 %v2773_v17, 0.0  ;;  %6275 = vrot.lane.b32.xlu1 %v12338_v63, %s8524_s30  ;;  %s6920_s30 = sshll.u32 %s11899_s12, 4  ;;  %s12023_s30 = int_to_ptr.vmem [resolvable:$true] %s6920_s30 }
 0x34b   : > { %v2803_v13 = vmax.f32 %v2771_v22, 0.0  ;;  %s8459_s29 = scalar_lea.vmem %s12023_s30, 4096  ;;  %p8466_p0 = scmp.lt.s32.totalorder %s12023_s30, %s8464_s16 }
 0x34c   : > { %v11415_v49 = vpack.c.bf16 %v2805_v10, %v2804_v7  ;;  %p8460_p11 = scmp.ne.s32.totalorder %s12023_s30, %s8459_s29  ;;  %p8467_p1 = scmp.lt.s32.totalorder %s8465_s22, %s8459_s29 }
 0x34d   : > { %v11417_v29 = vpack.c.bf16 %v2803_v13, %v2802_v36  ;;  %v7894_v27 = vpop.f32.mrb[28].mxu1  ;;  %5042 = vmatmul.mubr.bf16.gmra.mrb[88].mxu0 %v10968_v34 }
 0x34e   : > { %v2776_v48 = vadd.f32 %v7894_v27, %v11161_v33  ;;  %v2692_v21 = vpop.f32.mrb[29].mxu1  ;;  %7351 = vmatprep.mubr.msk.bf16.mxu0 %vm457_vm0, %v10972_v35  ;;  %p8461_p12 = pnand %p8460_p11, %p8628_p5  ;;  %p8468_p2 = por %p8467_p1, %p8466_p0 }
 0x34f   : > { %v2774_v0 = vadd.f32 %v11161_v33, %v2692_v21  ;;  %v7895_v17 = vpop.f32.mrb[30].mxu1  ;;  %5287 = vmatmul.mubr.bf16.gmra.mrb[112].mxu1 %v10992_v14 }
 0x350   : > { %v2777_v19 = vadd.f32 %v7895_v17, %v11161_v33  ;;  %v2695_v24 = vpop.f32.mrb[31].mxu1  ;;  %7397 = vmatprep.mubr.msk.bf16.mxu1 %vm457_vm0, %v10751_v11  ;;  %v2808_v7 = vmax.f32 %v2776_v48, 0.0  ;;  %p8462_p13 = pneg %p8461_p12 }
 0x351   : > { %v2775_v22 = vadd.f32 %v11161_v33, %v2695_v24  ;;  %v2806_v5 = vmax.f32 %v2774_v0, 0.0  ;;  %v8395_v24 = vld [vmem:[%s12083_s8 + $0x8] sm:$0xff]  }
 0x352   : > { %v2809_v10 = vmax.f32 %v2777_v19, 0.0  ;;  %p8469_p3 = pnand %p8468_p2, %p8462_p13 }
 0x353   : > { %v2807_v2 = vmax.f32 %v2775_v22, 0.0 }
 0x354   : > { %v11429_v63 = vpack.c.bf16 %v2809_v10, %v2808_v7 }
 0x355   : > { %v11431_v36 = vpack.c.bf16 %v2807_v2, %v2806_v5  ;;  %5050 = vmatmul.mubr.bf16.gmra.mrb[92].mxu0 %v10980_v3 }
 0x356   : > { %12339 = vst [vmem:[#allocation9_spill] sm:$0xff] %v11429_v63  ;;  %7352 = vmatprep.mubr.msk.bf16.mxu0 %vm457_vm0, %v10984_v47 }
 0x357   : > { %5295 = vmatmul.mubr.bf16.gmra.mrb[116].mxu1 %v11010_v16 }
 0x358   : > { %7398 = vmatprep.mubr.msk.bf16.mxu1 %vm457_vm0, %v10772_v43 }
 0x35d   : > { %5058 = vmatmul.mubr.bf16.gmra.mrb[96].mxu0 %v10992_v14 }
 0x35e   : > { %7353 = vmatprep.mubr.msk.bf16.mxu0 %vm457_vm0, %v10751_v11 }
 0x35f   : > { %5303 = vmatmul.mubr.bf16.gmra.mrb[120].mxu1 %v11028_v61 }
 0x360   : > { %7399 = vmatprep.mubr.msk.bf16.mxu1 %vm457_vm0, %v10777_v9 }
 0x363   : > { %v11445_v33 = vpop.f32.mrb[32].mxu1 }
 0x364   : > { %v4789_v13 = vpop.f32.mrb[33].mxu1 }
 0x365   : > { %5066 = vmatmul.mubr.bf16.gmra.mrb[100].mxu0 %v11010_v16  ;;  %v11448_v27 = vpop.f32.mrb[34].mxu1 }
 0x366   : > { %7354 = vmatprep.mubr.msk.bf16.mxu0 %vm457_vm0, %v10772_v43  ;;  %v4792_v48 = vpop.f32.mrb[35].mxu1 }
 0x367   : > { %5311 = vmatmul.mubr.bf16.gmra.mrb[124].mxu1 %v11037_v40 }
 0x368   : > { %7400 = vmatprep.mubr.msk.bf16.mxu1 %vm457_vm0, %v10792_v26 }
 0x36b   : > { %v11455_v21 = vpop.f32.mrb[36].mxu1 }
 0x36c   : > { %v4797_v0 = vpop.f32.mrb[37].mxu1 }
 0x36d   : > { %5074 = vmatmul.mubr.bf16.gmra.mrb[104].mxu0 %v11028_v61  ;;  %v11458_v17 = vpop.f32.mrb[38].mxu1 }
 0x36e   : > { %7355 = vmatprep.mubr.msk.bf16.mxu0 %vm457_vm0, %v10777_v9  ;;  %v4800_v19 = vpop.f32.mrb[39].mxu1 }
 0x36f   : > { %5319 = vmatmul.mubr.bf16.gmra.mrb[128].mxu1 %v11051_v30 }
 0x370   : > { %7401 = vmatprep.mubr.msk.bf16.mxu1 %vm457_vm0, %v10814_v59 }
 0x375   : > { %5082 = vmatmul.mubr.bf16.gmra.mrb[108].mxu0 %v11037_v40 }
 0x376   : > { %7356 = vmatprep.mubr.msk.bf16.mxu0 %vm457_vm0, %v10792_v26 }
 0x377   : > { %5327 = vmatmul.mubr.bf16.gmra.mrb[132].mxu1 %v11066_v4 }
 0x378   : > { %7402 = vmatprep.mubr.msk.bf16.mxu1 %vm457_vm0, %v11174_v46 }
 0x37d   : > { %5090 = vmatmul.mubr.bf16.gmra.mrb[112].mxu0 %v11051_v30 }
 0x37e   : > { %7433 = vmatprep.mubr.msk.bf16.mxu0 %vm457_vm0, %v10727_v12 }
 0x385   : > { %5492 = vmatmul.mubr.bf16.vlgmr.msra.gmra.mrb[116].mxu0 %v11001_v28 }
 0x386   : > { %7434 = vmatprep.mubr.msk.bf16.mxu0 %vm457_vm0, %v10759_v15  ;;  %7897 = vmatpush3.bf16.msra.mxu0 %v11342_v1 }
 0x387   : > { %7898 = vmatprep.subr.bf16.mxu0 %v8395_v24  ;;  %v11481_v22 = vpop.f32.mrb[36].mxu0  ;;  %v3857_v28 = vpop.permute.xlu0 %3856 }
 0x388   : > { %v4757_v7 = vpop.f32.mrb[37].mxu0 }
 0x389   : > { %v11483_v10 = vpop.f32.mrb[38].mxu0 }
 0x38a   : > { %7899 = vmatpush3.bf16.msra.mxu0 %v8395_v24  ;;  %v4760_v5 = vpop.f32.mrb[39].mxu0 }
 0x38b   : > { %v3697_v12 = vpop.permute.xlu1 %3696 }
 0x38c   : > { %v4459_v2 = vsel %vm457_vm0, %v11142_v18, %v3697_v12 }
 0x38d   : > { %5500 = vmatmul.mubr.bf16.gmra.mrb[120].mxu0 %v11021_v54  ;;  %v4499_v48 = vsel %vm2004_vm2, %v4459_v2, %v3857_v28 }
 0x38e   : > { %7435 = vmatprep.mubr.msk.bf16.mxu0 %vm457_vm0, %v10789_v50 }
 0x38f   : > { %v11490_v1 = vpop.f32.mrb[40].mxu1 }
 0x390   : > { %v4298_v13 = vpop.permute.xlu1 %4297  ;;  %v4805_v0 = vpop.f32.mrb[41].mxu1 }
 0x391   : > { %v11494_v19 = vsel %vm2102_vm3, %v4499_v48, %v4298_v13  ;;  %v11497_v24 = vpop.f32.mrb[42].mxu1 }
 0x392   : > { %5335 = vmatmul.mubr.bf16.gmra.mrb[136].mxu1 %v11494_v19  ;;  %v4808_v18 = vpop.f32.mrb[43].mxu1 }
 0x393   : > { %7479 = vmatprep.mubr.msk.bf16.mxu1 %vm457_vm0, %v10759_v15 }
 0x395   : > { %5508 = vmatmul.mubr.bf16.gmra.mrb[124].mxu0 %v11054_v60 }
 0x396   : > { %7436 = vmatprep.mubr.msk.bf16.mxu0 %vm457_vm0, %v12268_v37 }
 0x397   : > { %v11504_v7 = vpop.f32.mrb[44].mxu1 }
 0x398   : > { %v4813_v5 = vpop.f32.mrb[45].mxu1 }
 0x399   : > { %v11507_v12 = vpop.f32.mrb[46].mxu1 }
 0x39a   : > { %5769 = vmatmul.mubr.bf16.vlgmr.msra.gmra.mrb[140].mxu1 %v11021_v54  ;;  %v4816_v2 = vpop.f32.mrb[47].mxu1 }
 0x39b   : > { %7480 = vmatprep.mubr.msk.bf16.mxu1 %vm457_vm0, %v10789_v50 }
 0x39d   : > { %5516 = vmatmul.mubr.bf16.gmra.mrb[128].mxu0 %v10883_v31 }
 0x39e   : > { %7437 = vmatprep.mubr.msk.bf16.mxu0 %vm457_vm0, %v10888_v23 }
 0x3a0   : > { %v11514_v15 = vpop.f32.mrb[48].mxu1 }
 0x3a1   : > { %v4821_v28 = vpop.f32.mrb[49].mxu1 }
 0x3a2   : > { %5777 = vmatmul.mubr.bf16.gmra.mrb[144].mxu1 %v11054_v60  ;;  %v11517_v13 = vpop.f32.mrb[50].mxu1 }
 0x3a3   : > { %7481 = vmatprep.mubr.msk.bf16.mxu1 %vm457_vm0, %v12268_v37  ;;  %v4824_v54 = vpop.f32.mrb[51].mxu1 }
 0x3a5   : > { %5524 = vmatmul.mubr.bf16.gmra.mrb[132].mxu0 %v10906_v57 }
 0x3a6   : > { %7438 = vmatprep.mubr.msk.bf16.mxu0 %vm457_vm0, %v10910_v51 }
 0x3a8   : > { %v11524_v50 = vpop.f32.mrb[52].mxu1 }
 0x3a9   : > { %v4829_v48 = vpop.f32.mrb[53].mxu1 }
 0x3aa   : > { %5785 = vmatmul.mubr.bf16.gmra.mrb[148].mxu1 %v10883_v31  ;;  %v11527_v0 = vpop.f32.mrb[54].mxu1 }
 0x3ab   : > { %7482 = vmatprep.mubr.msk.bf16.mxu1 %vm457_vm0, %v10888_v23  ;;  %v4832_v60 = vpop.f32.mrb[55].mxu1  ;;  %v11531_v18 = vpop.f32.mrb[40].mxu0 }
 0x3ac   : > { %v4765_v37 = vpop.f32.mrb[41].mxu0 }
 0x3ad   : > { %5532 = vmatmul.mubr.bf16.gmra.mrb[136].mxu0 %v10956_v8  ;;  %v11534_v5 = vpop.f32.mrb[42].mxu0 }
 0x3ae   : > { %7439 = vmatprep.mubr.msk.bf16.mxu0 %vm457_vm0, %v10960_v41  ;;  %v4768_v2 = vpop.f32.mrb[43].mxu0 }
 0x3b2   : > { %5793 = vmatmul.mubr.bf16.gmra.mrb[152].mxu1 %v10906_v57  ;;  %v11539_v31 = vpop.f32.mrb[56].mxu1  ;;  %v11553_v57 = vld [vmem:[%s12082_s7] sm:$0xff]  }
 0x3b3   : > { %7483 = vmatprep.mubr.msk.bf16.mxu1 %vm457_vm0, %v10910_v51  ;;  %v4837_v23 = vpop.f32.mrb[57].mxu1  ;;  %7932 = vmatprep.subr.bf16.mxu0 %v11553_v57 }
 0x3b4   : > { %v11543_v28 = vpop.f32.mrb[58].mxu1 }
 0x3b5   : > { %v4840_v54 = vpop.f32.mrb[59].mxu1  ;;  %5540 = vmatmul.mubr.bf16.gmra.mrb[140].mxu0 %v10968_v34 }
 0x3b6   : > { %v11546_v48 = vpop.f32.mrb[44].mxu0  ;;  %7440 = vmatprep.mubr.msk.bf16.mxu0 %vm457_vm0, %v10972_v35 }
 0x3b7   : > { %v4773_v60 = vpop.f32.mrb[45].mxu0 }
 0x3b8   : > { %v11555_v37 = vpop.f32.mrb[46].mxu0 }
 0x3b9   : > { %v4776_v51 = vpop.f32.mrb[47].mxu0 }
 0x3ba   : > { %5801 = vmatmul.mubr.bf16.gmra.mrb[156].mxu1 %v10956_v8  ;;  %v11559_v2 = vpop.f32.mrb[60].mxu1 }
 0x3bb   : > { %12340 = vst [vmem:[#allocation47_spill] sm:$0xff] %v11559_v2  ;;  %7484 = vmatprep.mubr.msk.bf16.mxu1 %vm457_vm0, %v10960_v41  ;;  %v4845_v23 = vpop.f32.mrb[61].mxu1 }
 0x3bc   : > { %v11563_v54 = vpop.f32.mrb[62].mxu1 }
 0x3bd   : > { %12341 = vst [vmem:[#allocation38_spill] sm:$0xff] %v11563_v54  ;;  %v4848_v63 = vpop.f32.mrb[63].mxu1  ;;  %5548 = vmatmul.mubr.bf16.gmra.mrb[144].mxu0 %v10980_v3 }
 0x3be   : > { %7441 = vmatprep.mubr.msk.bf16.mxu0 %vm457_vm0, %v10984_v47 }
 0x3c2   : > { %5809 = vmatmul.mubr.bf16.gmra.mrb[160].mxu1 %v10968_v34  ;;  %v11569_v60 = vpop.f32.mrb[64].mxu1 }
 0x3c3   : > { %12342 = vst [vmem:[#allocation44_spill] sm:$0xff] %v11569_v60  ;;  %7485 = vmatprep.mubr.msk.bf16.mxu1 %vm457_vm0, %v10972_v35  ;;  %v4853_v8 = vpop.f32.mrb[65].mxu1 }
 0x3c4   : > { %v11573_v51 = vpop.f32.mrb[66].mxu1 }
 0x3c5   : > { %12343 = vst [vmem:[#allocation45_spill] sm:$0xff] %v11573_v51  ;;  %v4856_v41 = vpop.f32.mrb[67].mxu1  ;;  %5556 = vmatmul.mubr.bf16.gmra.mrb[148].mxu0 %v10992_v14 }
 0x3c6   : > { %7442 = vmatprep.mubr.msk.bf16.mxu0 %vm457_vm0, %v10751_v11 }
 0x3ca   : > { %5817 = vmatmul.mubr.bf16.gmra.mrb[164].mxu1 %v10980_v3  ;;  %v11579_v63 = vpop.f32.mrb[48].mxu0  ;;  %v11581_v23 = vpop.f32.mrb[68].mxu1 }
 0x3cb   : > { %12344 = vst [vmem:[#allocation48_spill] sm:$0xff] %v11581_v23  ;;  %7486 = vmatprep.mubr.msk.bf16.mxu1 %vm457_vm0, %v10984_v47  ;;  %v4781_v34 = vpop.f32.mrb[49].mxu0  ;;  %v4861_v35 = vpop.f32.mrb[69].mxu1 }
 0x3cc   : > { %v11585_v8 = vpop.f32.mrb[50].mxu0  ;;  %v11587_v51 = vpop.f32.mrb[70].mxu1 }
 0x3cd   : > { %12345 = vst [vmem:[#allocation12_spill] sm:$0xff] %v11587_v51  ;;  %v4784_v41 = vpop.f32.mrb[51].mxu0  ;;  %v4864_v60 = vpop.f32.mrb[71].mxu1  ;;  %5564 = vmatmul.mubr.bf16.gmra.mrb[152].mxu0 %v11010_v16 }
 0x3ce   : > { %7443 = vmatprep.mubr.msk.bf16.mxu0 %vm457_vm0, %v10772_v43 }
 0x3d2   : > { %5825 = vmatmul.mubr.bf16.gmra.mrb[168].mxu1 %v10992_v14  ;;  %v11593_v3 = vpop.f32.mrb[72].mxu1 }
 0x3d3   : > { %12346 = vst [vmem:[#allocation39_spill] sm:$0xff] %v11593_v3  ;;  %7487 = vmatprep.mubr.msk.bf16.mxu1 %vm457_vm0, %v10751_v11  ;;  %v4869_v47 = vpop.f32.mrb[73].mxu1 }
 0x3d4   : > { %v11597_v34 = vpop.f32.mrb[74].mxu1 }
 0x3d5   : > { %12347 = vst [vmem:[#allocation57_spill] sm:$0xff] %v11597_v34  ;;  %v4872_v35 = vpop.f32.mrb[75].mxu1  ;;  %5572 = vmatmul.mubr.bf16.gmra.mrb[156].mxu0 %v11028_v61 }
 0x3d6   : > { %7444 = vmatprep.mubr.msk.bf16.mxu0 %vm457_vm0, %v10777_v9 }
 0x3d8   : > { %v4971_v60 = vpop.f32.mrb[52].mxu0 }
 0x3d9   : > { %v4972_v41 = vadd.f32 %v4971_v60, %v11355_v42  ;;  %v4973_v51 = vpop.f32.mrb[53].mxu0 }
 0x3da   : > { %5833 = vmatmul.mubr.bf16.gmra.mrb[172].mxu1 %v11010_v16  ;;  %v4974_v14 = vpop.f32.mrb[54].mxu0  ;;  %v5216_v3 = vpop.f32.mrb[76].mxu1 }
 0x3db   : > { %v4975_v23 = vadd.f32 %v4974_v14, %v11361_v25  ;;  %v11605_v11 = vadd.f32 %v5216_v3, %v4972_v41  ;;  %7488 = vmatprep.mubr.msk.bf16.mxu1 %vm457_vm0, %v10772_v43  ;;  %v4976_v47 = vpop.f32.mrb[55].mxu0  ;;  %v5218_v35 = vpop.f32.mrb[77].mxu1 }
 0x3dc   : > { %v5219_v34 = vpop.f32.mrb[78].mxu1 }
 0x3dd   : > { %v11609_v54 = vadd.f32 %v5219_v34, %v4975_v23  ;;  %v5221_v2 = vpop.f32.mrb[79].mxu1  ;;  %5580 = vmatmul.mubr.bf16.gmra.mrb[160].mxu0 %v11037_v40 }
 0x3de   : > { %7445 = vmatprep.mubr.msk.bf16.mxu0 %vm457_vm0, %v10792_v26 }
 0x3e0   : > { %v4979_v16 = vpop.f32.mrb[56].mxu0 }
 0x3e1   : > { %v4980_v42 = vadd.f32 %v4979_v16, %v11481_v22  ;;  %v4981_v25 = vpop.f32.mrb[57].mxu0  ;;  %v3260_v22 = vld [vmem:[#allocation3 + $0xd8] sm:$0xc] }
 0x3e2   : > { %5841 = vmatmul.mubr.bf16.gmra.mrb[176].mxu1 %v11028_v61  ;;  %v4982_v51 = vpop.f32.mrb[58].mxu0  ;;  %v5224_v3 = vpop.f32.mrb[80].mxu1 }
 0x3e3   : > { %v4983_v43 = vadd.f32 %v4982_v51, %v11483_v10  ;;  %v11617_v60 = vadd.f32 %v5224_v3, %v4980_v42  ;;  %7489 = vmatprep.mubr.msk.bf16.mxu1 %vm457_vm0, %v10777_v9  ;;  %v4984_v2 = vpop.f32.mrb[59].mxu0  ;;  %v5226_v23 = vpop.f32.mrb[81].mxu1  ;;  %v8424_v3 = vld [vmem:[#allocation3 + $0xdc] sm:$0xf] }
 0x3e4   : > { %v5227_v34 = vpop.f32.mrb[82].mxu1 }
 0x3e5   : > { %v11621_v41 = vadd.f32 %v5227_v34, %v4983_v43  ;;  %v5229_v14 = vpop.f32.mrb[83].mxu1  ;;  %5588 = vmatmul.mubr.bf16.gmra.mrb[164].mxu0 %v11051_v30  ;;  %v7283_v43 = vcombine.low %v3260_v22, %v8424_v3  ;;  %v12348_v3 = vld [vmem:[#allocation54_spill] sm:$0xff] }
 0x3e6   : > { %7446 = vmatprep.mubr.msk.bf16.mxu0 %vm457_vm0, %v10814_v59 }
 0x3e8   : > { %v4987_v61 = vpop.f32.mrb[60].mxu0 }
 0x3e9   : > { %v4988_v10 = vadd.f32 %v4987_v61, %v11531_v18  ;;  %v4989_v47 = vpop.f32.mrb[61].mxu0  ;;  %v3699_v61 = vpop.permute.xlu0 %3698 }
 0x3ea   : > { %5849 = vmatmul.mubr.bf16.gmra.mrb[180].mxu1 %v11037_v40  ;;  %v4990_v35 = vpop.f32.mrb[62].mxu0  ;;  %v5232_v9 = vpop.f32.mrb[84].mxu1  ;;  %v4418_v40 = vrot.slane %v7283_v43, 2  ;;  %v4461_v43 = vsel %vm457_vm0, %v12348_v3, %v3699_v61  ;;  %v3261_v3 = vld [vmem:[#allocation3 + $0xe4] sm:$0xc] }
 0x3eb   : > { %v4991_v16 = vadd.f32 %v4990_v35, %v11534_v5  ;;  %v11629_v42 = vadd.f32 %v5232_v9, %v4988_v10  ;;  %7490 = vmatprep.mubr.msk.bf16.mxu1 %vm457_vm0, %v10792_v26  ;;  %v4992_v25 = vpop.f32.mrb[63].mxu0  ;;  %v5234_v51 = vpop.f32.mrb[85].mxu1  ;;  %v8425_v5 = vld [vmem:[#allocation3 + $0xe0] ss:$0 sps:$4 sm:$0x33]  }
 0x3ec   : > { %v5235_v2 = vpop.f32.mrb[86].mxu1  ;;  %v4419_v34 = vrot.slane %v8425_v5, 2 }
 0x3ed   : > { %v11633_v23 = vadd.f32 %v5235_v2, %v4991_v16  ;;  %v5237_v18 = vpop.f32.mrb[87].mxu1  ;;  %5596 = vmatmul.mubr.bf16.gmra.mrb[168].mxu0 %v11066_v4 }
 0x3ee   : > { %7447 = vmatprep.mubr.msk.bf16.mxu0 %vm457_vm0, %v11174_v46  ;;  %v4420_v51 = vsel %vm4363_vm4, %v4418_v40, %v4419_v34  ;;  %v3859_v18 = vpop.permute.xlu1 %3858 }
 0x3f0   : > { %v4995_v14 = vpop.f32.mrb[64].mxu0 }
 0x3f1   : > { %v4996_v26 = vadd.f32 %v4995_v14, %v11546_v48  ;;  %v4997_v10 = vpop.f32.mrb[65].mxu0 }
 0x3f2   : > { %5857 = vmatmul.mubr.bf16.gmra.mrb[184].mxu1 %v11051_v30  ;;  %v4998_v22 = vpop.f32.mrb[66].mxu0  ;;  %v5240_v47 = vpop.f32.mrb[88].mxu1 }
 0x3f3   : > { %v4999_v35 = vadd.f32 %v4998_v22, %v11555_v37  ;;  %v11641_v9 = vadd.f32 %v5240_v47, %v4996_v26  ;;  %7491 = vmatprep.mubr.msk.bf16.mxu1 %vm457_vm0, %v10814_v59  ;;  %v5000_v16 = vpop.f32.mrb[67].mxu0  ;;  %v5242_v25 = vpop.f32.mrb[89].mxu1  ;;  %v4501_v37 = vsel %vm2004_vm2, %v4461_v43, %v3859_v18  ;;  %v8426_v43 = vld [vmem:[#allocation3 + $0xe8] sm:$0xf] }
 0x3f4   : > { %v5243_v48 = vpop.f32.mrb[90].mxu1  ;;  %v4300_v59 = vpop.permute.xlu0 %4299 }
 0x3f5   : > { %v11648_v2 = vadd.f32 %v5243_v48, %v4999_v35  ;;  %v5245_v30 = vpop.f32.mrb[91].mxu1  ;;  %5604 = vmatmul.mubr.bf16.gmra.mrb[172].mxu0 %v11494_v19  ;;  %v4559_v61 = vsel %vm2102_vm3, %v4501_v37, %v4300_v59  ;;  %v7284_v48 = vcombine.low %v3261_v3, %v8426_v43 }
 0x3f6   : > { %7448 = vmatprep.mubr.msk.bf16.mxu0 %vm457_vm0, %v4420_v51 }
 0x3f8   : > { %v5003_v5 = vpop.f32.mrb[68].mxu0 }
 0x3f9   : > { %v5004_v14 = vadd.f32 %v5003_v5, %v11579_v63  ;;  %v5005_v26 = vpop.f32.mrb[69].mxu0 }
 0x3fa   : > { %5865 = vmatmul.mubr.bf16.gmra.mrb[188].mxu1 %v11066_v4  ;;  %v5006_v40 = vpop.f32.mrb[70].mxu0  ;;  %v5248_v34 = vpop.f32.mrb[92].mxu1 }
 0x3fb   : > { %v5007_v10 = vadd.f32 %v5006_v40, %v11585_v8  ;;  %v11657_v22 = vadd.f32 %v5248_v34, %v5004_v14  ;;  %7492 = vmatprep.mubr.msk.bf16.mxu1 %vm457_vm0, %v11174_v46  ;;  %v5008_v47 = vpop.f32.mrb[71].mxu0  ;;  %v5250_v35 = vpop.f32.mrb[93].mxu1  ;;  %v4421_v40 = vrot.slane %v7284_v48, 2 }
 0x3fc   : > { %v5251_v16 = vpop.f32.mrb[94].mxu1 }
 0x3fd   : > { %v11661_v25 = vadd.f32 %v5251_v16, %v5007_v10  ;;  %v5253_v63 = vpop.f32.mrb[95].mxu1  ;;  %5612 = vmatmul.mubr.bf16.gmra.mrb[176].mxu0 %v4559_v61  ;;  %v3701_v10 = vpop.permute.xlu1 %3700 }
 0x3fe   : > { %7900 = vmatprep.mubr.msk.bf16.mxu0 %vm457_vm0, %v11214_v56  ;;  %v8399_v56 = vld [vmem:[%s12082_s7 + $0x8] sm:$0xff]  }
 0x400   : > { %v5011_v4 = vpop.f32.mrb[72].mxu0 }
 0x401   : > { %v5012_v8 = vadd.f32 %v5011_v4, %v11445_v33  ;;  %v5013_v30 = vpop.f32.mrb[73].mxu0  ;;  %v4422_v33 = vrot.slane %v11180_v39, 2 }
 0x402   : > { %5873 = vmatmul.mubr.bf16.gmra.mrb[192].mxu1 %v11494_v19  ;;  %v5014_v46 = vpop.f32.mrb[74].mxu0  ;;  %v5256_v18 = vpop.f32.mrb[96].mxu1 }
 0x403   : > { %v5015_v37 = vadd.f32 %v5014_v46, %v11448_v27  ;;  %v11668_v5 = vadd.f32 %v5256_v18, %v5012_v8  ;;  %v5016_v59 = vpop.f32.mrb[75].mxu0  ;;  %v5258_v14 = vpop.f32.mrb[97].mxu1  ;;  %7493 = vmatprep.mubr.msk.bf16.mxu1 %vm457_vm0, %v4420_v51  ;;  %v11685_v27 = vld [vmem:[%s12084_s9] sm:$0xff]   ;;  %v4423_v39 = vsel %vm4363_vm4, %v4421_v40, %v4422_v33 }
 0x404   : > { %v5259_v26 = vpop.f32.mrb[98].mxu1  ;;  %v4302_v30 = vpop.permute.xlu1 %4301 }
 0x405   : > { %v11675_v34 = vadd.f32 %v5259_v26, %v5015_v37  ;;  %v5261_v19 = vpop.f32.mrb[99].mxu1  ;;  %7901 = vmatmul.mubr.msk.bf16.vlgmr.msra.gmra.mrb[180].mxu0 %vm457_vm0, %v11211_v6 }
 0x406   : > { %7904 = vmatprep.mubr.msk.bf16.mxu0 %vm457_vm0, %v11258_v52  ;;  %7933 = vmatpush3.bf16.msra.mxu0 %v11553_v57  ;;  %v12349_v52 = vld [vmem:[#allocation56_spill] sm:$0xff] }
 0x407   : > { %7934 = vmatprep.subr.bf16.mxu0 %v8399_v56  ;;  %v4463_v57 = vsel %vm457_vm0, %v12349_v52, %v3701_v10 }
 0x408   : > { %v5019_v51 = vpop.f32.mrb[76].mxu0 }
 0x409   : > { %v5020_v47 = vadd.f32 %v5019_v51, %v11455_v21  ;;  %v5021_v35 = vpop.f32.mrb[77].mxu0  ;;  %v3861_v21 = vpop.permute.xlu0 %3860 }
 0x40a   : > { %5881 = vmatmul.mubr.bf16.gmra.mrb[196].mxu1 %v4559_v61  ;;  %v5022_v6 = vpop.f32.mrb[78].mxu0  ;;  %v5264_v16 = vpop.f32.mrb[100].mxu1  ;;  %7935 = vmatpush3.bf16.msra.mxu0 %v8399_v56 }
 0x40b   : > { %v5023_v63 = vadd.f32 %v5022_v6, %v11458_v17  ;;  %v11692_v3 = vadd.f32 %v5264_v16, %v5020_v47  ;;  %v5024_v4 = vpop.f32.mrb[79].mxu0  ;;  %v5266_v43 = vpop.f32.mrb[101].mxu1  ;;  %7494 = vmatprep.mubr.msk.bf16.mxu1 %vm457_vm0, %v4423_v39  ;;  %7968 = vmatprep.subr.bf16.mxu0 %v11685_v27  ;;  %v4503_v17 = vsel %vm2004_vm2, %v4463_v57, %v3861_v21 }
 0x40c   : > { %v5267_v48 = vpop.f32.mrb[102].mxu1  ;;  %v4562_v59 = vsel %vm2102_vm3, %v4503_v17, %v4302_v30 }
 0x40d   : > { %v11696_v8 = vadd.f32 %v5267_v48, %v5023_v63  ;;  %v5269_v61 = vpop.f32.mrb[103].mxu1  ;;  %7905 = vmatmul.mubr.msk.bf16.gmra.mrb[184].mxu0 %vm457_vm0, %v11252_v53 }
 0x40e   : > { %7908 = vmatprep.mubr.msk.bf16.mxu0 %vm457_vm0, %v11294_v44 }
 0x410   : > { %v5027_v46 = vpop.f32.mrb[80].mxu0 }
 0x411   : > { %v5028_v18 = vadd.f32 %v5027_v46, %v11490_v1  ;;  %v5029_v37 = vpop.f32.mrb[81].mxu0 }
 0x412   : > { %5889 = vmatmul.mubr.bf16.gmra.mrb[200].mxu1 %v4562_v59  ;;  %v5030_v14 = vpop.f32.mrb[82].mxu0  ;;  %v5272_v56 = vpop.f32.mrb[104].mxu1 }
 0x413   : > { %v5031_v26 = vadd.f32 %v5030_v14, %v11497_v24  ;;  %v11706_v40 = vadd.f32 %v5272_v56, %v5028_v18  ;;  %v5032_v53 = vpop.f32.mrb[83].mxu0  ;;  %v5274_v33 = vpop.f32.mrb[105].mxu1 }
 0x414   : > { %v5275_v19 = vpop.f32.mrb[106].mxu1 }
 0x415   : > { %v11708_v44 = vadd.f32 %v5275_v19, %v5031_v26  ;;  %v5277_v51 = vpop.f32.mrb[107].mxu1  ;;  %7909 = vmatmul.mubr.msk.bf16.gmra.mrb[188].mxu0 %vm457_vm0, %v11289_v62 }
 0x416   : > { %7912 = vmatprep.mubr.msk.bf16.mxu0 %vm457_vm0, %v11325_v45 }
 0x418   : > { %v5035_v1 = vpop.f32.mrb[84].mxu0 }
 0x419   : > { %v5036_v39 = vadd.f32 %v5035_v1, %v11504_v7  ;;  %v5037_v10 = vpop.f32.mrb[85].mxu0 }
 0x41a   : > { %v5038_v47 = vpop.f32.mrb[86].mxu0  ;;  %v5280_v24 = vpop.f32.mrb[108].mxu1 }
 0x41b   : > { %v5039_v35 = vadd.f32 %v5038_v47, %v11507_v12  ;;  %v11716_v6 = vadd.f32 %v5280_v24, %v5036_v39  ;;  %v5040_v16 = vpop.f32.mrb[87].mxu0  ;;  %v5282_v52 = vpop.f32.mrb[109].mxu1 }
 0x41c   : > { %v5283_v57 = vpop.f32.mrb[110].mxu1 }
 0x41d   : > { %v11718_v63 = vadd.f32 %v5283_v57, %v5039_v35  ;;  %v5285_v4 = vpop.f32.mrb[111].mxu1  ;;  %7913 = vmatmul.mubr.msk.bf16.gmra.mrb[192].mxu0 %vm457_vm0, %v11323_v32 }
 0x41e   : > { %7916 = vmatprep.mubr.msk.bf16.mxu0 %vm457_vm0, %v11365_v55  ;;  %v12351_v4 = vld [vmem:[#allocation38_spill] sm:$0xff] }
 0x420   : > { %v5043_v62 = vpop.f32.mrb[88].mxu0 }
 0x421   : > { %v5044_v45 = vadd.f32 %v5043_v62, %v11514_v15  ;;  %v5045_v7 = vpop.f32.mrb[89].mxu0 }
 0x422   : > { %v5046_v43 = vpop.f32.mrb[90].mxu0  ;;  %v5288_v12 = vpop.f32.mrb[112].mxu1 }
 0x423   : > { %v5047_v48 = vadd.f32 %v5046_v43, %v11517_v13  ;;  %v11726_v21 = vadd.f32 %v5288_v12, %v5044_v45  ;;  %v5048_v61 = vpop.f32.mrb[91].mxu0  ;;  %v5290_v17 = vpop.f32.mrb[113].mxu1 }
 0x424   : > { %v5291_v30 = vpop.f32.mrb[114].mxu1  ;;  %v12352_v17 = vld [vmem:[#allocation9_spill] sm:$0xff] }
 0x425   : > { %v11728_v46 = vadd.f32 %v5291_v30, %v5047_v48  ;;  %v5293_v18 = vpop.f32.mrb[115].mxu1  ;;  %7917 = vmatmul.mubr.msk.bf16.gmra.mrb[196].mxu0 %vm457_vm0, %v11363_v38  ;;  %v6246_v48 = vpop.permute.xlu0 %6245  ;;  %v12353_v30 = vld [vmem:[#allocation44_spill] sm:$0xff] }
 0x426   : > { %7920 = vmatprep.mubr.msk.bf16.mxu0 %vm457_vm0, %v11395_v58 }
 0x428   : > { %v5051_v32 = vpop.f32.mrb[92].mxu0 }
 0x429   : > { %v5052_v55 = vadd.f32 %v5051_v32, %v11524_v50  ;;  %v5053_v15 = vpop.f32.mrb[93].mxu0 }
 0x42a   : > { %v5054_v37 = vpop.f32.mrb[94].mxu0  ;;  %v5296_v13 = vpop.f32.mrb[116].mxu1 }
 0x42b   : > { %v5055_v59 = vadd.f32 %v5054_v37, %v11527_v0  ;;  %v11736_v14 = vadd.f32 %v5296_v13, %v5052_v55  ;;  %v5056_v56 = vpop.f32.mrb[95].mxu0  ;;  %v5298_v26 = vpop.f32.mrb[117].mxu1  ;;  %v12354_v37 = vld [vmem:[#allocation45_spill] sm:$0xff] }
 0x42c   : > { %v5299_v53 = vpop.f32.mrb[118].mxu1 }
 0x42d   : > { %v11738_v33 = vadd.f32 %v5299_v53, %v5055_v59  ;;  %v5301_v19 = vpop.f32.mrb[119].mxu1  ;;  %7921 = vmatmul.mubr.msk.bf16.gmra.mrb[200].mxu0 %vm457_vm0, %v11393_v20  ;;  %v8401_v53 = vld [vmem:[%s12084_s9 + $0x8] sm:$0xff]  }
 0x42e   : > { %7924 = vmatprep.mubr.msk.bf16.mxu0 %vm457_vm0, %v11417_v29  ;;  %v12350_v29 = vld [vmem:[#allocation47_spill] sm:$0xff]  ;;  %v6248_v19 = vpop.permute.xlu1 %6247 }
 0x430   : > { %v5059_v38 = vpop.f32.mrb[96].mxu0 }
 0x431   : > { %v5060_v58 = vadd.f32 %v5059_v38, %v11539_v31  ;;  %v5061_v50 = vpop.f32.mrb[97].mxu0 }
 0x432   : > { %v5062_v51 = vpop.f32.mrb[98].mxu0  ;;  %v5304_v0 = vpop.f32.mrb[120].mxu1 }
 0x433   : > { %v5063_v1 = vadd.f32 %v5062_v51, %v11543_v28  ;;  %v11746_v39 = vadd.f32 %v5304_v0, %v5060_v58  ;;  %v5064_v10 = vpop.f32.mrb[99].mxu0  ;;  %v5306_v47 = vpop.f32.mrb[121].mxu1 }
 0x434   : > { %v5307_v24 = vpop.f32.mrb[122].mxu1  ;;  %v6250_v58 = vpop.permute.xlu0 %6249 }
 0x435   : > { %v11748_v35 = vadd.f32 %v5307_v24, %v5063_v1  ;;  %v5309_v16 = vpop.f32.mrb[123].mxu1  ;;  %7925 = vmatmul.mubr.msk.bf16.gmra.mrb[204].mxu0 %vm457_vm0, %v11415_v49  ;;  %v12355_v1 = vld [vmem:[#allocation48_spill] sm:$0xff] }
 0x436   : > { %7928 = vmatprep.mubr.msk.bf16.mxu0 %vm457_vm0, %v11431_v36 }
 0x438   : > { %v5067_v20 = vpop.f32.mrb[100].mxu0 }
 0x439   : > { %v5068_v31 = vadd.f32 %v5067_v20, %v12350_v29  ;;  %v5069_v52 = vpop.f32.mrb[101].mxu0  ;;  %v12356_v20 = vld [vmem:[#allocation12_spill] sm:$0xff] }
 0x43a   : > { %v5070_v57 = vpop.f32.mrb[102].mxu0  ;;  %v5312_v28 = vpop.f32.mrb[124].mxu1 }
 0x43b   : > { %v5071_v62 = vadd.f32 %v5070_v57, %v12351_v4  ;;  %v11756_v45 = vadd.f32 %v5312_v28, %v5068_v31  ;;  %v5072_v7 = vpop.f32.mrb[103].mxu0  ;;  %v5314_v43 = vpop.f32.mrb[125].mxu1 }
 0x43c   : > { %v5315_v12 = vpop.f32.mrb[126].mxu1  ;;  %v6252_v28 = vpop.permute.xlu1 %6251 }
 0x43d   : > { %v11758_v61 = vadd.f32 %v5315_v12, %v5071_v62  ;;  %v5317_v49 = vpop.f32.mrb[127].mxu1  ;;  %7929 = vmatmul.mubr.msk.bf16.gmra.mrb[208].mxu0 %vm457_vm0, %v12352_v17  ;;  %v6254_v62 = vpop.permute.xlu0 %6253  ;;  %v12357_v12 = vld [vmem:[#allocation39_spill] sm:$0xff] }
 0x43e   : > { %7936 = vmatprep.mubr.msk.bf16.mxu0 %vm457_vm0, %v6246_v48 }
 0x440   : > { %v5075_v36 = vpop.f32.mrb[104].mxu0 }
 0x441   : > { %v5076_v18 = vadd.f32 %v5075_v36, %v12353_v30  ;;  %v5077_v32 = vpop.f32.mrb[105].mxu0  ;;  %v12358_v36 = vld [vmem:[#allocation57_spill] sm:$0xff] }
 0x442   : > { %v5078_v55 = vpop.f32.mrb[106].mxu0  ;;  %v5320_v15 = vpop.f32.mrb[128].mxu1 }
 0x443   : > { %v5079_v13 = vadd.f32 %v5078_v55, %v12354_v37  ;;  %v11765_v59 = vadd.f32 %v5320_v15, %v5076_v18  ;;  %v5080_v56 = vpop.f32.mrb[107].mxu0  ;;  %v5322_v26 = vpop.f32.mrb[129].mxu1 }
 0x444   : > { %v5323_v38 = vpop.f32.mrb[130].mxu1  ;;  %v6256_v32 = vpop.permute.xlu1 %6255 }
 0x445   : > { %v11770_v50 = vadd.f32 %v5323_v38, %v5079_v13  ;;  %v5325_v51 = vpop.f32.mrb[131].mxu1  ;;  %7937 = vmatmul.mubr.msk.bf16.vlgmr.msra.gmra.mrb[180].mxu0 %vm457_vm0, %v6248_v19  ;;  %v6258_v55 = vpop.permute.xlu0 %6257 }
 0x446   : > { %7940 = vmatprep.mubr.msk.bf16.mxu0 %vm457_vm0, %v6250_v58  ;;  %7969 = vmatpush3.bf16.msra.mxu0 %v11685_v27 }
 0x447   : > { %7970 = vmatprep.subr.bf16.mxu0 %v8401_v53 }
 0x448   : > { %v5083_v0 = vpop.f32.mrb[108].mxu0  ;;  %v6260_v19 = vpop.permute.xlu1 %6259 }
 0x449   : > { %v5084_v10 = vadd.f32 %v5083_v0, %v12355_v1  ;;  %v5085_v47 = vpop.f32.mrb[109].mxu0  ;;  %v6262_v38 = vpop.permute.xlu0 %6261 }
 0x44a   : > { %v5086_v24 = vpop.f32.mrb[110].mxu0  ;;  %v5328_v16 = vpop.f32.mrb[132].mxu1  ;;  %7971 = vmatpush3.bf16.msra.mxu0 %v8401_v53 }
 0x44b   : > { %v5087_v29 = vadd.f32 %v5086_v24, %v12356_v20  ;;  %v11777_v31 = vadd.f32 %v5328_v16, %v5084_v10  ;;  %v5088_v52 = vpop.f32.mrb[111].mxu0  ;;  %v5330_v57 = vpop.f32.mrb[133].mxu1 }
 0x44c   : > { %v5331_v4 = vpop.f32.mrb[134].mxu1 }
 0x44d   : > { %v11779_v7 = vadd.f32 %v5331_v4, %v5087_v29  ;;  %v5333_v27 = vpop.f32.mrb[135].mxu1  ;;  %7941 = vmatmul.mubr.msk.bf16.gmra.mrb[184].mxu0 %vm457_vm0, %v6252_v28  ;;  %v6266_v24 = vpop.permute.xlu0 %6265 }
 0x44e   : > { %7944 = vmatprep.mubr.msk.bf16.mxu0 %vm457_vm0, %v6254_v62 }
 0x450   : > { %v5091_v43 = vpop.f32.mrb[112].mxu0 }
 0x451   : > { %v5092_v48 = vadd.f32 %v5091_v43, %v12357_v12  ;;  %v5093_v49 = vpop.f32.mrb[113].mxu0  ;;  %v6270_v12 = vpop.permute.xlu0 %6269 }
 0x452   : > { %v5094_v17 = vpop.f32.mrb[114].mxu0 }
 0x453   : > { %v5095_v30 = vadd.f32 %v5094_v17, %v12358_v36  ;;  %v5096_v18 = vpop.f32.mrb[115].mxu0 }
 0x455   : > { %7945 = vmatmul.mubr.msk.bf16.gmra.mrb[188].mxu0 %vm457_vm0, %v6256_v32 }
 0x456   : > { %7948 = vmatprep.mubr.msk.bf16.mxu0 %vm457_vm0, %v6258_v55 }
 0x458   : > { %v5493_v15 = vpop.f32.mrb[116].mxu0 }
 0x459   : > { %v5620_v37 = vadd.f32 %v5493_v15, %v11605_v11  ;;  %v5495_v13 = vpop.f32.mrb[117].mxu0  ;;  %v6264_v11 = vpop.permute.xlu1 %6263 }
 0x45a   : > { %v5496_v56 = vpop.f32.mrb[118].mxu0 }
 0x45b   : > { %v5621_v26 = vadd.f32 %v5496_v56, %v11609_v54  ;;  %v5498_v53 = vpop.f32.mrb[119].mxu0 }
 0x45d   : > { %7949 = vmatmul.mubr.msk.bf16.gmra.mrb[192].mxu0 %vm457_vm0, %v6260_v19  ;;  %v6268_v43 = vpop.permute.xlu1 %6267 }
 0x45e   : > { %7952 = vmatprep.mubr.msk.bf16.mxu0 %vm457_vm0, %v6262_v38 }
 0x460   : > { %v5501_v58 = vpop.f32.mrb[120].mxu0 }
 0x461   : > { %v5622_v51 = vadd.f32 %v5501_v58, %v11617_v60  ;;  %v5503_v0 = vpop.f32.mrb[121].mxu0  ;;  %v6272_v38 = vpop.permute.xlu1 %6271 }
 0x462   : > { %v5504_v1 = vpop.f32.mrb[122].mxu0  ;;  %v6274_v0 = vpop.permute.xlu0 %6273 }
 0x463   : > { %v5623_v10 = vadd.f32 %v5504_v1, %v11621_v41  ;;  %v5506_v47 = vpop.f32.mrb[123].mxu0 }
 0x465   : > { %v5336_v16 = vpop.f32.mrb[136].mxu1  ;;  %7953 = vmatmul.mubr.msk.bf16.gmra.mrb[196].mxu0 %vm457_vm0, %v6264_v11 }
 0x466   : > { %v11794_v54 = vadd.f32 %v5336_v16, %v5092_v48  ;;  %v5338_v20 = vpop.f32.mrb[137].mxu1  ;;  %7956 = vmatprep.mubr.msk.bf16.mxu0 %vm457_vm0, %v6266_v24  ;;  %v11804_v48 = vld [vmem:[%s12081_s6] ss:$0 sm:$0xff] }
 0x467   : > { %v5339_v29 = vpop.f32.mrb[138].mxu1 }
 0x468   : > { %v11797_v52 = vadd.f32 %v5339_v29, %v5095_v30  ;;  %v5341_v57 = vpop.f32.mrb[139].mxu1  ;;  %v5509_v60 = vpop.f32.mrb[124].mxu0 }
 0x469   : > { %v5624_v28 = vadd.f32 %v5509_v60, %v11629_v42  ;;  %v5511_v4 = vpop.f32.mrb[125].mxu0 }
 0x46a   : > { %v5512_v41 = vpop.f32.mrb[126].mxu0 }
 0x46b   : > { %v5625_v62 = vadd.f32 %v5512_v41, %v11633_v23  ;;  %v5514_v27 = vpop.f32.mrb[127].mxu0 }
 0x46d   : > { %v5770_v49 = vpop.f32.mrb[140].mxu1  ;;  %7957 = vmatmul.mubr.msk.bf16.gmra.mrb[200].mxu0 %vm457_vm0, %v6268_v43  ;;  %v6276_v43 = vpop.permute.xlu1 %6275 }
 0x46e   : > { %v5897_v17 = vadd.f32 %v5770_v49, %v5620_v37  ;;  %v5772_v36 = vpop.f32.mrb[141].mxu1  ;;  %7960 = vmatprep.mubr.msk.bf16.mxu0 %vm457_vm0, %v6270_v12 }
 0x46f   : > { %v5773_v42 = vpop.f32.mrb[142].mxu1 }
 0x470   : > { %v5936_v30 = vadd.f32 %v11804_v48, %v5897_v17  ;;  %v5898_v18 = vadd.f32 %v5773_v42, %v5621_v26  ;;  %v5775_v23 = vpop.f32.mrb[143].mxu1  ;;  %v5517_v32 = vpop.f32.mrb[128].mxu0 }
 0x471   : > { %v5626_v55 = vadd.f32 %v5517_v32, %v11641_v9  ;;  %v5519_v15 = vpop.f32.mrb[129].mxu0 }
 0x472   : > { %v5937_v13 = vadd.f32 %v11804_v48, %v5898_v18  ;;  %v5520_v56 = vpop.f32.mrb[130].mxu0  ;;  %v5968_v37 = vmax.f32 %v5936_v30, 0.0 }
 0x473   : > { %v5627_v53 = vadd.f32 %v5520_v56, %v11648_v2  ;;  %v5522_v19 = vpop.f32.mrb[131].mxu0 }
 0x474   : > { %v5969_v58 = vmax.f32 %v5937_v13, 0.0 }
 0x475   : > { %v5778_v1 = vpop.f32.mrb[144].mxu1  ;;  %7961 = vmatmul.mubr.msk.bf16.gmra.mrb[204].mxu0 %vm457_vm0, %v6272_v38 }
 0x476   : > { %v6498_v47 = vpack.c.bf16 %v5969_v58, %v5968_v37  ;;  %v5899_v26 = vadd.f32 %v5778_v1, %v5622_v51  ;;  %v5780_v11 = vpop.f32.mrb[145].mxu1  ;;  %7964 = vmatprep.mubr.msk.bf16.mxu0 %vm457_vm0, %v6274_v0 }
 0x477   : > { %v5781_v9 = vpop.f32.mrb[146].mxu1 }
 0x478   : > { %v5938_v24 = vadd.f32 %v11804_v48, %v5899_v26  ;;  %v5900_v16 = vadd.f32 %v5781_v9, %v5623_v10  ;;  %v5783_v20 = vpop.f32.mrb[147].mxu1  ;;  %v5525_v29 = vpop.f32.mrb[132].mxu0 }
 0x479   : > { %v5628_v2 = vadd.f32 %v5525_v29, %v11657_v22  ;;  %v5527_v57 = vpop.f32.mrb[133].mxu0 }
 0x47a   : > { %v5939_v60 = vadd.f32 %v11804_v48, %v5900_v16  ;;  %v5528_v4 = vpop.f32.mrb[134].mxu0  ;;  %v5970_v51 = vmax.f32 %v5938_v24, 0.0 }
 0x47b   : > { %v5629_v41 = vadd.f32 %v5528_v4, %v11661_v25  ;;  %v5530_v27 = vpop.f32.mrb[135].mxu0 }
 0x47c   : > { %v5971_v12 = vmax.f32 %v5939_v60, 0.0 }
 0x47d   : > { %v5786_v49 = vpop.f32.mrb[148].mxu1  ;;  %7965 = vmatmul.mubr.msk.bf16.gmra.mrb[208].mxu0 %vm457_vm0, %v6276_v43 }
 0x47e   : > { %v6499_v17 = vpack.c.bf16 %v5971_v12, %v5970_v51  ;;  %v5901_v36 = vadd.f32 %v5786_v49, %v5624_v28  ;;  %v5788_v10 = vpop.f32.mrb[149].mxu1  ;;  %7972 = vmatprep.mubr.msk.bf16.mxu0 %vm457_vm0, %v6498_v47 }
 0x47f   : > { %v5789_v42 = vpop.f32.mrb[150].mxu1 }
 0x480   : > { %v5940_v22 = vadd.f32 %v11804_v48, %v5901_v36  ;;  %v5902_v30 = vadd.f32 %v5789_v42, %v5625_v62  ;;  %v5791_v18 = vpop.f32.mrb[151].mxu1  ;;  %v5533_v23 = vpop.f32.mrb[136].mxu0 }
 0x481   : > { %v5630_v25 = vadd.f32 %v5533_v23, %v11668_v5  ;;  %v5535_v32 = vpop.f32.mrb[137].mxu0 }
 0x482   : > { %v5941_v15 = vadd.f32 %v11804_v48, %v5902_v30  ;;  %v5536_v13 = vpop.f32.mrb[138].mxu0  ;;  %v5972_v38 = vmax.f32 %v5940_v22, 0.0 }
 0x483   : > { %v5631_v56 = vadd.f32 %v5536_v13, %v11675_v34  ;;  %v5538_v19 = vpop.f32.mrb[139].mxu0 }
 0x484   : > { %v5973_v28 = vmax.f32 %v5941_v15, 0.0 }
 0x485   : > { %v5794_v37 = vpop.f32.mrb[152].mxu1  ;;  %7973 = vmatmul.mubr.msk.bf16.vlgmr.msra.gmra.mrb[180].mxu0 %vm457_vm0, %v6499_v17 }
 0x486   : > { %v6500_v58 = vpack.c.bf16 %v5973_v28, %v5972_v38  ;;  %v5903_v0 = vadd.f32 %v5794_v37, %v5626_v55  ;;  %v5796_v1 = vpop.f32.mrb[153].mxu1 }
 0x487   : > { %v5797_v62 = vpop.f32.mrb[154].mxu1 }
 0x488   : > { %v5942_v47 = vadd.f32 %v11804_v48, %v5903_v0  ;;  %v5904_v26 = vadd.f32 %v5797_v62, %v5627_v53  ;;  %v5799_v5 = vpop.f32.mrb[155].mxu1  ;;  %7976 = vmatprep.mubr.msk.bf16.mxu0 %vm457_vm0, %v6500_v58  ;;  %v5541_v11 = vpop.f32.mrb[140].mxu0 }
 0x489   : > { %v5632_v9 = vadd.f32 %v5541_v11, %v11692_v3  ;;  %v5543_v34 = vpop.f32.mrb[141].mxu0 }
 0x48a   : > { %v5943_v24 = vadd.f32 %v11804_v48, %v5904_v26  ;;  %v5544_v16 = vpop.f32.mrb[142].mxu0  ;;  %v5974_v57 = vmax.f32 %v5942_v47, 0.0 }
 0x48b   : > { %v5633_v20 = vadd.f32 %v5544_v16, %v11696_v8  ;;  %v5546_v29 = vpop.f32.mrb[143].mxu0 }
 0x48c   : > { %v5975_v55 = vmax.f32 %v5943_v24, 0.0 }
 0x48d   : > { %v5802_v60 = vpop.f32.mrb[156].mxu1 }
 0x48e   : > { %v6501_v4 = vpack.c.bf16 %v5975_v55, %v5974_v57  ;;  %v5905_v27 = vadd.f32 %v5802_v60, %v5628_v2  ;;  %v5804_v43 = vpop.f32.mrb[157].mxu1 }
 0x48f   : > { %v5805_v53 = vpop.f32.mrb[158].mxu1 }
 0x490   : > { %v5944_v51 = vadd.f32 %v11804_v48, %v5905_v27  ;;  %v5906_v12 = vadd.f32 %v5805_v53, %v5629_v41  ;;  %v5807_v49 = vpop.f32.mrb[159].mxu1  ;;  %7977 = vmatmul.mubr.msk.bf16.gmra.mrb[184].mxu0 %vm457_vm0, %v6501_v4  ;;  %v5549_v3 = vpop.f32.mrb[144].mxu0 }
 0x491   : > { %v5634_v17 = vadd.f32 %v5549_v3, %v11706_v40  ;;  %v5551_v36 = vpop.f32.mrb[145].mxu0 }
 0x492   : > { %v5945_v8 = vadd.f32 %v11804_v48, %v5906_v12  ;;  %v5552_v10 = vpop.f32.mrb[146].mxu0  ;;  %v5976_v30 = vmax.f32 %v5944_v51, 0.0 }
 0x493   : > { %v5635_v42 = vadd.f32 %v5552_v10, %v11708_v44  ;;  %v5554_v22 = vpop.f32.mrb[147].mxu0 }
 0x494   : > { %v5977_v2 = vmax.f32 %v5945_v8, 0.0 }
 0x495   : > { %v5810_v18 = vpop.f32.mrb[160].mxu1 }
 0x496   : > { %v6502_v23 = vpack.c.bf16 %v5977_v2, %v5976_v30  ;;  %v5907_v32 = vadd.f32 %v5810_v18, %v5630_v25  ;;  %v5812_v15 = vpop.f32.mrb[161].mxu1 }
 0x497   : > { %v5813_v41 = vpop.f32.mrb[162].mxu1 }
 0x498   : > { %v5946_v13 = vadd.f32 %v11804_v48, %v5907_v32  ;;  %v5908_v19 = vadd.f32 %v5813_v41, %v5631_v56  ;;  %v5815_v38 = vpop.f32.mrb[163].mxu1  ;;  %7980 = vmatprep.mubr.msk.bf16.mxu0 %vm457_vm0, %v6502_v23  ;;  %v5557_v40 = vpop.f32.mrb[148].mxu0 }
 0x499   : > { %v5636_v28 = vadd.f32 %v5557_v40, %v11716_v6  ;;  %v5559_v37 = vpop.f32.mrb[149].mxu0 }
 0x49a   : > { %v5947_v44 = vadd.f32 %v11804_v48, %v5908_v19  ;;  %v5560_v58 = vpop.f32.mrb[150].mxu0  ;;  %v5978_v62 = vmax.f32 %v5946_v13, 0.0 }
 0x49b   : > { %v5637_v0 = vadd.f32 %v5560_v58, %v11718_v63  ;;  %v5562_v1 = vpop.f32.mrb[151].mxu0 }
 0x49c   : > { %v5979_v25 = vmax.f32 %v5947_v44, 0.0 }
 0x49d   : > { %v5818_v47 = vpop.f32.mrb[164].mxu1 }
 0x49e   : > { %v6503_v26 = vpack.c.bf16 %v5979_v25, %v5978_v62  ;;  %v5909_v5 = vadd.f32 %v5818_v47, %v5632_v9  ;;  %v5820_v11 = vpop.f32.mrb[165].mxu1 }
 0x49f   : > { %v5821_v56 = vpop.f32.mrb[166].mxu1 }
 0x4a0   : > { %v5948_v34 = vadd.f32 %v11804_v48, %v5909_v5  ;;  %v5910_v24 = vadd.f32 %v5821_v56, %v5633_v20  ;;  %v5823_v16 = vpop.f32.mrb[167].mxu1  ;;  %7981 = vmatmul.mubr.msk.bf16.gmra.mrb[188].mxu0 %vm457_vm0, %v6503_v26  ;;  %v5565_v6 = vpop.f32.mrb[152].mxu0 }
 0x4a1   : > { %v5638_v29 = vadd.f32 %v5565_v6, %v11726_v21  ;;  %v5567_v57 = vpop.f32.mrb[153].mxu0 }
 0x4a2   : > { %v5949_v63 = vadd.f32 %v11804_v48, %v5910_v24  ;;  %v5568_v55 = vpop.f32.mrb[154].mxu0  ;;  %v5980_v27 = vmax.f32 %v5948_v34, 0.0 }
 0x4a3   : > { %v5639_v60 = vadd.f32 %v5568_v55, %v11728_v46  ;;  %v5570_v4 = vpop.f32.mrb[155].mxu0 }
 0x4a4   : > { %v5981_v9 = vmax.f32 %v5949_v63, 0.0 }
 0x4a5   : > { %v5826_v43 = vpop.f32.mrb[168].mxu1 }
 0x4a6   : > { %v6504_v53 = vpack.c.bf16 %v5981_v9, %v5980_v27  ;;  %v5911_v51 = vadd.f32 %v5826_v43, %v5634_v17  ;;  %v5828_v12 = vpop.f32.mrb[169].mxu1 }
 0x4a7   : > { %v5829_v20 = vpop.f32.mrb[170].mxu1 }
 0x4a8   : > { %v5950_v49 = vadd.f32 %v11804_v48, %v5911_v51  ;;  %v5912_v3 = vadd.f32 %v5829_v20, %v5635_v42  ;;  %v5831_v36 = vpop.f32.mrb[171].mxu1  ;;  %7984 = vmatprep.mubr.msk.bf16.mxu0 %vm457_vm0, %v6504_v53  ;;  %v5573_v21 = vpop.f32.mrb[156].mxu0 }
 0x4a9   : > { %v5640_v8 = vadd.f32 %v5573_v21, %v11736_v14  ;;  %v5575_v10 = vpop.f32.mrb[157].mxu0 }
 0x4aa   : > { %v5951_v46 = vadd.f32 %v11804_v48, %v5912_v3  ;;  %v5576_v22 = vpop.f32.mrb[158].mxu0  ;;  %v5982_v18 = vmax.f32 %v5950_v49, 0.0 }
 0x4ab   : > { %v5641_v30 = vadd.f32 %v5576_v22, %v11738_v33  ;;  %v5578_v2 = vpop.f32.mrb[159].mxu0 }
 0x4ac   : > { %v5983_v17 = vmax.f32 %v5951_v46, 0.0 }
 0x4ad   : > { %v5834_v23 = vpop.f32.mrb[172].mxu1 }
 0x4ae   : > { %v6505_v32 = vpack.c.bf16 %v5983_v17, %v5982_v18  ;;  %v5913_v15 = vadd.f32 %v5834_v23, %v5636_v28  ;;  %v5836_v41 = vpop.f32.mrb[173].mxu1 }
 0x4af   : > { %v5837_v42 = vpop.f32.mrb[174].mxu1 }
 0x4b0   : > { %v5952_v13 = vadd.f32 %v11804_v48, %v5913_v15  ;;  %v5914_v19 = vadd.f32 %v5837_v42, %v5637_v0  ;;  %v5839_v38 = vpop.f32.mrb[175].mxu1  ;;  %7985 = vmatmul.mubr.msk.bf16.gmra.mrb[192].mxu0 %vm457_vm0, %v6505_v32  ;;  %v5581_v14 = vpop.f32.mrb[160].mxu0 }
 0x4b1   : > { %v5642_v40 = vadd.f32 %v5581_v14, %v11746_v39  ;;  %v5583_v37 = vpop.f32.mrb[161].mxu0 }
 0x4b2   : > { %v5953_v33 = vadd.f32 %v11804_v48, %v5914_v19  ;;  %v5584_v44 = vpop.f32.mrb[162].mxu0  ;;  %v5984_v62 = vmax.f32 %v5952_v13, 0.0 }
 0x4b3   : > { %v5643_v58 = vadd.f32 %v5584_v44, %v11748_v35  ;;  %v5586_v1 = vpop.f32.mrb[163].mxu0 }
 0x4b4   : > { %v5985_v28 = vmax.f32 %v5953_v33, 0.0 }
 0x4b5   : > { %v5842_v25 = vpop.f32.mrb[176].mxu1 }
 0x4b6   : > { %v6506_v47 = vpack.c.bf16 %v5985_v28, %v5984_v62  ;;  %v5915_v26 = vadd.f32 %v5842_v25, %v5638_v29  ;;  %v5844_v5 = vpop.f32.mrb[177].mxu1 }
 0x4b7   : > { %v5845_v0 = vpop.f32.mrb[178].mxu1 }
 0x4b8   : > { %v5954_v11 = vadd.f32 %v11804_v48, %v5915_v26  ;;  %v5916_v56 = vadd.f32 %v5845_v0, %v5639_v60  ;;  %v5847_v34 = vpop.f32.mrb[179].mxu1  ;;  %7988 = vmatprep.mubr.msk.bf16.mxu0 %vm457_vm0, %v6506_v47  ;;  %v5589_v39 = vpop.f32.mrb[164].mxu0 }
 0x4b9   : > { %v5644_v24 = vadd.f32 %v5589_v39, %v11756_v45  ;;  %v5591_v16 = vpop.f32.mrb[165].mxu0 }
 0x4ba   : > { %v5955_v35 = vadd.f32 %v11804_v48, %v5916_v56  ;;  %v5592_v6 = vpop.f32.mrb[166].mxu0  ;;  %v5986_v55 = vmax.f32 %v5954_v11, 0.0 }
 0x4bb   : > { %v5645_v57 = vadd.f32 %v5592_v6, %v11758_v61  ;;  %v5594_v63 = vpop.f32.mrb[167].mxu0 }
 0x4bc   : > { %v5987_v29 = vmax.f32 %v5955_v35, 0.0 }
 0x4bd   : > { %v5850_v4 = vpop.f32.mrb[180].mxu1 }
 0x4be   : > { %v6507_v27 = vpack.c.bf16 %v5987_v29, %v5986_v55  ;;  %v5917_v9 = vadd.f32 %v5850_v4, %v5640_v8  ;;  %v5852_v43 = vpop.f32.mrb[181].mxu1 }
 0x4bf   : > { %v5853_v60 = vpop.f32.mrb[182].mxu1 }
 0x4c0   : > { %v5956_v53 = vadd.f32 %v11804_v48, %v5917_v9  ;;  %v5918_v51 = vadd.f32 %v5853_v60, %v5641_v30  ;;  %v5855_v12 = vpop.f32.mrb[183].mxu1  ;;  %7989 = vmatmul.mubr.msk.bf16.gmra.mrb[196].mxu0 %vm457_vm0, %v6507_v27  ;;  %v5597_v45 = vpop.f32.mrb[168].mxu0 }
 0x4c1   : > { %v5646_v20 = vadd.f32 %v5597_v45, %v11765_v59  ;;  %v5599_v49 = vpop.f32.mrb[169].mxu0 }
 0x4c2   : > { %v5957_v61 = vadd.f32 %v11804_v48, %v5918_v51  ;;  %v5600_v3 = vpop.f32.mrb[170].mxu0  ;;  %v5988_v10 = vmax.f32 %v5956_v53, 0.0 }
 0x4c3   : > { %v5647_v36 = vadd.f32 %v5600_v3, %v11770_v50  ;;  %v5602_v21 = vpop.f32.mrb[171].mxu0 }
 0x4c4   : > { %v5989_v8 = vmax.f32 %v5957_v61, 0.0 }
 0x4c5   : > { %v5858_v46 = vpop.f32.mrb[184].mxu1 }
 0x4c6   : > { %v6508_v22 = vpack.c.bf16 %v5989_v8, %v5988_v10  ;;  %v5919_v2 = vadd.f32 %v5858_v46, %v5642_v40  ;;  %v5860_v18 = vpop.f32.mrb[185].mxu1 }
 0x4c7   : > { %v5861_v30 = vpop.f32.mrb[186].mxu1 }
 0x4c8   : > { %v5958_v17 = vadd.f32 %v11804_v48, %v5919_v2  ;;  %v5920_v23 = vadd.f32 %v5861_v30, %v5643_v58  ;;  %v5863_v32 = vpop.f32.mrb[187].mxu1  ;;  %7992 = vmatprep.mubr.msk.bf16.mxu0 %vm457_vm0, %v6508_v22  ;;  %v5605_v59 = vpop.f32.mrb[172].mxu0 }
 0x4c9   : > { %v5648_v15 = vadd.f32 %v5605_v59, %v11777_v31  ;;  %v5607_v41 = vpop.f32.mrb[173].mxu0 }
 0x4ca   : > { %v5959_v50 = vadd.f32 %v11804_v48, %v5920_v23  ;;  %v5608_v42 = vpop.f32.mrb[174].mxu0  ;;  %v5990_v38 = vmax.f32 %v5958_v17, 0.0  ;;  %v11889_v17 = vld [vmem:[%s12085_s10] ss:$0 sm:$0xff] }
 0x4cb   : > { %v5649_v13 = vadd.f32 %v5608_v42, %v11779_v7  ;;  %v5610_v19 = vpop.f32.mrb[175].mxu0 }
 0x4cc   : > { %v5991_v14 = vmax.f32 %v5959_v50, 0.0 }
 0x4cd   : > { %v5866_v40 = vpop.f32.mrb[188].mxu1 }
 0x4ce   : > { %v6509_v37 = vpack.c.bf16 %v5991_v14, %v5990_v38  ;;  %v5921_v33 = vadd.f32 %v5866_v40, %v5644_v24  ;;  %v5868_v44 = vpop.f32.mrb[189].mxu1  ;;  %v8427_v38 = vld [vmem:[%s8649_s24 + $0x10] sm:$0xff] }
 0x4cf   : > { %v5869_v58 = vpop.f32.mrb[190].mxu1 }
 0x4d0   : > { %v5960_v1 = vadd.f32 %v11804_v48, %v5921_v33  ;;  %v5922_v62 = vadd.f32 %v5869_v58, %v5645_v57  ;;  %v5871_v28 = vpop.f32.mrb[191].mxu1  ;;  %7993 = vmatmul.mubr.msk.bf16.gmra.mrb[200].mxu0 %vm457_vm0, %v6509_v37  ;;  %v5613_v31 = vpop.f32.mrb[176].mxu0  ;;  %v8428_v37 = vld [vmem:[%s8649_s24] sm:$0xff]  ;;  %v8429_v58 = vld [vmem:[%s8649_s24 + $0x18] sm:$0xff] }
 0x4d1   : > { %v5650_v25 = vadd.f32 %v5613_v31, %v11794_v54  ;;  %v5615_v47 = vpop.f32.mrb[177].mxu0 }
 0x4d2   : > { %v5961_v7 = vadd.f32 %v11804_v48, %v5922_v62  ;;  %v5616_v26 = vpop.f32.mrb[178].mxu0  ;;  %v5992_v11 = vmax.f32 %v5960_v1, 0.0  ;;  %v8430_v62 = vld [vmem:[%s8649_s24 + $0x8] sm:$0xff] }
 0x4d3   : > { %v5651_v5 = vadd.f32 %v5616_v26, %v11797_v52  ;;  %v5618_v0 = vpop.f32.mrb[179].mxu0 }
 0x4d4   : > { %v5993_v56 = vmax.f32 %v5961_v7, 0.0 }
 0x4d5   : > { %v5874_v34 = vpop.f32.mrb[192].mxu1 }
 0x4d6   : > { %v6510_v39 = vpack.c.bf16 %v5993_v56, %v5992_v11  ;;  %v5923_v24 = vadd.f32 %v5874_v34, %v5646_v20  ;;  %v5876_v16 = vpop.f32.mrb[193].mxu1 }
 0x4d7   : > { %v5877_v35 = vpop.f32.mrb[194].mxu1 }
 0x4d8   : > { %v5962_v6 = vadd.f32 %v11804_v48, %v5923_v24  ;;  %v5924_v57 = vadd.f32 %v5877_v35, %v5647_v36  ;;  %v5879_v63 = vpop.f32.mrb[195].mxu1  ;;  %7996 = vmatprep.mubr.msk.bf16.mxu0 %vm457_vm0, %v6510_v39  ;;  %v8431_v39 = vld [vmem:[%s8649_s24 + $0x30] sm:$0xff]  ;;  %v8432_v35 = vld [vmem:[%s8649_s24 + $0x20] sm:$0xff] }
 0x4d9   : > { %v8433_v63 = vld [vmem:[%s8649_s24 + $0x38] sm:$0xff] }
 0x4da   : > { %v5963_v54 = vadd.f32 %v11804_v48, %v5924_v57  ;;  %v5994_v55 = vmax.f32 %v5962_v6, 0.0 }
 0x4dc   : > { %v5995_v29 = vmax.f32 %v5963_v54, 0.0 }
 0x4dd   : > { %v5882_v4 = vpop.f32.mrb[196].mxu1 }
 0x4de   : > { %v6511_v52 = vpack.c.bf16 %v5995_v29, %v5994_v55  ;;  %v5925_v27 = vadd.f32 %v5882_v4, %v5648_v15  ;;  %v5884_v9 = vpop.f32.mrb[197].mxu1  ;;  %v8434_v55 = vld [vmem:[%s8649_s24 + $0x28] sm:$0xff] }
 0x4df   : > { %v5885_v43 = vpop.f32.mrb[198].mxu1 }
 0x4e0   : > { %v5964_v60 = vadd.f32 %v11804_v48, %v5925_v27  ;;  %v5926_v53 = vadd.f32 %v5885_v43, %v5649_v13  ;;  %v5887_v51 = vpop.f32.mrb[199].mxu1  ;;  %7997 = vmatmul.mubr.msk.bf16.gmra.mrb[204].mxu0 %vm457_vm0, %v6511_v52 }
 0x4e2   : > { %v5965_v12 = vadd.f32 %v11804_v48, %v5926_v53  ;;  %v5996_v45 = vmax.f32 %v5964_v60, 0.0 }
 0x4e4   : > { %v5997_v20 = vmax.f32 %v5965_v12, 0.0 }
 0x4e5   : > { %v5890_v49 = vpop.f32.mrb[200].mxu1 }
 0x4e6   : > { %v6512_v61 = vpack.c.bf16 %v5997_v20, %v5996_v45  ;;  %v5927_v3 = vadd.f32 %v5890_v49, %v5650_v25  ;;  %v5892_v36 = vpop.f32.mrb[201].mxu1  ;;  %v8435_v20 = vld [vmem:[%s8649_s24 + $0x50] sm:$0xff] }
 0x4e7   : > { %v5893_v21 = vpop.f32.mrb[202].mxu1 }
 0x4e8   : > { %v5966_v10 = vadd.f32 %v11804_v48, %v5927_v3  ;;  %v5928_v8 = vadd.f32 %v5893_v21, %v5651_v5  ;;  %v5895_v46 = vpop.f32.mrb[203].mxu1  ;;  %8000 = vmatprep.mubr.msk.bf16.mxu0 %vm457_vm0, %v6512_v61  ;;  %v8436_v3 = vld [vmem:[%s8649_s24 + $0x40] sm:$0xff] }
 0x4e9   : > { %v8438_v46 = vld [vmem:[%s8649_s24 + $0x48] sm:$0xff] }
 0x4ea   : > { %v5967_v22 = vadd.f32 %v11804_v48, %v5928_v8  ;;  %v5998_v2 = vmax.f32 %v5966_v10, 0.0  ;;  %v8437_v10 = vld [vmem:[%s8649_s24 + $0x58] sm:$0xff] }
 0x4ec   : > { %v5999_v18 = vmax.f32 %v5967_v22, 0.0 }
 0x4ee   : > { %v6513_v30 = vpack.c.bf16 %v5999_v18, %v5998_v2 }
 0x4f0   : > { %8001 = vmatmul.mubr.msk.bf16.gmra.mrb[208].mxu0 %vm457_vm0, %v6513_v30 }
 0x558   : > { %v7974_v23 = vpop.f32.mrb[180].mxu0 }
 0x559   : > { %v6780_v32 = vadd.f32 %v7974_v23, %v11889_v17  ;;  %v6612_v59 = vpop.f32.mrb[181].mxu0 }
 0x55a   : > { %v6778_v48 = vadd.f32 %v11889_v17, %v6612_v59  ;;  %v7975_v15 = vpop.f32.mrb[182].mxu0 }
 0x55b   : > { %v6812_v41 = vmax.f32 %v6780_v32, 0.0  ;;  %v6781_v50 = vadd.f32 %v7975_v15, %v11889_v17  ;;  %v6615_v42 = vpop.f32.mrb[183].mxu0 }
 0x55c   : > { %v6810_v13 = vmax.f32 %v6778_v48, 0.0  ;;  %v6779_v19 = vadd.f32 %v11889_v17, %v6615_v42  ;;  %v8439_v42 = vld [vmem:[%s8649_s24 + $0x70] sm:$0xff] }
 0x55d   : > { %v6844_v14 = vadd.f32 %v8427_v38, %v6812_v41  ;;  %v6813_v40 = vmax.f32 %v6781_v50, 0.0  ;;  %v8440_v38 = vld [vmem:[%s8649_s24 + $0x60] sm:$0xff] }
 0x55e   : > { %v6842_v33 = vadd.f32 %v8428_v37, %v6810_v13  ;;  %v6811_v44 = vmax.f32 %v6779_v19, 0.0  ;;  %v8441_v37 = vld [vmem:[%s8649_s24 + $0x78] sm:$0xff] }
 0x55f   : > { %6876 = vst.msk [vmem:[%s11899_s12 + $0x10] sm:$0xff] %vm457_vm0, %v6844_v14  ;;  %v6845_v1 = vadd.f32 %v8429_v58, %v6813_v40 }
 0x560   : > { %6874 = vst.msk [vmem:[%s11899_s12] sm:$0xff] %vm457_vm0, %v6842_v33  ;;  %v6843_v28 = vadd.f32 %v8430_v62, %v6811_v44  ;;  %v8442_v44 = vld [vmem:[%s8649_s24 + $0x68] sm:$0xff] }
 0x561   : > { %6877 = vst.msk [vmem:[%s11899_s12 + $0x18] sm:$0xff] %vm457_vm0, %v6845_v1 }
 0x562   : > { %6875 = vst.msk [vmem:[%s11899_s12 + $0x8] sm:$0xff] %vm457_vm0, %v6843_v28 }
 0x563   : > { %v7978_v31 = vpop.f32.mrb[184].mxu0 }
 0x564   : > { %v6784_v25 = vadd.f32 %v7978_v31, %v11889_v17  ;;  %v6628_v47 = vpop.f32.mrb[185].mxu0 }
 0x565   : > { %v6782_v7 = vadd.f32 %v11889_v17, %v6628_v47  ;;  %v7979_v26 = vpop.f32.mrb[186].mxu0 }
 0x566   : > { %v6816_v5 = vmax.f32 %v6784_v25, 0.0  ;;  %v6785_v0 = vadd.f32 %v7979_v26, %v11889_v17  ;;  %v6631_v11 = vpop.f32.mrb[187].mxu0 }
 0x567   : > { %v6814_v56 = vmax.f32 %v6782_v7, 0.0  ;;  %v6783_v34 = vadd.f32 %v11889_v17, %v6631_v11  ;;  %v8443_v11 = vld [vmem:[%s8649_s24 + $0x90] sm:$0xff] }
 0x568   : > { %v6848_v24 = vadd.f32 %v8431_v39, %v6816_v5  ;;  %v6817_v16 = vmax.f32 %v6785_v0, 0.0  ;;  %v8444_v39 = vld [vmem:[%s8649_s24 + $0x80] sm:$0xff] }
 0x569   : > { %v6846_v6 = vadd.f32 %v8432_v35, %v6814_v56  ;;  %v6815_v57 = vmax.f32 %v6783_v34, 0.0  ;;  %v8445_v35 = vld [vmem:[%s8649_s24 + $0x98] sm:$0xff] }
 0x56a   : > { %6880 = vst.msk [vmem:[%s11899_s12 + $0x30] sm:$0xff] %vm457_vm0, %v6848_v24  ;;  %v6849_v54 = vadd.f32 %v8433_v63, %v6817_v16 }
 0x56b   : > { %6878 = vst.msk [vmem:[%s11899_s12 + $0x20] sm:$0xff] %vm457_vm0, %v6846_v6  ;;  %v6847_v29 = vadd.f32 %v8434_v55, %v6815_v57  ;;  %v8446_v57 = vld [vmem:[%s8649_s24 + $0x88] sm:$0xff] }
 0x56c   : > { %6881 = vst.msk [vmem:[%s11899_s12 + $0x38] sm:$0xff] %vm457_vm0, %v6849_v54 }
 0x56d   : > { %6879 = vst.msk [vmem:[%s11899_s12 + $0x28] sm:$0xff] %vm457_vm0, %v6847_v29 }
 0x573   : > { %v7982_v4 = vpop.f32.mrb[188].mxu0 }
 0x574   : > { %v6788_v52 = vadd.f32 %v7982_v4, %v11889_v17  ;;  %v6644_v27 = vpop.f32.mrb[189].mxu0 }
 0x575   : > { %v6786_v9 = vadd.f32 %v11889_v17, %v6644_v27  ;;  %v7983_v43 = vpop.f32.mrb[190].mxu0 }
 0x576   : > { %v6820_v60 = vmax.f32 %v6788_v52, 0.0  ;;  %v6789_v53 = vadd.f32 %v7983_v43, %v11889_v17  ;;  %v6647_v51 = vpop.f32.mrb[191].mxu0 }
 0x577   : > { %v6818_v12 = vmax.f32 %v6786_v9, 0.0  ;;  %v6787_v45 = vadd.f32 %v11889_v17, %v6647_v51  ;;  %v8447_v51 = vld [vmem:[%s8649_s24 + $0xb0] sm:$0xff] }
 0x578   : > { %v6852_v49 = vadd.f32 %v8435_v20, %v6820_v60  ;;  %v6821_v61 = vmax.f32 %v6789_v53, 0.0  ;;  %v8448_v20 = vld [vmem:[%s8649_s24 + $0xa0] sm:$0xff] }
 0x579   : > { %v6850_v36 = vadd.f32 %v8436_v3, %v6818_v12  ;;  %v6819_v21 = vmax.f32 %v6787_v45, 0.0  ;;  %v8449_v3 = vld [vmem:[%s8649_s24 + $0xb8] sm:$0xff] }
 0x57a   : > { %6884 = vst.msk [vmem:[%s11899_s12 + $0x50] sm:$0xff] %vm457_vm0, %v6852_v49  ;;  %v6853_v8 = vadd.f32 %v8437_v10, %v6821_v61 }
 0x57b   : > { %6882 = vst.msk [vmem:[%s11899_s12 + $0x40] sm:$0xff] %vm457_vm0, %v6850_v36  ;;  %v6851_v22 = vadd.f32 %v8438_v46, %v6819_v21  ;;  %v8450_v21 = vld [vmem:[%s8649_s24 + $0xa8] sm:$0xff] }
 0x57c   : > { %6885 = vst.msk [vmem:[%s11899_s12 + $0x58] sm:$0xff] %vm457_vm0, %v6853_v8 }
 0x57d   : > { %6883 = vst.msk [vmem:[%s11899_s12 + $0x48] sm:$0xff] %vm457_vm0, %v6851_v22 }
 0x583   : > { %v7986_v2 = vpop.f32.mrb[192].mxu0 }
 0x584   : > { %v6792_v18 = vadd.f32 %v7986_v2, %v11889_v17  ;;  %v6660_v30 = vpop.f32.mrb[193].mxu0 }
 0x585   : > { %v6790_v23 = vadd.f32 %v11889_v17, %v6660_v30  ;;  %v7987_v32 = vpop.f32.mrb[194].mxu0 }
 0x586   : > { %v6824_v59 = vmax.f32 %v6792_v18, 0.0  ;;  %v6793_v48 = vadd.f32 %v7987_v32, %v11889_v17  ;;  %v6663_v15 = vpop.f32.mrb[195].mxu0 }
 0x587   : > { %v6822_v41 = vmax.f32 %v6790_v23, 0.0  ;;  %v6791_v50 = vadd.f32 %v11889_v17, %v6663_v15  ;;  %v8451_v15 = vld [vmem:[%s8649_s24 + $0xd0] sm:$0xff] }
 0x588   : > { %v6856_v13 = vadd.f32 %v8439_v42, %v6824_v59  ;;  %v6825_v19 = vmax.f32 %v6793_v48, 0.0  ;;  %v8452_v42 = vld [vmem:[%s8649_s24 + $0xc0] sm:$0xff] }
 0x589   : > { %v6854_v14 = vadd.f32 %v8440_v38, %v6822_v41  ;;  %v6823_v40 = vmax.f32 %v6791_v50, 0.0  ;;  %v8453_v38 = vld [vmem:[%s8649_s24 + $0xd8] sm:$0xff] }
 0x58a   : > { %6888 = vst.msk [vmem:[%s11899_s12 + $0x70] sm:$0xff] %vm457_vm0, %v6856_v13  ;;  %v6857_v33 = vadd.f32 %v8441_v37, %v6825_v19 }
 0x58b   : > { %6886 = vst.msk [vmem:[%s11899_s12 + $0x60] sm:$0xff] %vm457_vm0, %v6854_v14  ;;  %v6855_v58 = vadd.f32 %v8442_v44, %v6823_v40  ;;  %v8454_v40 = vld [vmem:[%s8649_s24 + $0xc8] sm:$0xff] }
 0x58c   : > { %6889 = vst.msk [vmem:[%s11899_s12 + $0x78] sm:$0xff] %vm457_vm0, %v6857_v33 }
 0x58d   : > { %6887 = vst.msk [vmem:[%s11899_s12 + $0x68] sm:$0xff] %vm457_vm0, %v6855_v58 }
 0x593   : > { %v7990_v1 = vpop.f32.mrb[196].mxu0 }
 0x594   : > { %v6796_v62 = vadd.f32 %v7990_v1, %v11889_v17  ;;  %v6676_v28 = vpop.f32.mrb[197].mxu0 }
 0x595   : > { %v6794_v31 = vadd.f32 %v11889_v17, %v6676_v28  ;;  %v7991_v25 = vpop.f32.mrb[198].mxu0 }
 0x596   : > { %v6828_v47 = vmax.f32 %v6796_v62, 0.0  ;;  %v6797_v7 = vadd.f32 %v7991_v25, %v11889_v17  ;;  %v6679_v26 = vpop.f32.mrb[199].mxu0 }
 0x597   : > { %v6826_v5 = vmax.f32 %v6794_v31, 0.0  ;;  %v6795_v0 = vadd.f32 %v11889_v17, %v6679_v26  ;;  %v8455_v26 = vld [vmem:[%s8649_s24 + $0xf0] sm:$0xff] }
 0x598   : > { %v6860_v56 = vadd.f32 %v8443_v11, %v6828_v47  ;;  %v6829_v34 = vmax.f32 %v6797_v7, 0.0  ;;  %v8456_v11 = vld [vmem:[%s8649_s24 + $0xe0] sm:$0xff] }
 0x599   : > { %v6858_v24 = vadd.f32 %v8444_v39, %v6826_v5  ;;  %v6827_v16 = vmax.f32 %v6795_v0, 0.0  ;;  %v8457_v39 = vld [vmem:[%s8649_s24 + $0xf8] sm:$0xff] }
 0x59a   : > { %6892 = vst.msk [vmem:[%s11899_s12 + $0x90] sm:$0xff] %vm457_vm0, %v6860_v56  ;;  %v6861_v6 = vadd.f32 %v8445_v35, %v6829_v34 }
 0x59b   : > { %6890 = vst.msk [vmem:[%s11899_s12 + $0x80] sm:$0xff] %vm457_vm0, %v6858_v24  ;;  %v6859_v63 = vadd.f32 %v8446_v57, %v6827_v16 }
 0x59c   : > { %6893 = vst.msk [vmem:[%s11899_s12 + $0x98] sm:$0xff] %vm457_vm0, %v6861_v6 }
 0x59d   : > { %6891 = vst.msk [vmem:[%s11899_s12 + $0x88] sm:$0xff] %vm457_vm0, %v6859_v63 }
 0x5a3   : > { %v7994_v54 = vpop.f32.mrb[200].mxu0 }
 0x5a4   : > { %v6800_v55 = vadd.f32 %v7994_v54, %v11889_v17  ;;  %v6692_v29 = vpop.f32.mrb[201].mxu0 }
 0x5a5   : > { %v6798_v4 = vadd.f32 %v11889_v17, %v6692_v29  ;;  %v7995_v52 = vpop.f32.mrb[202].mxu0 }
 0x5a6   : > { %v6832_v27 = vmax.f32 %v6800_v55, 0.0  ;;  %v6801_v9 = vadd.f32 %v7995_v52, %v11889_v17  ;;  %v6695_v43 = vpop.f32.mrb[203].mxu0 }
 0x5a7   : > { %v6830_v60 = vmax.f32 %v6798_v4, 0.0  ;;  %v6799_v53 = vadd.f32 %v11889_v17, %v6695_v43 }
 0x5a8   : > { %v6864_v12 = vadd.f32 %v8447_v51, %v6832_v27  ;;  %v6833_v45 = vmax.f32 %v6801_v9, 0.0 }
 0x5a9   : > { %v6862_v49 = vadd.f32 %v8448_v20, %v6830_v60  ;;  %v6831_v61 = vmax.f32 %v6799_v53, 0.0 }
 0x5aa   : > { %6896 = vst.msk [vmem:[%s11899_s12 + $0xb0] sm:$0xff] %vm457_vm0, %v6864_v12  ;;  %v6865_v36 = vadd.f32 %v8449_v3, %v6833_v45 }
 0x5ab   : > { %6894 = vst.msk [vmem:[%s11899_s12 + $0xa0] sm:$0xff] %vm457_vm0, %v6862_v49  ;;  %v6863_v10 = vadd.f32 %v8450_v21, %v6831_v61 }
 0x5ac   : > { %6897 = vst.msk [vmem:[%s11899_s12 + $0xb8] sm:$0xff] %vm457_vm0, %v6865_v36 }
 0x5ad   : > { %6895 = vst.msk [vmem:[%s11899_s12 + $0xa8] sm:$0xff] %vm457_vm0, %v6863_v10 }
 0x5b3   : > { %v7998_v8 = vpop.f32.mrb[204].mxu0 }
 0x5b4   : > { %v6804_v46 = vadd.f32 %v7998_v8, %v11889_v17  ;;  %v6708_v22 = vpop.f32.mrb[205].mxu0 }
 0x5b5   : > { %v6802_v2 = vadd.f32 %v11889_v17, %v6708_v22  ;;  %v7999_v18 = vpop.f32.mrb[206].mxu0 }
 0x5b6   : > { %v6836_v30 = vmax.f32 %v6804_v46, 0.0  ;;  %v6805_v23 = vadd.f32 %v7999_v18, %v11889_v17  ;;  %v6711_v32 = vpop.f32.mrb[207].mxu0 }
 0x5b7   : > { %v6834_v59 = vmax.f32 %v6802_v2, 0.0  ;;  %v6803_v48 = vadd.f32 %v11889_v17, %v6711_v32 }
 0x5b8   : > { %v6868_v41 = vadd.f32 %v8451_v15, %v6836_v30  ;;  %v6837_v50 = vmax.f32 %v6805_v23, 0.0 }
 0x5b9   : > { %v6866_v13 = vadd.f32 %v8452_v42, %v6834_v59  ;;  %v6835_v19 = vmax.f32 %v6803_v48, 0.0 }
 0x5ba   : > { %6900 = vst.msk [vmem:[%s11899_s12 + $0xd0] sm:$0xff] %vm457_vm0, %v6868_v41  ;;  %v6869_v14 = vadd.f32 %v8453_v38, %v6837_v50 }
 0x5bb   : > { %6898 = vst.msk [vmem:[%s11899_s12 + $0xc0] sm:$0xff] %vm457_vm0, %v6866_v13  ;;  %v6867_v37 = vadd.f32 %v8454_v40, %v6835_v19 }
 0x5bc   : > { %6901 = vst.msk [vmem:[%s11899_s12 + $0xd8] sm:$0xff] %vm457_vm0, %v6869_v14 }
 0x5bd   : > { %6899 = vst.msk [vmem:[%s11899_s12 + $0xc8] sm:$0xff] %vm457_vm0, %v6867_v37 }
 0x5c3   : > { %v8002_v33 = vpop.f32.mrb[208].mxu0 }
 0x5c4   : > { %v6808_v44 = vadd.f32 %v8002_v33, %v11889_v17  ;;  %v6724_v58 = vpop.f32.mrb[209].mxu0 }
 0x5c5   : > { %v6806_v1 = vadd.f32 %v11889_v17, %v6724_v58  ;;  %v8003_v62 = vpop.f32.mrb[210].mxu0 }
 0x5c6   : > { %v6840_v28 = vmax.f32 %v6808_v44, 0.0  ;;  %v6809_v31 = vadd.f32 %v8003_v62, %v11889_v17  ;;  %v6727_v25 = vpop.f32.mrb[211].mxu0 }
 0x5c7   : > { %v6838_v47 = vmax.f32 %v6806_v1, 0.0  ;;  %v6807_v7 = vadd.f32 %v11889_v17, %v6727_v25  ;;  %v8458_v17 = vld [vmem:[%s8649_s24 + $0xe8] sm:$0xff] }
 0x5c8   : > { %v6872_v5 = vadd.f32 %v8455_v26, %v6840_v28  ;;  %v6841_v0 = vmax.f32 %v6809_v31, 0.0 }
 0x5c9   : > { %v6870_v56 = vadd.f32 %v8456_v11, %v6838_v47  ;;  %v6839_v34 = vmax.f32 %v6807_v7, 0.0 }
 0x5ca   : > { %6904 = vst.msk [vmem:[%s11899_s12 + $0xf0] sm:$0xff] %vm457_vm0, %v6872_v5  ;;  %v6873_v24 = vadd.f32 %v8457_v39, %v6841_v0 }
 0x5cb   : > { %6902 = vst.msk [vmem:[%s11899_s12 + $0xe0] sm:$0xff] %vm457_vm0, %v6870_v56  ;;  %v6871_v16 = vadd.f32 %v8458_v17, %v6839_v34 }
 0x5cc   : > { %6905 = vst.msk [vmem:[%s11899_s12 + $0xf8] sm:$0xff] %vm457_vm0, %v6873_v24 }
 0x5cd   : > { %6903 = vst.msk [vmem:[%s11899_s12 + $0xe8] sm:$0xff] %vm457_vm0, %v6871_v16 }
 0x5ce   : > { %8472 = shalt.err (!%p8469_p3)
}
 0x5cf   : > { %s8473_s24 = scalar_lea.hbm %s12021_s15, 4096  ;;  %s8477_s25 = scalar_lea.hbm %s12086_s11, 8192 }
 0x5d0   : > { %p8474_p4 = scmp.ne.s32.totalorder %s12021_s15, %s8473_s24  ;;  %p8478_p9 = scmp.lt.u32.totalorder %s12021_s15, %s12086_s11 }
 0x5d1   : > { %p8479_p10 = scmp.lt.u32.totalorder %s8477_s25, %s8473_s24  ;;  %p8481_p12 = scmp.lt.u32.totalorder %s8473_s24, %s12021_s15 }
 0x5d2   : > { %p8475_p7 = pnand %p8474_p4, %p8628_p5 }
 0x5d3   : > { %p8480_p11 = por %p8479_p10, %p8478_p9 }
 0x5d4   : > { %p8476_p8 = pneg %p8475_p7 }
 0x5d5   : > { %p8482_p13 = por %p8481_p12, %p8480_p11 }
 0x5d7   : > { %p8483_p0 = pnand %p8482_p13, %p8476_p8 }
 0x5d9   : > { %8486 = shalt.err (!%p8483_p0)
}
 0x5da   : > { %s8528_s29 = smov 128   ;;  %s8529_s22 = smov 8  }
 0x5db   : > { %8152 = dma.vmem_to_hbm [thread:$0]  (%p8628_p5), %s12023_s30, 4096, %s12021_s15, %s12034_s21, %s8528_s29, %s8528_s29, %s8529_s22  }
 0x5dc PF: > { %p8158_p1 = scmp.ge.s32.totalorder %s8521_s20, 2  ;;  %s6935_s14 = sand.u32 1, %s8509_s17  }
 0x5dd   : > { %s6936_s24 = scalar_lea.sflag [#allocation5], %s6935_s14 }
 0x5de   : > { %p8155_p2 = pnand %p8158_p1, %p8632_p6 }
 0x5e0   : > { %8504 = dma.done.wait (!%p8155_p2), %s6936_s24, 4096  }
 0x5e1   : > { %8506 = vsyncadd (!%p8155_p2), %s6936_s24, 4294963200  ;;  %p21_p3 = scmp.ge.s32.totalorder %s8615_s23, 4   ;;  %s12359_s17 = smov %s8513_s18 }
 0x5e2   : > { %s12360_s18 = smov %s8517_s19  ;;  %s12361_s19 = smov %s8626_s26 }
 0x5e3   : > { %s12362_s20 = smov %s8615_s23  ;;  %23 = sbr.rel (!%p21_p3) target bundleno = 3 (0x3), region = 109 }
 0x5ea   :  { %6941 = vsyncpa [#allocation5], 1 }
 0x5eb   :  { %6943 = vsyncpa [#allocation5 + $0x1], 1 }

</bundles_post_ra>
